<compile_context>
chip_gen: v5e
topology: v5e:2x2
jax: 0.10.0
libtpu: 0.0.40
codegen_flags: <defaults>
</compile_context>

<pallas_src>
import functools

import jax
import jax.numpy as jnp
from jax.experimental import pallas as pl
from jax.experimental.pallas import tpu as pltpu


def _decoder_kernel(x_ref,
                    wf1, b1, s1, sh1,
                    wf2, b2, s2, sh2,
                    wf3, b3, s3, sh3,
                    wf4, b4,
                    o_ref, *, TH, H, W, Cd):
    """Fused 4-ConvBlock decoder for one (image, row-tile) grid step.

    x_ref : (1, H+8, W+2, 3)  bf16, zero-padded input (4-row / 1-col halo)
    wf*   : (9*Cin, Cout)     bf16, tap-fused conv weights
    b*    : (1, Cout)         f32 conv bias
    s*/sh*: (1, Cout)         f32 folded-BN scale / shift
    o_ref : (1, Cd, TH*W)     f32, lane-dense NCHW-ordered output tile
    """
    ti = pl.program_id(1)
    r0 = ti * TH                      # first output row of this tile
    if TH % 8 == 0:
        r0 = pl.multiple_of(r0, 8)

    def conv3x3(xp, wf_ref, b_ref, scale_ref, shift_ref, row_off, apply_act):
        # xp: (R+2, W+2, Cin) bf16 value with zero halos -> (R, W, Cout) f32.
        R = xp.shape[0] - 2
        Cin = xp.shape[2]
        # im2col: build the patch matrix once, then a single MXU matmul.
        taps = [xp[ky:ky + R, kx:kx + W, :]
                for ky in range(3) for kx in range(3)]
        patches = jnp.concatenate(taps, axis=-1).reshape(R * W, 9 * Cin)
        acc = jnp.dot(patches, wf_ref[...],
                      preferred_element_type=jnp.float32)       # bf16 x bf16 -> f32
        acc = acc + b_ref[...]
        if apply_act:
            acc = jnp.where(acc >= 0, acc, 0.01 * acc)          # LeakyReLU(0.01)
            acc = acc * scale_ref[...] + shift_ref[...]         # folded inference BN
        y = acc.reshape(R, W, acc.shape[-1])
        if row_off is not None:
            # Zero rows outside the real image so the next layer sees true
            # zero padding (exact stacked Conv2d(padding=1) semantics).
            g = jax.lax.broadcasted_iota(jnp.int32, y.shape, 0) + (r0 - row_off)
            y = jnp.where(jnp.logical_and(g >= 0, g < H), y, 0.0)
        return y

    def pad_w(y):
        z = jnp.zeros((y.shape[0], 1, y.shape[2]), y.dtype)
        return jnp.concatenate([z, y, z], axis=1)               # 1-col zero halo

    # Row window [r0-4, r0+TH+4) of the (already padded) input.
    x0 = x_ref[0, pl.ds(r0, TH + 8), :, :]                      # (TH+8, W+2, 3) bf16
    y1 = conv3x3(x0, wf1, b1, s1, sh1, 3, True).astype(jnp.bfloat16)
    y2 = conv3x3(pad_w(y1), wf2, b2, s2, sh2, 2, True).astype(jnp.bfloat16)
    y3 = conv3x3(pad_w(y2), wf3, b3, s3, sh3, 1, True).astype(jnp.bfloat16)
    y4 = conv3x3(pad_w(y3), wf4, b4, None, None, None, False)   # (TH, W, Cd) f32
    # Lane-dense store, already channel-major (NCHW order).
    o_ref[0] = jnp.transpose(y4.reshape(TH * W, Cd), (1, 0))


def _pick_tile_h(H, W):
    if H <= 32:
        return H
    for th in (32, 16, 8):
        # lane-dense output tiling needs th*W % 128 == 0 when tiling rows
        if H % th == 0 and (th * W) % 128 == 0:
            return th
    return H


@functools.partial(jax.jit, static_argnames=("tile_h",))
def basic_decoder_forward(params, image_nchw, tile_h=None):
    """image_nchw: (N, 3, H, W) -> (N, data_depth, H, W), matching PyTorch."""
    x = jnp.transpose(image_nchw, (0, 2, 3, 1)).astype(jnp.bfloat16)   # NHWC bf16
    N, H, W, Cin = x.shape
    Cd = params["final"][0].shape[-1]

    th = tile_h if tile_h is not None else _pick_tile_h(H, W)
    if H % th != 0 or (H // th > 1 and (th * W) % 128 != 0):
        th = H                                  # fall back to one tile per image
    nT = H // th

    # Single cheap zero-pad of the 3-channel input gives the 4-row / 1-col halo
    # required by the whole fused 4-conv stack.
    x_pad = jnp.pad(x, ((0, 0), (4, 4), (1, 1), (0, 0)))

    def prep(p, last):
        w, b, scale, shift = p                  # w: (3, 3, Cin, Cout)
        cin, cout = w.shape[2], w.shape[3]
        args = [w.reshape(9 * cin, cout).astype(jnp.bfloat16),
                b.reshape(1, cout).astype(jnp.float32)]
        if not last:
            args += [scale.reshape(1, cout).astype(jnp.float32),
                     shift.reshape(1, cout).astype(jnp.float32)]
        return args

    flat = (prep(params["initial"], False) + prep(params["block1"], False)
            + prep(params["block2"], False) + prep(params["final"], True))

    kernel = functools.partial(_decoder_kernel, TH=th, H=H, W=W, Cd=Cd)
    const2 = lambda n, t: (0, 0)
    in_specs = [pl.BlockSpec((1, H + 8, W + 2, Cin), lambda n, t: (n, 0, 0, 0))]
    in_specs += [pl.BlockSpec(a.shape, const2) for a in flat]

    out = pl.pallas_call(
        kernel,
        out_shape=jax.ShapeDtypeStruct((N, Cd, H * W), jnp.float32),
        grid=(N, nT),
        in_specs=in_specs,
        out_specs=pl.BlockSpec((1, Cd, th * W), lambda n, t: (n, 0, t)),
        compiler_params=pltpu.CompilerParams(
            dimension_semantics=("parallel", "parallel"),
            vmem_limit_bytes=32 * 1024 * 1024),   # safe on v5e/v6e/v7x (64 MiB phys)
    )(x_pad, *flat)
    return out.reshape(N, Cd, H, W)


# ---------------------------------------------------------------------------
# Parameters + pure-JAX reference (for correctness checking)
# ---------------------------------------------------------------------------

def init_block_params(key, cin, cout, *, last_block):
    k_w, k_b, k_g, k_be, k_m, k_v = jax.random.split(key, 6)
    w = jax.random.normal(k_w, (3, 3, cin, cout), jnp.float32) * 0.1
    b = jax.random.normal(k_b, (cout,), jnp.float32) * 0.1
    if last_block:
        scale = jnp.ones((cout,), jnp.float32)
        shift = jnp.zeros((cout,), jnp.float32)
    else:
        eps = 1e-5
        gamma = 1.0 + 0.1 * jax.random.normal(k_g, (cout,), jnp.float32)
        beta = 0.1 * jax.random.normal(k_be, (cout,), jnp.float32)
        running_mean = 0.1 * jax.random.normal(k_m, (cout,), jnp.float32)
        running_var = jax.random.uniform(k_v, (cout,), jnp.float32, 0.5, 1.5)
        scale = gamma / jnp.sqrt(running_var + eps)
        shift = beta - running_mean * scale
    return (w, b, scale, shift)


def init_basic_decoder_params(seed, data_depth):
    key = jax.random.PRNGKey(seed)
    k0, k1, k2, k3 = jax.random.split(key, 4)
    return {
        "initial": init_block_params(k0, 3, 32, last_block=False),
        "block1": init_block_params(k1, 32, 32, last_block=False),
        "block2": init_block_params(k2, 32, 32, last_block=False),
        "final": init_block_params(k3, 32, data_depth, last_block=True),
    }


def _ref_block(x, p, act):
    w, b, scale, shift = p
    y = jax.lax.conv_general_dilated(
        x, w, window_strides=(1, 1), padding="SAME",
        dimension_numbers=("NHWC", "HWIO", "NHWC"))
    y = y + b
    if act:
        y = jnp.where(y >= 0, y, 0.01 * y)
        y = y * scale + shift
    return y


def reference_forward(params, image_nchw):
    x = jnp.transpose(image_nchw, (0, 2, 3, 1)).astype(jnp.float32)
    x = _ref_block(x, params["initial"], True)
    x = _ref_block(x, params["block1"], True)
    x = _ref_block(x, params["block2"], True)
    x = _ref_block(x, params["final"], False)
    return jnp.transpose(x, (0, 3, 1, 2))


if __name__ == "__main__":
    data_depth = 4
    N, C, H, W = 2, 3, 16, 16

    params = init_basic_decoder_params(seed=0, data_depth=data_depth)
    image = jax.random.normal(jax.random.PRNGKey(0), (N, C, H, W), jnp.float32)

    # tile_h=8 exercises the real (batch, row-tile) grid: grid = (2, 2).
    out = basic_decoder_forward(params, image, tile_h=8)
    jax.block_until_ready(out)
    assert out.shape == (N, data_depth, H, W), out.shape
    assert out.dtype == jnp.float32

    ref = reference_forward(params, image)
    max_err = float(jnp.max(jnp.abs(out - ref)))
    ref_scale = float(jnp.max(jnp.abs(ref)))
    assert max_err <= 5e-2 * ref_scale + 5e-2, (max_err, ref_scale)

    print("KERNEL_OK")
</pallas_src>

<mosaic_0001>
module attributes {stable_mosaic.version = 11 : i64} {
  func.func @_decoder_kernel(%arg0: i32, %arg1: i32, %arg2: memref<1x24x18x3xbf16, #tpu.memory_space<vmem>>, %arg3: memref<27x32xbf16, #tpu.memory_space<vmem>>, %arg4: memref<1x32xf32, #tpu.memory_space<vmem>>, %arg5: memref<1x32xf32, #tpu.memory_space<vmem>>, %arg6: memref<1x32xf32, #tpu.memory_space<vmem>>, %arg7: memref<288x32xbf16, #tpu.memory_space<vmem>>, %arg8: memref<1x32xf32, #tpu.memory_space<vmem>>, %arg9: memref<1x32xf32, #tpu.memory_space<vmem>>, %arg10: memref<1x32xf32, #tpu.memory_space<vmem>>, %arg11: memref<288x32xbf16, #tpu.memory_space<vmem>>, %arg12: memref<1x32xf32, #tpu.memory_space<vmem>>, %arg13: memref<1x32xf32, #tpu.memory_space<vmem>>, %arg14: memref<1x32xf32, #tpu.memory_space<vmem>>, %arg15: memref<288x4xbf16, #tpu.memory_space<vmem>>, %arg16: memref<1x4xf32, #tpu.memory_space<vmem>>, %arg17: memref<1x4x128xf32, #tpu.memory_space<vmem>>) attributes {dimension_semantics = [#tpu.dimension_semantics<parallel>, #tpu.dimension_semantics<parallel>], iteration_bounds = array<i64: 2, 2>, scalar_prefetch = 0 : i64, scratch_operands = 0 : i64, tpu.core_type = #tpu.core_type<tc>, window_params = [{transform_indices = @transform_0, window_bounds = array<i64: 1, 24, 18, 3>}, {pipeline_mode = #tpu.pipeline_mode<synchronous>, transform_indices = @transform_1, window_bounds = array<i64: 27, 32>}, {pipeline_mode = #tpu.pipeline_mode<synchronous>, transform_indices = @transform_2, window_bounds = array<i64: 1, 32>}, {pipeline_mode = #tpu.pipeline_mode<synchronous>, transform_indices = @transform_3, window_bounds = array<i64: 1, 32>}, {pipeline_mode = #tpu.pipeline_mode<synchronous>, transform_indices = @transform_4, window_bounds = array<i64: 1, 32>}, {pipeline_mode = #tpu.pipeline_mode<synchronous>, transform_indices = @transform_5, window_bounds = array<i64: 288, 32>}, {pipeline_mode = #tpu.pipeline_mode<synchronous>, transform_indices = @transform_6, window_bounds = array<i64: 1, 32>}, {pipeline_mode = #tpu.pipeline_mode<synchronous>, transform_indices = @transform_7, window_bounds = array<i64: 1, 32>}, {pipeline_mode = #tpu.pipeline_mode<synchronous>, transform_indices = @transform_8, window_bounds = array<i64: 1, 32>}, {pipeline_mode = #tpu.pipeline_mode<synchronous>, transform_indices = @transform_9, window_bounds = array<i64: 288, 32>}, {pipeline_mode = #tpu.pipeline_mode<synchronous>, transform_indices = @transform_10, window_bounds = array<i64: 1, 32>}, {pipeline_mode = #tpu.pipeline_mode<synchronous>, transform_indices = @transform_11, window_bounds = array<i64: 1, 32>}, {pipeline_mode = #tpu.pipeline_mode<synchronous>, transform_indices = @transform_12, window_bounds = array<i64: 1, 32>}, {pipeline_mode = #tpu.pipeline_mode<synchronous>, transform_indices = @transform_13, window_bounds = array<i64: 288, 4>}, {pipeline_mode = #tpu.pipeline_mode<synchronous>, transform_indices = @transform_14, window_bounds = array<i64: 1, 4>}, {transform_indices = @transform_15, window_bounds = array<i64: 1, 4, 128>}]} {
    %c8_i32 = arith.constant 8 : i32
    %0 = arith.muli %arg1, %c8_i32 : i32
    %1 = tpu.assume_multiple %0, 8 : i32
    %c0 = arith.constant 0 : index
    %2 = arith.index_cast %1 : i32 to index
    %c0_0 = arith.constant 0 : index
    %c0_1 = arith.constant 0 : index
    %3 = vector.load %arg2[%c0, %2, %c0_0, %c0_1] : memref<1x24x18x3xbf16, #tpu.memory_space<vmem>>, vector<1x16x18x3xbf16>
    %4 = vector.shape_cast %3 : vector<1x16x18x3xbf16> to vector<16x18x3xbf16>
    %5 = vector.extract_strided_slice %4 {offsets = [0, 0, 0], sizes = [14, 16, 3], strides = [1, 1, 1]} : vector<16x18x3xbf16> to vector<14x16x3xbf16>
    %6 = vector.extract_strided_slice %4 {offsets = [0, 1, 0], sizes = [14, 16, 3], strides = [1, 1, 1]} : vector<16x18x3xbf16> to vector<14x16x3xbf16>
    %7 = vector.extract_strided_slice %4 {offsets = [0, 2, 0], sizes = [14, 16, 3], strides = [1, 1, 1]} : vector<16x18x3xbf16> to vector<14x16x3xbf16>
    %8 = vector.extract_strided_slice %4 {offsets = [1, 0, 0], sizes = [14, 16, 3], strides = [1, 1, 1]} : vector<16x18x3xbf16> to vector<14x16x3xbf16>
    %9 = vector.extract_strided_slice %4 {offsets = [1, 1, 0], sizes = [14, 16, 3], strides = [1, 1, 1]} : vector<16x18x3xbf16> to vector<14x16x3xbf16>
    %10 = vector.extract_strided_slice %4 {offsets = [1, 2, 0], sizes = [14, 16, 3], strides = [1, 1, 1]} : vector<16x18x3xbf16> to vector<14x16x3xbf16>
    %11 = vector.extract_strided_slice %4 {offsets = [2, 0, 0], sizes = [14, 16, 3], strides = [1, 1, 1]} : vector<16x18x3xbf16> to vector<14x16x3xbf16>
    %12 = vector.extract_strided_slice %4 {offsets = [2, 1, 0], sizes = [14, 16, 3], strides = [1, 1, 1]} : vector<16x18x3xbf16> to vector<14x16x3xbf16>
    %13 = vector.extract_strided_slice %4 {offsets = [2, 2, 0], sizes = [14, 16, 3], strides = [1, 1, 1]} : vector<16x18x3xbf16> to vector<14x16x3xbf16>
    %14 = tpu.concatenate %5, %6, %7, %8, %9, %10, %11, %12, %13 in 2 : vector<14x16x3xbf16>, vector<14x16x3xbf16>, vector<14x16x3xbf16>, vector<14x16x3xbf16>, vector<14x16x3xbf16>, vector<14x16x3xbf16>, vector<14x16x3xbf16>, vector<14x16x3xbf16>, vector<14x16x3xbf16> -> vector<14x16x27xbf16>
    %15 = vector.shape_cast %14 : vector<14x16x27xbf16> to vector<224x27xbf16>
    %c0_2 = arith.constant 0 : index
    %c0_3 = arith.constant 0 : index
    %16 = vector.load %arg3[%c0_2, %c0_3] : memref<27x32xbf16, #tpu.memory_space<vmem>>, vector<27x32xbf16>
    %cst = arith.constant dense<0.000000e+00> : vector<224x32xf32>
    %17 = tpu.matmul %15, %16, %cst {dimension_numbers = #tpu.dot_dimension_numbers<[1], [0], [0], [1], [0, 0, 1, 1], [], []>} : vector<224x27xbf16>, vector<27x32xbf16>, vector<224x32xf32> -> vector<224x32xf32>
    %c0_4 = arith.constant 0 : index
    %c0_5 = arith.constant 0 : index
    %18 = vector.load %arg4[%c0_4, %c0_5] : memref<1x32xf32, #tpu.memory_space<vmem>>, vector<1x32xf32>
    %19 = vector.broadcast %18 : vector<1x32xf32> to vector<224x32xf32>
    %20 = arith.addf %17, %19 : vector<224x32xf32>
    %cst_6 = arith.constant 0.000000e+00 : f32
    %21 = vector.broadcast %cst_6 : f32 to vector<224x32xf32>
    %22 = arith.cmpf oge, %20, %21 : vector<224x32xf32>
    %cst_7 = arith.constant 0.00999999977 : f32
    %23 = vector.broadcast %cst_7 : f32 to vector<224x32xf32>
    %24 = arith.mulf %23, %20 : vector<224x32xf32>
    %25 = arith.select %22, %20, %24 : vector<224x32xi1>, vector<224x32xf32>
    %c0_8 = arith.constant 0 : index
    %c0_9 = arith.constant 0 : index
    %26 = vector.load %arg5[%c0_8, %c0_9] : memref<1x32xf32, #tpu.memory_space<vmem>>, vector<1x32xf32>
    %27 = vector.broadcast %26 : vector<1x32xf32> to vector<224x32xf32>
    %28 = arith.mulf %25, %27 : vector<224x32xf32>
    %c0_10 = arith.constant 0 : index
    %c0_11 = arith.constant 0 : index
    %29 = vector.load %arg6[%c0_10, %c0_11] : memref<1x32xf32, #tpu.memory_space<vmem>>, vector<1x32xf32>
    %30 = vector.broadcast %29 : vector<1x32xf32> to vector<224x32xf32>
    %31 = arith.addf %28, %30 : vector<224x32xf32>
    %32 = vector.shape_cast %31 : vector<224x32xf32> to vector<14x16x32xf32>
    %33 = tpu.iota {dimensions = array<i32: 0>} : vector<14x16x32xi32>
    %c3_i32 = arith.constant 3 : i32
    %34 = arith.subi %1, %c3_i32 : i32
    %35 = vector.broadcast %34 : i32 to vector<14x16x32xi32>
    %36 = arith.addi %33, %35 : vector<14x16x32xi32>
    %c0_i32 = arith.constant 0 : i32
    %37 = vector.broadcast %c0_i32 : i32 to vector<14x16x32xi32>
    %38 = arith.cmpi sge, %36, %37 : vector<14x16x32xi32>
    %c16_i32 = arith.constant 16 : i32
    %39 = vector.broadcast %c16_i32 : i32 to vector<14x16x32xi32>
    %40 = arith.cmpi slt, %36, %39 : vector<14x16x32xi32>
    %41 = arith.andi %38, %40 : vector<14x16x32xi1>
    %cst_12 = arith.constant 0.000000e+00 : f32
    %42 = vector.broadcast %cst_12 : f32 to vector<14x16x32xf32>
    %43 = arith.select %41, %32, %42 : vector<14x16x32xi1>, vector<14x16x32xf32>
    %44 = arith.truncf %43 : vector<14x16x32xf32> to vector<14x16x32xbf16>
    %cst_13 = arith.constant 0.000000e+00 : bf16
    %45 = vector.broadcast %cst_13 : bf16 to vector<14x1x32xbf16>
    %46 = tpu.concatenate %45, %44, %45 in 1 : vector<14x1x32xbf16>, vector<14x16x32xbf16>, vector<14x1x32xbf16> -> vector<14x18x32xbf16>
    %47 = vector.extract_strided_slice %46 {offsets = [0, 0, 0], sizes = [12, 16, 32], strides = [1, 1, 1]} : vector<14x18x32xbf16> to vector<12x16x32xbf16>
    %48 = vector.extract_strided_slice %46 {offsets = [0, 1, 0], sizes = [12, 16, 32], strides = [1, 1, 1]} : vector<14x18x32xbf16> to vector<12x16x32xbf16>
    %49 = vector.extract_strided_slice %46 {offsets = [0, 2, 0], sizes = [12, 16, 32], strides = [1, 1, 1]} : vector<14x18x32xbf16> to vector<12x16x32xbf16>
    %50 = vector.extract_strided_slice %46 {offsets = [1, 0, 0], sizes = [12, 16, 32], strides = [1, 1, 1]} : vector<14x18x32xbf16> to vector<12x16x32xbf16>
    %51 = vector.extract_strided_slice %46 {offsets = [1, 1, 0], sizes = [12, 16, 32], strides = [1, 1, 1]} : vector<14x18x32xbf16> to vector<12x16x32xbf16>
    %52 = vector.extract_strided_slice %46 {offsets = [1, 2, 0], sizes = [12, 16, 32], strides = [1, 1, 1]} : vector<14x18x32xbf16> to vector<12x16x32xbf16>
    %53 = vector.extract_strided_slice %46 {offsets = [2, 0, 0], sizes = [12, 16, 32], strides = [1, 1, 1]} : vector<14x18x32xbf16> to vector<12x16x32xbf16>
    %54 = vector.extract_strided_slice %46 {offsets = [2, 1, 0], sizes = [12, 16, 32], strides = [1, 1, 1]} : vector<14x18x32xbf16> to vector<12x16x32xbf16>
    %55 = vector.extract_strided_slice %46 {offsets = [2, 2, 0], sizes = [12, 16, 32], strides = [1, 1, 1]} : vector<14x18x32xbf16> to vector<12x16x32xbf16>
    %56 = tpu.concatenate %47, %48, %49, %50, %51, %52, %53, %54, %55 in 2 : vector<12x16x32xbf16>, vector<12x16x32xbf16>, vector<12x16x32xbf16>, vector<12x16x32xbf16>, vector<12x16x32xbf16>, vector<12x16x32xbf16>, vector<12x16x32xbf16>, vector<12x16x32xbf16>, vector<12x16x32xbf16> -> vector<12x16x288xbf16>
    %57 = vector.shape_cast %56 : vector<12x16x288xbf16> to vector<192x288xbf16>
    %c0_14 = arith.constant 0 : index
    %c0_15 = arith.constant 0 : index
    %58 = vector.load %arg7[%c0_14, %c0_15] : memref<288x32xbf16, #tpu.memory_space<vmem>>, vector<288x32xbf16>
    %cst_16 = arith.constant dense<0.000000e+00> : vector<192x32xf32>
    %59 = tpu.matmul %57, %58, %cst_16 {dimension_numbers = #tpu.dot_dimension_numbers<[1], [0], [0], [1], [0, 0, 1, 1], [], []>} : vector<192x288xbf16>, vector<288x32xbf16>, vector<192x32xf32> -> vector<192x32xf32>
    %c0_17 = arith.constant 0 : index
    %c0_18 = arith.constant 0 : index
    %60 = vector.load %arg8[%c0_17, %c0_18] : memref<1x32xf32, #tpu.memory_space<vmem>>, vector<1x32xf32>
    %61 = vector.broadcast %60 : vector<1x32xf32> to vector<192x32xf32>
    %62 = arith.addf %59, %61 : vector<192x32xf32>
    %cst_19 = arith.constant 0.000000e+00 : f32
    %63 = vector.broadcast %cst_19 : f32 to vector<192x32xf32>
    %64 = arith.cmpf oge, %62, %63 : vector<192x32xf32>
    %cst_20 = arith.constant 0.00999999977 : f32
    %65 = vector.broadcast %cst_20 : f32 to vector<192x32xf32>
    %66 = arith.mulf %65, %62 : vector<192x32xf32>
    %67 = arith.select %64, %62, %66 : vector<192x32xi1>, vector<192x32xf32>
    %c0_21 = arith.constant 0 : index
    %c0_22 = arith.constant 0 : index
    %68 = vector.load %arg9[%c0_21, %c0_22] : memref<1x32xf32, #tpu.memory_space<vmem>>, vector<1x32xf32>
    %69 = vector.broadcast %68 : vector<1x32xf32> to vector<192x32xf32>
    %70 = arith.mulf %67, %69 : vector<192x32xf32>
    %c0_23 = arith.constant 0 : index
    %c0_24 = arith.constant 0 : index
    %71 = vector.load %arg10[%c0_23, %c0_24] : memref<1x32xf32, #tpu.memory_space<vmem>>, vector<1x32xf32>
    %72 = vector.broadcast %71 : vector<1x32xf32> to vector<192x32xf32>
    %73 = arith.addf %70, %72 : vector<192x32xf32>
    %74 = vector.shape_cast %73 : vector<192x32xf32> to vector<12x16x32xf32>
    %75 = tpu.iota {dimensions = array<i32: 0>} : vector<12x16x32xi32>
    %c2_i32 = arith.constant 2 : i32
    %76 = arith.subi %1, %c2_i32 : i32
    %77 = vector.broadcast %76 : i32 to vector<12x16x32xi32>
    %78 = arith.addi %75, %77 : vector<12x16x32xi32>
    %c0_i32_25 = arith.constant 0 : i32
    %79 = vector.broadcast %c0_i32_25 : i32 to vector<12x16x32xi32>
    %80 = arith.cmpi sge, %78, %79 : vector<12x16x32xi32>
    %c16_i32_26 = arith.constant 16 : i32
    %81 = vector.broadcast %c16_i32_26 : i32 to vector<12x16x32xi32>
    %82 = arith.cmpi slt, %78, %81 : vector<12x16x32xi32>
    %83 = arith.andi %80, %82 : vector<12x16x32xi1>
    %cst_27 = arith.constant 0.000000e+00 : f32
    %84 = vector.broadcast %cst_27 : f32 to vector<12x16x32xf32>
    %85 = arith.select %83, %74, %84 : vector<12x16x32xi1>, vector<12x16x32xf32>
    %86 = arith.truncf %85 : vector<12x16x32xf32> to vector<12x16x32xbf16>
    %cst_28 = arith.constant 0.000000e+00 : bf16
    %87 = vector.broadcast %cst_28 : bf16 to vector<12x1x32xbf16>
    %88 = tpu.concatenate %87, %86, %87 in 1 : vector<12x1x32xbf16>, vector<12x16x32xbf16>, vector<12x1x32xbf16> -> vector<12x18x32xbf16>
    %89 = vector.extract_strided_slice %88 {offsets = [0, 0, 0], sizes = [10, 16, 32], strides = [1, 1, 1]} : vector<12x18x32xbf16> to vector<10x16x32xbf16>
    %90 = vector.extract_strided_slice %88 {offsets = [0, 1, 0], sizes = [10, 16, 32], strides = [1, 1, 1]} : vector<12x18x32xbf16> to vector<10x16x32xbf16>
    %91 = vector.extract_strided_slice %88 {offsets = [0, 2, 0], sizes = [10, 16, 32], strides = [1, 1, 1]} : vector<12x18x32xbf16> to vector<10x16x32xbf16>
    %92 = vector.extract_strided_slice %88 {offsets = [1, 0, 0], sizes = [10, 16, 32], strides = [1, 1, 1]} : vector<12x18x32xbf16> to vector<10x16x32xbf16>
    %93 = vector.extract_strided_slice %88 {offsets = [1, 1, 0], sizes = [10, 16, 32], strides = [1, 1, 1]} : vector<12x18x32xbf16> to vector<10x16x32xbf16>
    %94 = vector.extract_strided_slice %88 {offsets = [1, 2, 0], sizes = [10, 16, 32], strides = [1, 1, 1]} : vector<12x18x32xbf16> to vector<10x16x32xbf16>
    %95 = vector.extract_strided_slice %88 {offsets = [2, 0, 0], sizes = [10, 16, 32], strides = [1, 1, 1]} : vector<12x18x32xbf16> to vector<10x16x32xbf16>
    %96 = vector.extract_strided_slice %88 {offsets = [2, 1, 0], sizes = [10, 16, 32], strides = [1, 1, 1]} : vector<12x18x32xbf16> to vector<10x16x32xbf16>
    %97 = vector.extract_strided_slice %88 {offsets = [2, 2, 0], sizes = [10, 16, 32], strides = [1, 1, 1]} : vector<12x18x32xbf16> to vector<10x16x32xbf16>
    %98 = tpu.concatenate %89, %90, %91, %92, %93, %94, %95, %96, %97 in 2 : vector<10x16x32xbf16>, vector<10x16x32xbf16>, vector<10x16x32xbf16>, vector<10x16x32xbf16>, vector<10x16x32xbf16>, vector<10x16x32xbf16>, vector<10x16x32xbf16>, vector<10x16x32xbf16>, vector<10x16x32xbf16> -> vector<10x16x288xbf16>
    %99 = vector.shape_cast %98 : vector<10x16x288xbf16> to vector<160x288xbf16>
    %c0_29 = arith.constant 0 : index
    %c0_30 = arith.constant 0 : index
    %100 = vector.load %arg11[%c0_29, %c0_30] : memref<288x32xbf16, #tpu.memory_space<vmem>>, vector<288x32xbf16>
    %cst_31 = arith.constant dense<0.000000e+00> : vector<160x32xf32>
    %101 = tpu.matmul %99, %100, %cst_31 {dimension_numbers = #tpu.dot_dimension_numbers<[1], [0], [0], [1], [0, 0, 1, 1], [], []>} : vector<160x288xbf16>, vector<288x32xbf16>, vector<160x32xf32> -> vector<160x32xf32>
    %c0_32 = arith.constant 0 : index
    %c0_33 = arith.constant 0 : index
    %102 = vector.load %arg12[%c0_32, %c0_33] : memref<1x32xf32, #tpu.memory_space<vmem>>, vector<1x32xf32>
    %103 = vector.broadcast %102 : vector<1x32xf32> to vector<160x32xf32>
    %104 = arith.addf %101, %103 : vector<160x32xf32>
    %cst_34 = arith.constant 0.000000e+00 : f32
    %105 = vector.broadcast %cst_34 : f32 to vector<160x32xf32>
    %106 = arith.cmpf oge, %104, %105 : vector<160x32xf32>
    %cst_35 = arith.constant 0.00999999977 : f32
    %107 = vector.broadcast %cst_35 : f32 to vector<160x32xf32>
    %108 = arith.mulf %107, %104 : vector<160x32xf32>
    %109 = arith.select %106, %104, %108 : vector<160x32xi1>, vector<160x32xf32>
    %c0_36 = arith.constant 0 : index
    %c0_37 = arith.constant 0 : index
    %110 = vector.load %arg13[%c0_36, %c0_37] : memref<1x32xf32, #tpu.memory_space<vmem>>, vector<1x32xf32>
    %111 = vector.broadcast %110 : vector<1x32xf32> to vector<160x32xf32>
    %112 = arith.mulf %109, %111 : vector<160x32xf32>
    %c0_38 = arith.constant 0 : index
    %c0_39 = arith.constant 0 : index
    %113 = vector.load %arg14[%c0_38, %c0_39] : memref<1x32xf32, #tpu.memory_space<vmem>>, vector<1x32xf32>
    %114 = vector.broadcast %113 : vector<1x32xf32> to vector<160x32xf32>
    %115 = arith.addf %112, %114 : vector<160x32xf32>
    %116 = vector.shape_cast %115 : vector<160x32xf32> to vector<10x16x32xf32>
    %117 = tpu.iota {dimensions = array<i32: 0>} : vector<10x16x32xi32>
    %c1_i32 = arith.constant 1 : i32
    %118 = arith.subi %1, %c1_i32 : i32
    %119 = vector.broadcast %118 : i32 to vector<10x16x32xi32>
    %120 = arith.addi %117, %119 : vector<10x16x32xi32>
    %c0_i32_40 = arith.constant 0 : i32
    %121 = vector.broadcast %c0_i32_40 : i32 to vector<10x16x32xi32>
    %122 = arith.cmpi sge, %120, %121 : vector<10x16x32xi32>
    %c16_i32_41 = arith.constant 16 : i32
    %123 = vector.broadcast %c16_i32_41 : i32 to vector<10x16x32xi32>
    %124 = arith.cmpi slt, %120, %123 : vector<10x16x32xi32>
    %125 = arith.andi %122, %124 : vector<10x16x32xi1>
    %cst_42 = arith.constant 0.000000e+00 : f32
    %126 = vector.broadcast %cst_42 : f32 to vector<10x16x32xf32>
    %127 = arith.select %125, %116, %126 : vector<10x16x32xi1>, vector<10x16x32xf32>
    %128 = arith.truncf %127 : vector<10x16x32xf32> to vector<10x16x32xbf16>
    %cst_43 = arith.constant 0.000000e+00 : bf16
    %129 = vector.broadcast %cst_43 : bf16 to vector<10x1x32xbf16>
    %130 = tpu.concatenate %129, %128, %129 in 1 : vector<10x1x32xbf16>, vector<10x16x32xbf16>, vector<10x1x32xbf16> -> vector<10x18x32xbf16>
    %131 = vector.extract_strided_slice %130 {offsets = [0, 0, 0], sizes = [8, 16, 32], strides = [1, 1, 1]} : vector<10x18x32xbf16> to vector<8x16x32xbf16>
    %132 = vector.extract_strided_slice %130 {offsets = [0, 1, 0], sizes = [8, 16, 32], strides = [1, 1, 1]} : vector<10x18x32xbf16> to vector<8x16x32xbf16>
    %133 = vector.extract_strided_slice %130 {offsets = [0, 2, 0], sizes = [8, 16, 32], strides = [1, 1, 1]} : vector<10x18x32xbf16> to vector<8x16x32xbf16>
    %134 = vector.extract_strided_slice %130 {offsets = [1, 0, 0], sizes = [8, 16, 32], strides = [1, 1, 1]} : vector<10x18x32xbf16> to vector<8x16x32xbf16>
    %135 = vector.extract_strided_slice %130 {offsets = [1, 1, 0], sizes = [8, 16, 32], strides = [1, 1, 1]} : vector<10x18x32xbf16> to vector<8x16x32xbf16>
    %136 = vector.extract_strided_slice %130 {offsets = [1, 2, 0], sizes = [8, 16, 32], strides = [1, 1, 1]} : vector<10x18x32xbf16> to vector<8x16x32xbf16>
    %137 = vector.extract_strided_slice %130 {offsets = [2, 0, 0], sizes = [8, 16, 32], strides = [1, 1, 1]} : vector<10x18x32xbf16> to vector<8x16x32xbf16>
    %138 = vector.extract_strided_slice %130 {offsets = [2, 1, 0], sizes = [8, 16, 32], strides = [1, 1, 1]} : vector<10x18x32xbf16> to vector<8x16x32xbf16>
    %139 = vector.extract_strided_slice %130 {offsets = [2, 2, 0], sizes = [8, 16, 32], strides = [1, 1, 1]} : vector<10x18x32xbf16> to vector<8x16x32xbf16>
    %140 = tpu.concatenate %131, %132, %133, %134, %135, %136, %137, %138, %139 in 2 : vector<8x16x32xbf16>, vector<8x16x32xbf16>, vector<8x16x32xbf16>, vector<8x16x32xbf16>, vector<8x16x32xbf16>, vector<8x16x32xbf16>, vector<8x16x32xbf16>, vector<8x16x32xbf16>, vector<8x16x32xbf16> -> vector<8x16x288xbf16>
    %141 = vector.shape_cast %140 : vector<8x16x288xbf16> to vector<128x288xbf16>
    %c0_44 = arith.constant 0 : index
    %c0_45 = arith.constant 0 : index
    %142 = vector.load %arg15[%c0_44, %c0_45] : memref<288x4xbf16, #tpu.memory_space<vmem>>, vector<288x4xbf16>
    %cst_46 = arith.constant dense<0.000000e+00> : vector<128x4xf32>
    %143 = tpu.matmul %141, %142, %cst_46 {dimension_numbers = #tpu.dot_dimension_numbers<[1], [0], [0], [1], [0, 0, 1, 1], [], []>} : vector<128x288xbf16>, vector<288x4xbf16>, vector<128x4xf32> -> vector<128x4xf32>
    %c0_47 = arith.constant 0 : index
    %c0_48 = arith.constant 0 : index
    %144 = vector.load %arg16[%c0_47, %c0_48] : memref<1x4xf32, #tpu.memory_space<vmem>>, vector<1x4xf32>
    %145 = vector.broadcast %144 : vector<1x4xf32> to vector<128x4xf32>
    %146 = arith.addf %143, %145 : vector<128x4xf32>
    %147 = vector.shape_cast %146 : vector<128x4xf32> to vector<8x16x4xf32>
    %148 = vector.shape_cast %147 : vector<8x16x4xf32> to vector<128x4xf32>
    %149 = tpu.transpose %148, [1, 0] : vector<128x4xf32> -> vector<4x128xf32>
    %c0_49 = arith.constant 0 : index
    %c0_50 = arith.constant 0 : index
    %c0_51 = arith.constant 0 : index
    %150 = vector.load %arg17[%c0_49, %c0_50, %c0_51] : memref<1x4x128xf32, #tpu.memory_space<vmem>>, vector<1x4x128xf32>
    %151 = vector.shape_cast %150 : vector<1x4x128xf32> to vector<4x128xf32>
    %152 = vector.shape_cast %149 : vector<4x128xf32> to vector<1x4x128xf32>
    tpu.vector_store %arg17[%c0_49, %c0_50, %c0_51], %152 {strides = array<i32>} : memref<1x4x128xf32, #tpu.memory_space<vmem>>, vector<1x4x128xf32>,
    return
  }
  func.func @transform_0(%arg0: i32, %arg1: i32) -> (i32, i32, i32, i32) {
    %c0_i32 = arith.constant 0 : i32
    %c0_i32_0 = arith.constant 0 : i32
    %c0_i32_1 = arith.constant 0 : i32
    %c0_i32_2 = arith.constant 0 : i32
    return %arg0, %c0_i32, %c0_i32_0, %c0_i32_1 : i32, i32, i32, i32
  }
  func.func @transform_1(%arg0: i32, %arg1: i32) -> (i32, i32) {
    %c0_i32 = arith.constant 0 : i32
    %c0_i32_0 = arith.constant 0 : i32
    %c0_i32_1 = arith.constant 0 : i32
    return %c0_i32, %c0_i32_0 : i32, i32
  }
  func.func @transform_2(%arg0: i32, %arg1: i32) -> (i32, i32) {
    %c0_i32 = arith.constant 0 : i32
    %c0_i32_0 = arith.constant 0 : i32
    %c0_i32_1 = arith.constant 0 : i32
    return %c0_i32, %c0_i32_0 : i32, i32
  }
  func.func @transform_3(%arg0: i32, %arg1: i32) -> (i32, i32) {
    %c0_i32 = arith.constant 0 : i32
    %c0_i32_0 = arith.constant 0 : i32
    %c0_i32_1 = arith.constant 0 : i32
    return %c0_i32, %c0_i32_0 : i32, i32
  }
  func.func @transform_4(%arg0: i32, %arg1: i32) -> (i32, i32) {
    %c0_i32 = arith.constant 0 : i32
    %c0_i32_0 = arith.constant 0 : i32
    %c0_i32_1 = arith.constant 0 : i32
    return %c0_i32, %c0_i32_0 : i32, i32
  }
  func.func @transform_5(%arg0: i32, %arg1: i32) -> (i32, i32) {
    %c0_i32 = arith.constant 0 : i32
    %c0_i32_0 = arith.constant 0 : i32
    %c0_i32_1 = arith.constant 0 : i32
    return %c0_i32, %c0_i32_0 : i32, i32
  }
  func.func @transform_6(%arg0: i32, %arg1: i32) -> (i32, i32) {
    %c0_i32 = arith.constant 0 : i32
    %c0_i32_0 = arith.constant 0 : i32
    %c0_i32_1 = arith.constant 0 : i32
    return %c0_i32, %c0_i32_0 : i32, i32
  }
  func.func @transform_7(%arg0: i32, %arg1: i32) -> (i32, i32) {
    %c0_i32 = arith.constant 0 : i32
    %c0_i32_0 = arith.constant 0 : i32
    %c0_i32_1 = arith.constant 0 : i32
    return %c0_i32, %c0_i32_0 : i32, i32
  }
  func.func @transform_8(%arg0: i32, %arg1: i32) -> (i32, i32) {
    %c0_i32 = arith.constant 0 : i32
    %c0_i32_0 = arith.constant 0 : i32
    %c0_i32_1 = arith.constant 0 : i32
    return %c0_i32, %c0_i32_0 : i32, i32
  }
  func.func @transform_9(%arg0: i32, %arg1: i32) -> (i32, i32) {
    %c0_i32 = arith.constant 0 : i32
    %c0_i32_0 = arith.constant 0 : i32
    %c0_i32_1 = arith.constant 0 : i32
    return %c0_i32, %c0_i32_0 : i32, i32
  }
  func.func @transform_10(%arg0: i32, %arg1: i32) -> (i32, i32) {
    %c0_i32 = arith.constant 0 : i32
    %c0_i32_0 = arith.constant 0 : i32
    %c0_i32_1 = arith.constant 0 : i32
    return %c0_i32, %c0_i32_0 : i32, i32
  }
  func.func @transform_11(%arg0: i32, %arg1: i32) -> (i32, i32) {
    %c0_i32 = arith.constant 0 : i32
    %c0_i32_0 = arith.constant 0 : i32
    %c0_i32_1 = arith.constant 0 : i32
    return %c0_i32, %c0_i32_0 : i32, i32
  }
  func.func @transform_12(%arg0: i32, %arg1: i32) -> (i32, i32) {
    %c0_i32 = arith.constant 0 : i32
    %c0_i32_0 = arith.constant 0 : i32
    %c0_i32_1 = arith.constant 0 : i32
    return %c0_i32, %c0_i32_0 : i32, i32
  }
  func.func @transform_13(%arg0: i32, %arg1: i32) -> (i32, i32) {
    %c0_i32 = arith.constant 0 : i32
    %c0_i32_0 = arith.constant 0 : i32
    %c0_i32_1 = arith.constant 0 : i32
    return %c0_i32, %c0_i32_0 : i32, i32
  }
  func.func @transform_14(%arg0: i32, %arg1: i32) -> (i32, i32) {
    %c0_i32 = arith.constant 0 : i32
    %c0_i32_0 = arith.constant 0 : i32
    %c0_i32_1 = arith.constant 0 : i32
    return %c0_i32, %c0_i32_0 : i32, i32
  }
  func.func @transform_15(%arg0: i32, %arg1: i32) -> (i32, i32, i32) {
    %c0_i32 = arith.constant 0 : i32
    %c0_i32_0 = arith.constant 0 : i32
    return %arg0, %c0_i32, %arg1 : i32, i32, i32
  }
}

</mosaic_0001>

<bundles_post_ra>
// kernel: basic_decoder_forward.1
= control target key start
LH: loop header
LB: loop body
LE: loop exit
PB: predicated region body
PF: predicated region fallthrough
CT: control target
= control target key end

     0   :  { %s6016_s18 = smov 0   ;;  %s6018_s19 = smov 0   ;;  %s8717_s0 = inlined_call_operand.vmem [shape: bf16[2,24,18,3], index: 0, kind: input, shape index: {}]   ;;  %s8718_s1 = inlined_call_operand.vmem [shape: bf16[27,32], index: 1, kind: input, shape index: {}]   ;;  %s8719_s2 = inlined_call_operand.vmem [shape: f32[1,32], index: 2, kind: input, shape index: {}]   ;;  %s8720_s3 = inlined_call_operand.vmem [shape: f32[1,32], index: 3, kind: input, shape index: {}]   ;;  %s8721_s4 = inlined_call_operand.vmem [shape: f32[1,32], index: 4, kind: input, shape index: {}]   ;;  %s8722_s5 = inlined_call_operand.vmem [shape: bf16[288,32], index: 5, kind: input, shape index: {}]   ;;  %s8723_s6 = inlined_call_operand.vmem [shape: f32[1,32], index: 6, kind: input, shape index: {}]   ;;  %s8724_s7 = inlined_call_operand.vmem [shape: f32[1,32], index: 7, kind: input, shape index: {}]   ;;  %s8725_s8 = inlined_call_operand.vmem [shape: f32[1,32], index: 8, kind: input, shape index: {}]   ;;  %s8726_s9 = inlined_call_operand.vmem [shape: bf16[288,32], index: 9, kind: input, shape index: {}]   ;;  %s8727_s10 = inlined_call_operand.vmem [shape: f32[1,32], index: 10, kind: input, shape index: {}]   ;;  %s8728_s11 = inlined_call_operand.vmem [shape: f32[1,32], index: 11, kind: input, shape index: {}]   ;;  %s8729_s12 = inlined_call_operand.vmem [shape: f32[1,32], index: 12, kind: input, shape index: {}]   ;;  %s8730_s13 = inlined_call_operand.vmem [shape: bf16[288,4], index: 13, kind: input, shape index: {}]   ;;  %s8731_s14 = inlined_call_operand.vmem [shape: f32[1,4], index: 14, kind: input, shape index: {}]   ;;  %s8732_s15 = inlined_call_operand.vmem [shape: f32[2,4,256], index: 15, kind: output, shape index: {}]  }
   0x1   :  { %8751 = sst [smem:[#allocation4_spill]] %s8717_s0  ;;  %s6020_s20 = smov 0  }
   0x2   :  { %s6022_s21 = smov 0   ;;  %s6024_s22 = smov 0  }
   0x3 LB: > { %s34_s23 = sadd.s32 1, %s5914_s20  ;;  %s37_s24 = sadd.s32 1, %s5918_s21  ;;  %s5922_s22 = sphi %s6024_s22, %s25_s22   ;;  %s5918_s21 = sphi %s6022_s21, %s8874_s21   ;;  %s5914_s20 = sphi %s6020_s20, %s8873_s20   ;;  %s5910_s19 = sphi %s6018_s19, %s8872_s19   ;;  %s5906_s18 = sphi %s6016_s18, %s8871_s18  }
   0x4   : > { %p35_p0 = scmp.ge.s32.totalorder %s34_s23, 2  ;;  %p5391_p1 = scmp.ge.s32.totalorder %s5922_s22, 1 }
   0x5   : > { %p451_p2 = scmp.lt.s32.totalorder %s5922_s22, 5 }
   0x6   : > { %s8876_s23 = smov (%p35_p0, %s34_s23), 0  ;;  %s8878_s24 = smov (!%p35_p0, %s37_s24), %s5918_s21 }
   0x7   : > { %8752 = sst [smem:[#allocation2_spill]] %s8876_s23  ;;  %p452_p3 = pnand %p5391_p1, %p451_p2 }
   0x8   : > { %p39_p4 = scmp.ge.s32.totalorder %s8878_s24, 2  ;;  %p502_p5 = scmp.lt.s32.totalorder (!%p452_p3), %s5910_s19, 1 }
   0x9   : > { %455 = sbr.rel (%p452_p3) target bundleno = 1850 (0x73a), region = 80  ;;  %s8754_s0 = sld [smem:[#allocation4_spill]] (!%p452_p3) }
   0xa   : > { %s8880_s24 = smov (%p39_p4, %s8878_s24), 0  ;;  %s5735_s25 = smul.u32 (!%p452_p3), 96, %s5906_s18 }
   0xb   : > { %8753 = sst [smem:[#allocation3_spill]] %s8880_s24  ;;  %s8747_s16 = smov (!%p452_p3), 9  }
   0xc   : > { %s8735_s17 = smov (!%p452_p3), 18   ;;  %s8743_s27 = smov (!%p452_p3), 15  }
   0xd   : > { %s8737_s28 = smov (!%p452_p3), 3   ;;  %p509_p6 = scmp.lt.s32.totalorder (!%p452_p3), %s5906_s18, 1 }
   0xe   : > { %s8882_s19 = smov (!%p502_p5, %s5910_s19), 1  ;;  %vm877_vm0 = vcmask 1046528   ;;  %vm8749_vm1 = vsmask.f32 7424  ;;  %vm1442_vm2 = vcmask 1044480   ;;  %vm1443_vm3 = vcmask 1045504  }
   0xf   : > { %s5812_s26 = smul.u32 288, %s8882_s19  ;;  %vm1162_vm4 = vcmask 23552   ;;  %vm1191_vm5 = vcmask 48128   ;;  %vm1220_vm6 = vcmask 72704   ;;  %vm1249_vm7 = vcmask 97280  }
  0x10   : > { %vm1278_vm8 = vcmask 121856   ;;  %vm1307_vm9 = vcmask 146432   ;;  %vm1336_vm10 = vcmask 171008   ;;  %vm1365_vm11 = vcmask 195584  }
  0x11   : > { %s506_s29 = scalar_lea.vmem %s8754_s0, %s5812_s26  ;;  %s8733_s26 = smov 24   ;;  %vm8750_vm12 = vcmask 220160  }
  0x12   : > { %s6055_s30 = scalar_lea.vmem %s506_s29, %s5735_s25  ;;  %s8741_s25 = smov 6  }
  0x13   : > { %v6058_v0 = vld [vmem:[%s6055_s30 + $0xc] sm:$0xff]  ;;  %v6061_v1 = vld [vmem:[%s6055_s30] sm:$0xff]  ;;  %v522_v2 = vld [vmem:[%s6055_s30 + $0x8] sm:$0x1]  ;;  %s8739_s29 = smov 12   ;;  %s8761_s0 = smov 15  }
  0x14   : > { %v652_v3 = vunpack.c.l.b16 %v522_v2  ;;  %v6065_v4 = vld [vmem:[%s6055_s30 + $0x18] sm:$0xff]  ;;  %v528_v5 = vld [vmem:[%s6055_s30 + $0x20] sm:$0x1]  ;;  %v525_v6 = vld [vmem:[%s6055_s30 + $0x14] sm:$0x1]  ;;  %953 = vrot.lane.b32.xlu1 %v6058_v0, %s8747_s16  ;;  %v684_v8 = vshll.u32 %v6061_v1, 16 }
  0x15   : > { %v654_v7 = vunpack.c.l.b16 %v528_v5  ;;  %v878_v10 = vrot.slane %v6061_v1, 1  ;;  %v653_v11 = vunpack.c.l.b16 %v525_v6  ;;  %1060 = vrot.lane.b32.xlu2 %v6065_v4, %s8735_s17  ;;  %v884_v13 = vrot.slane %v6065_v4, 1  ;;  %v531_v41 = vld [vmem:[%s6055_s30 + $0x2c] sm:$0x1]  ;;  %v6096_v43 = vld [vmem:[%s6055_s30 + $0x24] sm:$0xff]  ;;  %v6111_v54 = vld [vmem:[%s6055_s30 + $0x30] sm:$0xff] }
  0x16   : > { %v666_v9 = vpack.c.b16 %v652_v3, %v652_v3  ;;  %v682_v14 = vshrl.u32 %v6061_v1, 16  ;;  %v696_v15 = vshll.u32 %v6058_v0, 16  ;;  %v686_v17 = vrot.slane %v684_v8, 1  ;;  %v534_v53 = vld [vmem:[%s6055_s30 + $0x38] sm:$0x1] }
  0x17   : > { %v668_v12 = vpack.c.b16 %v654_v7, %v654_v7  ;;  %v667_v19 = vpack.c.b16 %v653_v11, %v653_v11  ;;  %v694_v22 = vshrl.u32 %v6058_v0, 16  ;;  %v881_v26 = vrot.slane %v6058_v0, 1 }
  0x18   : > { %v879_v16 = vrot.slane %v666_v9, 1  ;;  %v689_v18 = vshll.u32 %v666_v9, 16  ;;  %v698_v23 = vrot.slane %v696_v15, 1  ;;  %v687_v27 = vor.u32 %v686_v17, %v682_v14  ;;  %v537_v9 = vld [vmem:[%s6055_s30 + $0x44] sm:$0x1] }
  0x19   : > { %v885_v20 = vrot.slane %v668_v12, 1  ;;  %v701_v24 = vshll.u32 %v667_v19, 16  ;;  %v708_v29 = vshll.u32 %v6065_v4, 16  ;;  %v882_v30 = vrot.slane %v667_v19, 1 }
  0x1a   : > { %v880_v21 = vsel %vm877_vm0, %v878_v10, %v879_v16  ;;  %v691_v28 = vrot.slane %v689_v18, 1  ;;  %v699_v31 = vor.u32 %v698_v23, %v694_v22  ;;  %v706_v35 = vshrl.u32 %v6065_v4, 16  ;;  %v6137_v10 = vld [vmem:[%s6055_s30 + $0x3c] sm:$0xff]  ;;  %v540_v22 = vld [vmem:[%s6055_s30 + $0x50] sm:$0x1] }
  0x1b   : > { %920 = vrot.lane.b32.xlu0 %v880_v21, %s8741_s25  ;;  %v886_v25 = vsel %vm877_vm0, %v884_v13, %v885_v20  ;;  %v703_v32 = vrot.slane %v701_v24, 1  ;;  %v883_v33 = vsel %vm877_vm0, %v881_v26, %v882_v30  ;;  %v710_v36 = vrot.slane %v708_v29, 1  ;;  %v6153_v24 = vld [vmem:[%s6055_s30 + $0x48] sm:$0xff] }
  0x1c   : > { %1134 = vrot.lane.b32.xlu1 %v886_v25, %s8733_s26  ;;  %v692_v34 = vsel %vm8749_vm1, %v687_v27, %v691_v28  ;;  %v713_v37 = vshll.u32 %v668_v12, 16  ;;  %v655_v44 = vunpack.c.l.b16 %v531_v41  ;;  %v720_v45 = vshll.u32 %v6096_v43, 16  ;;  %s8745_s26 = smov 21   ;;  %v543_v41 = vld [vmem:[%s6055_s30 + $0x5c] sm:$0x1] }
  0x1d   : > { %1027 = vrot.lane.b32.xlu2 %v883_v33, %s8743_s27  ;;  %v704_v38 = vsel %vm8749_vm1, %v699_v31, %v703_v32  ;;  %v711_v39 = vor.u32 %v710_v36, %v706_v35  ;;  %v718_v47 = vshrl.u32 %v6096_v43, 16  ;;  %v656_v55 = vunpack.c.l.b16 %v534_v53  ;;  %v5753_v35 = vld [vmem:[%s8718_s1 + $0x8] sm:$0x30] }
  0x1e   : > { %v715_v40 = vrot.slane %v713_v37, 1  ;;  %v669_v46 = vpack.c.b16 %v655_v44, %v655_v44  ;;  %v722_v48 = vrot.slane %v720_v45, 1  ;;  %v887_v56 = vrot.slane %v6096_v43, 1  ;;  %v6176_v45 = vld [vmem:[%s6055_s30 + $0x54] sm:$0xff] }
  0x1f   : > { %v670_v58 = vpack.c.b16 %v656_v55, %v656_v55  ;;  %v732_v59 = vshll.u32 %v6111_v54, 16  ;;  %v730_v61 = vshrl.u32 %v6111_v54, 16  ;;  %v890_v6 = vrot.slane %v6111_v54, 1 }
  0x20   : > { %v716_v42 = vsel %vm8749_vm1, %v711_v39, %v715_v40  ;;  %v725_v49 = vshll.u32 %v669_v46, 16  ;;  %v723_v50 = vor.u32 %v722_v48, %v718_v47  ;;  %v888_v57 = vrot.slane %v669_v46, 1  ;;  %v5752_v47 = vld [vmem:[%s8718_s1] sm:$0xff] }
  0x21   : > { %v734_v62 = vrot.slane %v732_v59, 1  ;;  %v737_v63 = vshll.u32 %v670_v58, 16  ;;  %v891_v7 = vrot.slane %v670_v58, 1  ;;  %v657_v11 = vunpack.c.l.b16 %v537_v9  ;;  %v546_v9 = vld [vmem:[%s6055_s30 + $0x68] sm:$0x1] }
  0x22   : > { %v727_v51 = vrot.slane %v725_v49, 1  ;;  %v889_v60 = vsel %vm877_vm0, %v887_v56, %v888_v57  ;;  %v744_v13 = vshll.u32 %v6137_v10, 16  ;;  %v893_v14 = vrot.slane %v6137_v10, 1 }
  0x23   : > { %849 = vrot.lane.b32.xlu0 %v692_v34, %s8737_s28  ;;  %v735_v2 = vor.u32 %v734_v62, %v730_v61  ;;  %v739_v3 = vrot.slane %v737_v63, 1  ;;  %v892_v8 = vsel %vm877_vm0, %v890_v6, %v891_v7  ;;  %v671_v12 = vpack.c.b16 %v657_v11, %v657_v11  ;;  %v5468_v34 = vld [vmem:[%s8718_s1 + $0x8] sm:$0xf] }
  0x24   : > { %996 = vrot.lane.b32.xlu1 %v704_v38, %s8739_s29  ;;  %v728_v52 = vsel %vm8749_vm1, %v723_v50, %v727_v51  ;;  %v742_v16 = vshrl.u32 %v6137_v10, 16  ;;  %v746_v17 = vrot.slane %v744_v13, 1  ;;  %v756_v26 = vshll.u32 %v6153_v24, 16 }
  0x25   : > { %851 = vrot.lane.b32.xlu2 %v704_v38, %s8737_s28  ;;  %v740_v5 = vsel %vm8749_vm1, %v735_v2, %v739_v3  ;;  %v894_v15 = vrot.slane %v671_v12, 1  ;;  %v749_v18 = vshll.u32 %v671_v12, 16  ;;  %v754_v28 = vshrl.u32 %v6153_v24, 16 }
  0x26   : > { %v747_v20 = vor.u32 %v746_v17, %v742_v16  ;;  %v758_v29 = vrot.slane %v756_v26, 1  ;;  %v5469_v36 = vor.u32 %v5753_v35, %v5468_v34  ;;  %v5932_v37 = vmov 65535  }
  0x27   : > { %v895_v19 = vsel %vm877_vm0, %v893_v14, %v894_v15  ;;  %v751_v21 = vrot.slane %v749_v18, 1  ;;  %v1444_v38 = vsel %vm1442_vm2, 4294967295, %v5932_v37  ;;  %v659_v46 = vunpack.c.l.b16 %v543_v41  ;;  %v6218_v15 = vld [vmem:[%s6055_s30 + $0x60] sm:$0xff] }
  0x28   : > { %v759_v32 = vor.u32 %v758_v29, %v754_v28  ;;  %v1445_v40 = vsel %vm1443_vm3, %v1444_v38, 0  ;;  %v896_v48 = vrot.slane %v6153_v24, 1  ;;  %v768_v51 = vshll.u32 %v6176_v45, 16  ;;  %v549_v38 = vld [vmem:[%s6055_s30 + $0x74] sm:$0x1] }
  0x29   : > { %v752_v23 = vsel %vm8749_vm1, %v747_v20, %v751_v21  ;;  %v673_v50 = vpack.c.b16 %v659_v46, %v659_v46  ;;  %v766_v55 = vshrl.u32 %v6176_v45, 16  ;;  %v899_v63 = vrot.slane %v6176_v45, 1 }
  0x2a   : > { %v770_v56 = vrot.slane %v768_v51, 1  ;;  %v660_v16 = vunpack.c.l.b16 %v546_v9  ;;  %v780_v20 = vshll.u32 %v6218_v15, 16  ;;  %v778_v29 = vshrl.u32 %v6218_v15, 16 }
  0x2b   : > { %1103 = vrot.lane.b32.xlu0 %v716_v42, %s8745_s26  ;;  %v773_v57 = vshll.u32 %v673_v50, 16  ;;  %v900_v2 = vrot.slane %v673_v50, 1 }
  0x2c   : > { %955 = vrot.lane.b32.xlu1 %v6065_v4, %s8747_s16  ;;  %v771_v58 = vor.u32 %v770_v56, %v766_v55 }
  0x2d   : > { %998 = vrot.lane.b32.xlu2 %v716_v42, %s8739_s29  ;;  %v775_v59 = vrot.slane %v773_v57, 1 }
  0x2f   : > { %v776_v62 = vsel %vm8749_vm1, %v771_v58, %v775_v59 }
  0x33   : > { %922 = vrot.lane.b32.xlu0 %v883_v33, %s8741_s25 }
  0x34   : > { %1062 = vrot.lane.b32.xlu1 %v6096_v43, %s8735_s17  ;;  %s8755_s17 = smov 24  }
  0x35   : > { %1105 = vrot.lane.b32.xlu2 %v728_v52, %s8745_s26 }
  0x3b   : > { %1029 = vrot.lane.b32.xlu0 %v886_v25, %s8743_s27 }
  0x3c   : > { %853 = vrot.lane.b32.xlu1 %v716_v42, %s8737_s28  ;;  %s8756_s28 = smov 18   ;;  %v1447_v42 = vand.u32 %v5469_v36, %v1445_v40 }
  0x3d   : > { %924 = vrot.lane.b32.xlu2 %v886_v25, %s8741_s25  ;;  %v658_v25 = vunpack.c.l.b16 %v540_v22 }
  0x3e   : > { %1455 = vmatpush.bf16.msra.mxu0 %v1447_v42  ;;  %5808 = vmatpush.bf16.msra.mxu1 %v1447_v42  ;;  %v6250_v42 = vld [vmem:[%s6055_s30 + $0x6c] sm:$0xff] }
  0x3f   : > { %v672_v27 = vpack.c.b16 %v658_v25, %v658_v25  ;;  %v902_v25 = vrot.slane %v6218_v15, 1  ;;  %v790_v51 = vshrl.u32 %v6250_v42, 16 }
  0x41   : > { %v761_v30 = vshll.u32 %v672_v27, 16  ;;  %v897_v49 = vrot.slane %v672_v27, 1 }
  0x42   : > { %1456 = vmatpush.bf16.msra.mxu0 %v5752_v47  ;;  %5809 = vmatpush.bf16.msra.mxu1 %v5752_v47  ;;  %v792_v47 = vshll.u32 %v6250_v42, 16 }
  0x43   : > { %1136 = vrot.lane.b32.xlu0 %v889_v60, %s8755_s17  ;;  %v763_v33 = vrot.slane %v761_v30, 1  ;;  %v782_v30 = vrot.slane %v780_v20, 1 }
  0x44   : > { %1000 = vrot.lane.b32.xlu1 %v728_v52, %s8739_s29  ;;  %s8757_s29 = smov 3  }
  0x45   : > { %1031 = vrot.lane.b32.xlu2 %v889_v60, %s8743_s27  ;;  %v764_v39 = vsel %vm8749_vm1, %v759_v32, %v763_v33  ;;  %v783_v34 = vor.u32 %v782_v30, %v778_v29 }
  0x4b   : > { %957 = vrot.lane.b32.xlu0 %v6096_v43, %s8747_s16 }
  0x4c   : > { %1107 = vrot.lane.b32.xlu1 %v740_v5, %s8745_s26 }
  0x4d   : > { %1138 = vrot.lane.b32.xlu2 %v892_v8, %s8755_s17 }
  0x53   : > { %1064 = vrot.lane.b32.xlu0 %v6111_v54, %s8756_s28 }
  0x54   : > { %926 = vrot.lane.b32.xlu1 %v889_v60, %s8741_s25  ;;  %s8758_s25 = smov 12  }
  0x55   : > { %959 = vrot.lane.b32.xlu2 %v6111_v54, %s8747_s16 }
  0x5b   : > { %855 = vrot.lane.b32.xlu0 %v728_v52, %s8757_s29  ;;  %v898_v52 = vsel %vm877_vm0, %v896_v48, %v897_v49 }
  0x5c   : > { %1033 = vrot.lane.b32.xlu1 %v892_v8, %s8743_s27  ;;  %s8759_s27 = smov 6  }
  0x5d   : > { %1066 = vrot.lane.b32.xlu2 %v6137_v10, %s8756_s28 }
  0x63   : > { %1002 = vrot.lane.b32.xlu0 %v740_v5, %s8758_s25 }
  0x64   : > { %1140 = vrot.lane.b32.xlu1 %v895_v19, %s8755_s17 }
  0x65   : > { %857 = vrot.lane.b32.xlu2 %v740_v5, %s8757_s29  ;;  %v6201_v5 = vsel %vm877_vm0, %v899_v63, %v900_v2 }
  0x6b   : > { %1109 = vrot.lane.b32.xlu0 %v752_v23, %s8745_s26  ;;  %s8762_s26 = smov 9  }
  0x6c   : > { %961 = vrot.lane.b32.xlu1 %v6137_v10, %s8747_s16  ;;  %s8760_s16 = smov 21  }
  0x6d   : > { %1004 = vrot.lane.b32.xlu2 %v752_v23, %s8758_s25 }
  0x6f   : > { %v6161_v31 = vpop.permute.xlu2 %1060 }
  0x73   : > { %928 = vrot.lane.b32.xlu0 %v892_v8, %s8759_s27 }
  0x74   : > { %1068 = vrot.lane.b32.xlu1 %v6153_v24, %s8756_s28 }
  0x75   : > { %1111 = vrot.lane.b32.xlu2 %v764_v39, %s8760_s16 }
  0x77   : > { %v1028_v44 = vpop.permute.xlu2 %1027 }
  0x7b   : > { %1035 = vrot.lane.b32.xlu0 %v895_v19, %s8761_s0 }
  0x7c   : > { %859 = vrot.lane.b32.xlu1 %v752_v23, %s8757_s29 }
  0x7d   : > { %930 = vrot.lane.b32.xlu2 %v895_v19, %s8759_s27 }
  0x7f   : > { %v6187_v53 = vpop.permute.xlu2 %851 }
  0x80   : > { %v1166_v36 = vsel %vm1162_vm4, %v6058_v0, %v6187_v53 }
  0x83   : > { %1142 = vrot.lane.b32.xlu0 %v898_v52, %s8755_s17 }
  0x84   : > { %1006 = vrot.lane.b32.xlu1 %v764_v39, %s8758_s25 }
  0x85   : > { %1037 = vrot.lane.b32.xlu2 %v898_v52, %s8761_s0 }
  0x86   : > { %v954_v60 = vpop.permute.xlu1 %953 }
  0x87   : > { %v6193_v61 = vpop.permute.xlu2 %998 }
  0x8b   : > { %963 = vrot.lane.b32.xlu0 %v6153_v24, %s8762_s26 }
  0x8c   : > { %1113 = vrot.lane.b32.xlu1 %v776_v62, %s8760_s16 }
  0x8d   : > { %v921_v3 = vpop.permute.xlu0 %920  ;;  %1144 = vrot.lane.b32.xlu2 %v6201_v5, %s8755_s17 }
  0x8e   : > { %v1135_v6 = vpop.permute.xlu1 %1134 }
  0x8f   : > { %v6205_v7 = vpop.permute.xlu2 %1105 }
  0x93   : > { %1070 = vrot.lane.b32.xlu0 %v6176_v45, %s8756_s28 }
  0x94   : > { %932 = vrot.lane.b32.xlu1 %v898_v52, %s8759_s27  ;;  %v794_v52 = vrot.slane %v792_v47, 1  ;;  %v555_v47 = vld [vmem:[%s6055_s30 + $0x8c] sm:$0x1] }
  0x95   : > { %v850_v8 = vpop.permute.xlu0 %849  ;;  %965 = vrot.lane.b32.xlu2 %v6176_v45, %s8762_s26 }
  0x96   : > { %v1164_v11 = vsel %vm1162_vm4, %v6061_v1, %v850_v8  ;;  %v997_v13 = vpop.permute.xlu1 %996  ;;  %v674_v1 = vpack.c.b16 %v660_v16, %v660_v16  ;;  %v795_v59 = vor.u32 %v794_v52, %v790_v51  ;;  %v6282_v8 = vld [vmem:[%s6055_s30 + $0x78] sm:$0xff] }
  0x97   : > { %v1193_v12 = vsel %vm1191_vm5, %v1164_v11, %v921_v3  ;;  %v6221_v18 = vpop.permute.xlu2 %924 }
  0x98   : > { %v1222_v14 = vsel %vm1220_vm6, %v1193_v12, %v954_v60  ;;  %v903_v26 = vrot.slane %v674_v1, 1  ;;  %v905_v12 = vrot.slane %v6250_v42, 1 }
  0x99   : > { %v1251_v17 = vsel %vm1249_vm7, %v1222_v14, %v997_v13 }
  0x9a   : > { %v1280_v19 = vsel %vm1278_vm8, %v1251_v17, %v1028_v44  ;;  %v904_v33 = vsel %vm877_vm0, %v902_v25, %v903_v26  ;;  %v661_v44 = vunpack.c.l.b16 %v549_v38  ;;  %v804_v17 = vshll.u32 %v6282_v8, 16 }
  0x9b   : > { %861 = vrot.lane.b32.xlu0 %v764_v39, %s8757_s29  ;;  %v1309_v21 = vsel %vm1307_vm9, %v1280_v19, %v6161_v31  ;;  %v785_v31 = vshll.u32 %v674_v1, 16 }
  0x9c   : > { %1039 = vrot.lane.b32.xlu1 %v6201_v5, %s8761_s0  ;;  %v675_v0 = vpack.c.b16 %v661_v44, %v661_v44 }
  0x9d   : > { %v1104_v22 = vpop.permute.xlu0 %1103  ;;  %1072 = vrot.lane.b32.xlu2 %v6218_v15, %s8756_s28  ;;  %v787_v35 = vrot.slane %v785_v31, 1 }
  0x9e   : > { %v1338_v23 = vsel %vm1336_vm10, %v1309_v21, %v1104_v22  ;;  %v956_v28 = vpop.permute.xlu1 %955  ;;  %v797_v53 = vshll.u32 %v675_v0, 16  ;;  %v906_v13 = vrot.slane %v675_v0, 1  ;;  %v802_v21 = vshrl.u32 %v6282_v8, 16 }
  0x9f   : > { %v1367_v27 = vsel %vm1365_vm11, %v1338_v23, %v1135_v6  ;;  %v6237_v32 = vpop.permute.xlu2 %1031  ;;  %v788_v41 = vsel %vm8749_vm1, %v783_v34, %v787_v35  ;;  %v552_v6 = vld [vmem:[%s6055_s30 + $0x80] sm:$0x1]  ;;  %v806_v22 = vrot.slane %v804_v17, 1  ;;  %v908_v35 = vrot.slane %v6282_v8, 1 }
  0xa0   : > { %5470 = vmatmul.msk.bf16.vlgmr.msra.gmra.mxu0 %vm8750_vm12, %v1367_v27  ;;  %v799_v60 = vrot.slane %v797_v53, 1  ;;  %v662_v9 = vunpack.c.l.b16 %v552_v6  ;;  %v907_v1 = vsel %vm877_vm0, %v905_v12, %v906_v13  ;;  %v558_v13 = vld [vmem:[%s6055_s30 + $0x98] sm:$0x1] }
  0xa2   : > { %v6273_v2 = vsel %vm8749_vm1, %v795_v59, %v799_v60  ;;  %v676_v16 = vpack.c.b16 %v662_v9, %v662_v9 }
  0xa3   : > { %1008 = vrot.lane.b32.xlu0 %v776_v62, %s8758_s25 }
  0xa4   : > { %1146 = vrot.lane.b32.xlu1 %v904_v33, %s8755_s17  ;;  %v809_v23 = vshll.u32 %v676_v16, 16 }
  0xa5   : > { %v923_v37 = vpop.permute.xlu0 %922  ;;  %863 = vrot.lane.b32.xlu2 %v776_v62, %s8757_s29 }
  0xa6   : > { %v1063_v39 = vpop.permute.xlu1 %1062  ;;  %v1195_v40 = vsel %vm1191_vm5, %v1166_v36, %v923_v37  ;;  %v811_v29 = vrot.slane %v809_v23, 1  ;;  %v909_v36 = vrot.slane %v676_v16, 1 }
  0xa7   : > { %v1139_v46 = vpop.permute.xlu2 %1138  ;;  %v1224_v48 = vsel %vm1220_vm6, %v1195_v40, %v956_v28  ;;  %v807_v28 = vor.u32 %v806_v22, %v802_v21 }
  0xa8   : > { %v1253_v50 = vsel %vm1249_vm7, %v1224_v48, %v6193_v61  ;;  %v6315_v38 = vsel %vm877_vm0, %v908_v35, %v909_v36 }
  0xab   : > { %1115 = vrot.lane.b32.xlu0 %v788_v41, %s8760_s16 }
  0xac   : > { %967 = vrot.lane.b32.xlu1 %v6218_v15, %s8762_s26 }
  0xad   : > { %v1030_v49 = vpop.permute.xlu0 %1029  ;;  %1010 = vrot.lane.b32.xlu2 %v788_v41, %s8758_s25 }
  0xae   : > { %v1282_v55 = vsel %vm1278_vm8, %v1253_v50, %v1030_v49  ;;  %v854_v56 = vpop.permute.xlu1 %853  ;;  %v663_v50 = vunpack.c.l.b16 %v555_v47 }
  0xaf   : > { %v6262_v57 = vpop.permute.xlu2 %959  ;;  %v1311_v58 = vsel %vm1307_vm9, %v1282_v55, %v1063_v39 }
  0xb0   : > { %v1340_v61 = vsel %vm1336_vm10, %v1311_v58, %v6205_v7  ;;  %v677_v53 = vpack.c.b16 %v663_v50, %v663_v50 }
  0xb2   : > { %v912_v60 = vrot.slane %v677_v53, 1 }
  0xb3   : > { %934 = vrot.lane.b32.xlu0 %v6201_v5, %s8759_s27  ;;  %v1168_v5 = vsel %vm1162_vm4, %v6065_v4, %v854_v56 }
  0xb4   : > { %1074 = vrot.lane.b32.xlu1 %v6250_v42, %s8756_s28  ;;  %v1197_v11 = vsel %vm1191_vm5, %v1168_v5, %v6221_v18 }
  0xb5   : > { %v1137_v62 = vpop.permute.xlu0 %1136  ;;  %1117 = vrot.lane.b32.xlu2 %v6273_v2, %s8760_s16 }
  0xb6   : > { %v1369_v63 = vsel %vm1365_vm11, %v1340_v61, %v1137_v62  ;;  %v1001_v3 = vpop.permute.xlu1 %1000 }
  0xb7   : > { %5471 = vmatmul.msk.bf16.gmra.mxu0 %vm8750_vm12, %v1369_v63  ;;  %v1067_v7 = vpop.permute.xlu2 %1066 }
  0xbb   : > { %1041 = vrot.lane.b32.xlu0 %v904_v33, %s8761_s0 }
  0xbc   : > { %865 = vrot.lane.b32.xlu1 %v788_v41, %s8757_s29 }
  0xbd   : > { %v958_v14 = vpop.permute.xlu0 %957  ;;  %936 = vrot.lane.b32.xlu2 %v904_v33, %s8759_s27 }
  0xbe   : > { %v1226_v4 = vsel %vm1220_vm6, %v1197_v11, %v958_v14  ;;  %v1108_v19 = vpop.permute.xlu1 %1107 }
  0xbf   : > { %v6293_v20 = vpop.permute.xlu2 %857  ;;  %v1255_v18 = vsel %vm1249_vm7, %v1226_v4, %v1001_v3  ;;  %v821_v3 = vshll.u32 %v677_v53, 16  ;;  %v6365_v4 = vld [vmem:[%s6055_s30 + $0x90] sm:$0xff] }
  0xc0   : > { %v1284_v25 = vsel %vm1278_vm8, %v1255_v18, %v6237_v32  ;;  %v812_v32 = vsel %vm8749_vm1, %v807_v28, %v811_v29  ;;  %v1172_v11 = vsel %vm1162_vm4, %v6111_v54, %v6293_v20  ;;  %v828_v18 = vshll.u32 %v6365_v4, 16 }
  0xc1   : > { %v823_v9 = vrot.slane %v821_v3, 1  ;;  %v826_v23 = vshrl.u32 %v6365_v4, 16  ;;  %v914_v47 = vrot.slane %v6365_v4, 1 }
  0xc3   : > { %1148 = vrot.lane.b32.xlu0 %v907_v1, %s8755_s17 }
  0xc4   : > { %1012 = vrot.lane.b32.xlu1 %v6273_v2, %s8758_s25 }
  0xc5   : > { %v1065_v26 = vpop.permute.xlu0 %1064  ;;  %1043 = vrot.lane.b32.xlu2 %v907_v1, %s8761_s0 }
  0xc6   : > { %v1313_v27 = vsel %vm1307_vm9, %v1284_v25, %v1065_v26  ;;  %v927_v31 = vpop.permute.xlu1 %926  ;;  %v830_v25 = vrot.slane %v828_v18, 1  ;;  %v564_v18 = vld [vmem:[%s6055_s30 + $0xb0] sm:$0x1] }
  0xc7   : > { %v1342_v30 = vsel %vm1336_vm10, %v1313_v27, %v1108_v19  ;;  %v6307_v34 = vpop.permute.xlu2 %1004  ;;  %v664_v19 = vunpack.c.l.b16 %v558_v13 }
  0xc8   : > { %v1371_v33 = vsel %vm1365_vm11, %v1342_v30, %v1139_v46 }
  0xc9   : > { %5472 = vmatmul.msk.bf16.gmra.mxu0 %vm8750_vm12, %v1371_v33  ;;  %v678_v54 = vpack.c.b16 %v664_v19, %v664_v19 }
  0xcb   : > { %969 = vrot.lane.b32.xlu0 %v6250_v42, %s8762_s26  ;;  %v833_v26 = vshll.u32 %v678_v54, 16 }
  0xcc   : > { %1119 = vrot.lane.b32.xlu1 %v812_v32, %s8760_s16 }
  0xcd   : > { %v856_v37 = vpop.permute.xlu0 %855  ;;  %1150 = vrot.lane.b32.xlu2 %v6315_v38, %s8755_s17  ;;  %v835_v33 = vrot.slane %v833_v26, 1 }
  0xce   : > { %v1034_v39 = vpop.permute.xlu1 %1033  ;;  %v1170_v40 = vsel %vm1162_vm4, %v6096_v43, %v856_v37  ;;  %v6334_v43 = vld [vmem:[%s6055_s30 + $0x84] sm:$0xff] }
  0xcf   : > { %v6321_v41 = vpop.permute.xlu2 %1111  ;;  %v1199_v44 = vsel %vm1191_vm5, %v1170_v40, %v927_v31  ;;  %v816_v55 = vshll.u32 %v6334_v43, 16  ;;  %v911_v59 = vrot.slane %v6334_v43, 1  ;;  %v814_v63 = vshrl.u32 %v6334_v43, 16 }
  0xd0   : > { %v1228_v48 = vsel %vm1220_vm6, %v1199_v44, %v6262_v57  ;;  %v831_v31 = vor.u32 %v830_v25, %v826_v23 }
  0xd1   : > { %v913_v5 = vsel %vm877_vm0, %v911_v59, %v912_v60 }
  0xd2   : > { %v6388_v36 = vsel %vm8749_vm1, %v831_v31, %v835_v33 }
  0xd3   : > { %1076 = vrot.lane.b32.xlu0 %v6282_v8, %s8756_s28 }
  0xd4   : > { %938 = vrot.lane.b32.xlu1 %v907_v1, %s8759_s27 }
  0xd5   : > { %v1003_v46 = vpop.permute.xlu0 %1002  ;;  %971 = vrot.lane.b32.xlu2 %v6282_v8, %s8762_s26 }
  0xd6   : > { %v1257_v0 = vsel %vm1249_vm7, %v1228_v48, %v1003_v46  ;;  %v1141_v49 = vpop.permute.xlu1 %1140  ;;  %v915_v48 = vrot.slane %v678_v54, 1 }
  0xd7   : > { %v6336_v51 = vpop.permute.xlu2 %930  ;;  %v1286_v52 = vsel %vm1278_vm8, %v1257_v0, %v1034_v39  ;;  %v561_v39 = vld [vmem:[%s6055_s30 + $0xa4] sm:$0x1] }
  0xd8   : > { %v1315_v56 = vsel %vm1307_vm9, %v1286_v52, %v1067_v7  ;;  %v665_v44 = vunpack.c.l.b16 %v561_v39  ;;  %v916_v53 = vsel %vm877_vm0, %v914_v47, %v915_v48 }
  0xdb   : > { %867 = vrot.lane.b32.xlu0 %v6273_v2, %s8757_s29  ;;  %v818_v2 = vrot.slane %v816_v55, 1 }
  0xdc   : > { %1045 = vrot.lane.b32.xlu1 %v6315_v38, %s8761_s0 }
  0xdd   : > { %v1110_v57 = vpop.permute.xlu0 %1109  ;;  %1078 = vrot.lane.b32.xlu2 %v6334_v43, %s8756_s28  ;;  %v819_v7 = vor.u32 %v818_v2, %v814_v63 }
  0xde   : > { %v1344_v58 = vsel %vm1336_vm10, %v1315_v56, %v1110_v57  ;;  %v962_v62 = vpop.permute.xlu1 %961 }
  0xdf   : > { %v1373_v61 = vsel %vm1365_vm11, %v1344_v58, %v1141_v49  ;;  %v6352_v6 = vpop.permute.xlu2 %1037  ;;  %v824_v17 = vsel %vm8749_vm1, %v819_v7, %v823_v9  ;;  %v679_v49 = vpack.c.b16 %v665_v44, %v665_v44 }
  0xe0   : > { %5473 = vmatmul.msk.bf16.gmra.mxu0 %vm8750_vm12, %v1373_v61 }
  0xe1   : > { %v845_v58 = vshll.u32 %v679_v49, 16 }
  0xe3   : > { %1014 = vrot.lane.b32.xlu0 %v812_v32, %s8758_s25  ;;  %v847_v63 = vrot.slane %v845_v58, 1 }
  0xe4   : > { %1152 = vrot.lane.b32.xlu1 %v913_v5, %s8755_s17 }
  0xe5   : > { %v929_v12 = vpop.permute.xlu0 %928  ;;  %869 = vrot.lane.b32.xlu2 %v812_v32, %s8757_s29 }
  0xe6   : > { %v1069_v14 = vpop.permute.xlu1 %1068  ;;  %v1201_v16 = vsel %vm1191_vm5, %v1172_v11, %v929_v12  ;;  %v918_v11 = vrot.slane %v679_v49, 1 }
  0xe7   : > { %v1145_v1 = vpop.permute.xlu2 %1144  ;;  %v1230_v21 = vsel %vm1220_vm6, %v1201_v16, %v962_v62 }
  0xe8   : > { %v1259_v22 = vsel %vm1249_vm7, %v1230_v21, %v6307_v34 }
  0xeb   : > { %1121 = vrot.lane.b32.xlu0 %v824_v17, %s8760_s16 }
  0xec   : > { %973 = vrot.lane.b32.xlu1 %v6334_v43, %s8762_s26 }
  0xed   : > { %v1036_v20 = vpop.permute.xlu0 %1035  ;;  %1016 = vrot.lane.b32.xlu2 %v824_v17, %s8758_s25 }
  0xee   : > { %v1288_v27 = vsel %vm1278_vm8, %v1259_v22, %v1036_v20  ;;  %v860_v28 = vpop.permute.xlu1 %859  ;;  %v982_v22 = vunpack.c.l.b16 %v564_v18 }
  0xef   : > { %v6377_v29 = vpop.permute.xlu2 %965  ;;  %v1317_v30 = vsel %vm1307_vm9, %v1288_v27, %v1069_v14 }
  0xf0   : > { %v1346_v34 = vsel %vm1336_vm10, %v1317_v30, %v6321_v41  ;;  %v6397_v41 = vld [vmem:[%s6055_s30 + $0x9c] sm:$0xff]  ;;  %v983_v25 = vpack.c.b16 %v982_v22, %v982_v22 }
  0xf1   : > { %v840_v50 = vshll.u32 %v6397_v41, 16  ;;  %v838_v56 = vshrl.u32 %v6397_v41, 16  ;;  %v917_v9 = vrot.slane %v6397_v41, 1 }
  0xf2   : > { %v1025_v33 = vrot.slane %v983_v25, 1 }
  0xf3   : > { %940 = vrot.lane.b32.xlu0 %v6315_v38, %s8759_s27  ;;  %v1174_v38 = vsel %vm1162_vm4, %v6137_v10, %v860_v28  ;;  %v842_v57 = vrot.slane %v840_v50, 1  ;;  %v6430_v13 = vsel %vm877_vm0, %v917_v9, %v918_v11 }
  0xf4   : > { %1080 = vrot.lane.b32.xlu1 %v6365_v4, %s8756_s28  ;;  %v1203_v46 = vsel %vm1191_vm5, %v1174_v38, %v6336_v51 }
  0xf5   : > { %v1143_v32 = vpop.permute.xlu0 %1142  ;;  %1123 = vrot.lane.b32.xlu2 %v6388_v36, %s8760_s16  ;;  %v843_v62 = vor.u32 %v842_v57, %v838_v56 }
  0xf6   : > { %v1375_v35 = vsel %vm1365_vm11, %v1346_v34, %v1143_v32  ;;  %v1007_v37 = vpop.permute.xlu1 %1006 }
  0xf7   : > { %5474 = vmatmul.msk.bf16.gmra.mxu0 %vm8750_vm12, %v1375_v35  ;;  %v1073_v40 = vpop.permute.xlu2 %1072 }
  0xfb   : > { %1047 = vrot.lane.b32.xlu0 %v913_v5, %s8761_s0 }
  0xfc   : > { %871 = vrot.lane.b32.xlu1 %v824_v17, %s8757_s29 }
  0xfd   : > { %v964_v0 = vpop.permute.xlu0 %963  ;;  %942 = vrot.lane.b32.xlu2 %v913_v5, %s8759_s27 }
  0xfe   : > { %v1232_v10 = vsel %vm1220_vm6, %v1203_v46, %v964_v0  ;;  %v1114_v52 = vpop.permute.xlu1 %1113 }
  0xff   : > { %v6408_v55 = vpop.permute.xlu2 %863  ;;  %v1261_v51 = vsel %vm1249_vm7, %v1232_v10, %v1007_v37  ;;  %v992_v37 = vshll.u32 %v983_v25, 16  ;;  %v567_v10 = vld [vmem:[%s6055_s30 + $0xbc] sm:$0x1] }
 0x100   : > { %v1290_v59 = vsel %vm1278_vm8, %v1261_v51, %v6352_v6  ;;  %v848_v6 = vsel %vm8749_vm1, %v843_v62, %v847_v63  ;;  %v1178_v46 = vsel %vm1162_vm4, %v6176_v45, %v6408_v55  ;;  %v5751_v55 = vld [vmem:[%s6055_s30 + $0xb4] sm:$0xff] }
 0x101   : > { %v994_v44 = vrot.slane %v992_v37, 1  ;;  %v1094_v57 = vshll.u32 %v5751_v55, 16  ;;  %v1092_v62 = vshrl.u32 %v5751_v55, 16 }
 0x103   : > { %1154 = vrot.lane.b32.xlu0 %v916_v53, %s8755_s17  ;;  %v1096_v63 = vrot.slane %v1094_v57, 1 }
 0x104   : > { %1018 = vrot.lane.b32.xlu1 %v6388_v36, %s8758_s25 }
 0x105   : > { %v1071_v60 = vpop.permute.xlu0 %1070  ;;  %1049 = vrot.lane.b32.xlu2 %v916_v53, %s8761_s0 }
 0x106   : > { %v1319_v61 = vsel %vm1307_vm9, %v1290_v59, %v1071_v60  ;;  %v933_v3 = vpop.permute.xlu1 %932 }
 0x107   : > { %v1348_v2 = vsel %vm1336_vm10, %v1319_v61, %v1114_v52  ;;  %v6422_v7 = vpop.permute.xlu2 %1010 }
 0x108   : > { %v1377_v5 = vsel %vm1365_vm11, %v1348_v2, %v1145_v1 }
 0x109   : > { %5475 = vmatmul.msk.bf16.gmra.mxu0 %vm8750_vm12, %v1377_v5  ;;  %v6494_v5 = vld [vmem:[%s8719_s2] ss:$0 sm:$0xff] }
 0x10b   : > { %975 = vrot.lane.b32.xlu0 %v6365_v4, %s8762_s26 }
 0x10c   : > { %1125 = vrot.lane.b32.xlu1 %v848_v6, %s8760_s16 }
 0x10d   : > { %v862_v12 = vpop.permute.xlu0 %861  ;;  %1156 = vrot.lane.b32.xlu2 %v6430_v13, %s8755_s17 }
 0x10e   : > { %v1040_v14 = vpop.permute.xlu1 %1039  ;;  %v1176_v16 = vsel %vm1162_vm4, %v6153_v24, %v862_v12  ;;  %v5750_v24 = vld [vmem:[%s6055_s30 + $0xa8] sm:$0xff] }
 0x10f   : > { %v6436_v17 = vpop.permute.xlu2 %1117  ;;  %v1205_v19 = vsel %vm1191_vm5, %v1176_v16, %v933_v3  ;;  %v987_v26 = vshll.u32 %v5750_v24, 16  ;;  %v1024_v31 = vrot.slane %v5750_v24, 1  ;;  %v985_v35 = vshrl.u32 %v5750_v24, 16 }
 0x110   : > { %v1234_v21 = vsel %vm1220_vm6, %v1205_v19, %v6377_v29 }
 0x111   : > { %v1026_v38 = vsel %vm877_vm0, %v1024_v31, %v1025_v33 }
 0x113   : > { %1082 = vrot.lane.b32.xlu0 %v6397_v41, %s8756_s28 }
 0x114   : > { %944 = vrot.lane.b32.xlu1 %v916_v53, %s8759_s27  ;;  %v1089_v53 = vunpack.c.l.b16 %v567_v10 }
 0x115   : > { %v1009_v1 = vpop.permute.xlu0 %1008  ;;  %977 = vrot.lane.b32.xlu2 %v6397_v41, %s8762_s26 }
 0x116   : > { %v1263_v54 = vsel %vm1249_vm7, %v1234_v21, %v1009_v1  ;;  %v1147_v20 = vpop.permute.xlu1 %1146  ;;  %v1090_v60 = vpack.c.b16 %v1089_v53, %v1089_v53 }
 0x117   : > { %v1292_v23 = vsel %vm1278_vm8, %v1263_v54, %v1040_v14  ;;  %v6452_v27 = vpop.permute.xlu2 %936 }
 0x118   : > { %v1321_v28 = vsel %vm1307_vm9, %v1292_v23, %v1073_v40  ;;  %v1099_v2 = vshll.u32 %v1090_v60, 16  ;;  %v6524_v23 = vld [vmem:[%s8721_s4] ss:$0 sm:$0xff] }
 0x11b   : > { %873 = vrot.lane.b32.xlu0 %v6388_v36, %s8757_s29  ;;  %v989_v36 = vrot.slane %v987_v26, 1 }
 0x11c   : > { %1051 = vrot.lane.b32.xlu1 %v6430_v13, %s8761_s0 }
 0x11d   : > { %v1116_v29 = vpop.permute.xlu0 %1115  ;;  %1084 = vrot.lane.b32.xlu2 %v5750_v24, %s8756_s28  ;;  %v6461_v39 = vpop.f32.mrf.mxu0  ;;  %v990_v40 = vor.u32 %v989_v36, %v985_v35 }
 0x11e   : > { %v1350_v30 = vsel %vm1336_vm10, %v1321_v28, %v1116_v29  ;;  %v968_v32 = vpop.permute.xlu1 %967  ;;  %v1131_v28 = vrot.slane %v5751_v55, 1  ;;  %v1132_v29 = vrot.slane %v1090_v60, 1 }
 0x11f   : > { %v1379_v34 = vsel %vm1365_vm11, %v1350_v30, %v1147_v20  ;;  %v6469_v48 = vpop.permute.xlu2 %1043  ;;  %v995_v50 = vsel %vm8749_vm1, %v990_v40, %v994_v44 }
 0x120   : > { %5476 = vmatmul.msk.bf16.gmra.mxu0 %vm8750_vm12, %v1379_v34  ;;  %v1133_v36 = vsel %vm877_vm0, %v1131_v28, %v1132_v29 }
 0x123   : > { %1020 = vrot.lane.b32.xlu0 %v848_v6, %s8758_s25 }
 0x124   : > { %1158 = vrot.lane.b32.xlu1 %v1026_v38, %s8755_s17 }
 0x125   : > { %v935_v47 = vpop.permute.xlu0 %934  ;;  %875 = vrot.lane.b32.xlu2 %v848_v6, %s8757_s29  ;;  %v6477_v45 = vpop.f32.mrf.mxu0  ;;  %s6486_s29 = sshll.u32 %s5906_s18, 3  ;;  %v1101_v6 = vrot.slane %v1099_v2, 1  ;;  %s8884_s18 = smov (!%p509_p6, %s5906_s18), 1 }
 0x126   : > { %v1075_v0 = vpop.permute.xlu1 %1074  ;;  %v1207_v49 = vsel %vm1191_vm5, %v1178_v46, %v935_v47  ;;  %s5484_s24 = sadd.s32 4294967293, %s6486_s29  ;;  %s5569_s23 = sadd.s32 4294967294, %s6486_s29 }
 0x127   : > { %v1236_v52 = vsel %vm1220_vm6, %v1207_v49, %v968_v32  ;;  %v6488_v61 = vpop.permute.xlu2 %1150  ;;  %v6504_v19 = vstv %s5484_s24 }
 0x128   : > { %v1265_v56 = vsel %vm1249_vm7, %v1236_v52, %v6422_v7  ;;  %v1097_v7 = vor.u32 %v1096_v63, %v1092_v62  ;;  %v1679_v60 = vadd.s32 2, %v6504_v19 }
 0x12a   : > { %v1102_v16 = vsel %vm8749_vm1, %v1097_v7, %v1101_v6 }
 0x12b   : > { %1127 = vrot.lane.b32.xlu0 %v995_v50, %s8760_s16 }
 0x12c   : > { %979 = vrot.lane.b32.xlu1 %v5750_v24, %s8762_s26  ;;  %s5393_s26 = sshll.u32 %s8882_s19, 1 }
 0x12d   : > { %v1042_v51 = vpop.permute.xlu0 %1041  ;;  %1022 = vrot.lane.b32.xlu2 %v995_v50, %s8758_s25 }
 0x12e   : > { %v1294_v58 = vsel %vm1278_vm8, %v1265_v56, %v1042_v51  ;;  %v866_v59 = vpop.permute.xlu1 %865 }
 0x12f   : > { %v1323_v3 = vsel %vm1307_vm9, %v1294_v58, %v1075_v0  ;;  %v1180_v20 = vsel %vm1162_vm4, %v6218_v15, %v866_v59  ;;  %v6518_v22 = vpop.permute.xlu2 %971 }
 0x130   : > { %v1352_v11 = vsel %vm1336_vm10, %v1323_v3, %v6436_v17  ;;  %v6513_v17 = vld [vmem:[%s8720_s3] ss:$0 sm:$0xff]  ;;  %v1209_v25 = vsel %vm1191_vm5, %v1180_v20, %v6452_v27 }
 0x133   : > { %946 = vrot.lane.b32.xlu0 %v6430_v13, %s8759_s27  ;;  %v1678_v13 = vadd.s32 1, %v6504_v19  ;;  %s5652_s27 = sadd.s32 4294967295, %s6486_s29  ;;  %s512_s29 = sadd.s32 %s5393_s26, %s8884_s18 }
 0x134   : > { %v1463_v9 = vpop.f32.mrf.mxu0  ;;  %1086 = vrot.lane.b32.xlu1 %v5751_v55, %s8756_s28  ;;  %s5394_s30 = sshll.u32 %s512_s29, 2 }
 0x135   : > { %v1464_v12 = vadd.f32 %v6494_v5, %v1463_v9  ;;  %v1149_v14 = vpop.permute.xlu0 %1148  ;;  %1129 = vrot.lane.b32.xlu2 %v1102_v16, %s8760_s16  ;;  %vm1692_vm14 = vcmp.ge.s32.totalorder %v1678_v13, 0  ;;  %vm1706_vm15 = vcmp.lt.s32.totalorder %v1678_v13, 16  ;;  %s5933_s16 = smov 32   ;;  %s514_s25 = scalar_lea.vmem %s8732_s15, %s5394_s30 }
 0x136   : > { %v1381_v1 = vsel %vm1365_vm11, %v1352_v11, %v1149_v14  ;;  %v1013_v21 = vpop.permute.xlu1 %1012  ;;  %vm6530_vm2 = vmand %vm1692_vm14, %vm1706_vm15  ;;  %vm1985_vm14 = vcmask 1040384   ;;  %vm1986_vm15 = vsmask.f32 256 }
 0x137   : > { %vm1530_vm13 = vcmp.ge.f32.partialorder %v1464_v12, 0.0  ;;  %v1558_v18 = vmul.f32 0.01, %v1464_v12  ;;  %5477 = vmatmul.msk.bf16.gmra.mxu0 %vm8750_vm12, %v1381_v1  ;;  %v6542_v46 = vpop.permute.xlu2 %1078 }
 0x139   : > { %v1586_v54 = vsel %vm1530_vm13, %v1464_v12, %v1558_v18 }
 0x13a   : > { %v1618_v24 = vmul.f32 %v6513_v17, %v1586_v54 }
 0x13b   : > { %1053 = vrot.lane.b32.xlu0 %v1026_v38, %s8761_s0  ;;  %s5935_s0 = smov 96  }
 0x13c   : > { %v1465_v26 = vpop.f32.mrf.mxu0  ;;  %v1650_v31 = vadd.f32 %v6524_v23, %v1618_v24 }
 0x13d   : > { %v1466_v15 = vadd.f32 %v6494_v5, %v1465_v26  ;;  %v970_v30 = vpop.permute.xlu0 %969 }
 0x13e   : > { %v1238_v32 = vsel %vm1220_vm6, %v1209_v25, %v970_v30  ;;  %v1120_v35 = vpop.permute.xlu1 %1119  ;;  %v1735_v37 = vsel %vm6530_vm2, %v1650_v31, 0.0 }
 0x13f   : > { %vm1531_vm3 = vcmp.ge.f32.partialorder %v1466_v15, 0.0  ;;  %v1559_v34 = vmul.f32 0.01, %v1466_v15  ;;  %v1267_v40 = vsel %vm1249_vm7, %v1238_v32, %v1013_v21  ;;  %v1763_v47 = vpack.c.bf16 %v1735_v37, %v1735_v37 }
 0x140   : > { %v1296_v0 = vsel %vm1278_vm8, %v1267_v40, %v6469_v48 }
 0x141   : > { %v1587_v27 = vsel %vm1531_vm3, %v1466_v15, %v1559_v34  ;;  %v1819_v58 = vunpack.c.l.b16 %v1763_v47  ;;  %vm1707_vm3 = vcmp.lt.s32.totalorder %v1679_v60, 16 }
 0x142   : > { %v1619_v38 = vmul.f32 %v6513_v17, %v1587_v27 }
 0x143   : > { %1160 = vrot.lane.b32.xlu0 %v1133_v36, %s8755_s17  ;;  %s5934_s17 = smov 64  }
 0x144   : > { %v1651_v44 = vadd.f32 %v6524_v23, %v1619_v38 }
 0x145   : > { %v1077_v49 = vpop.permute.xlu0 %1076 }
 0x146   : > { %v1736_v50 = vsel %vm6530_vm2, %v1651_v44, 0.0  ;;  %v1325_v10 = vsel %vm1307_vm9, %v1296_v0, %v1077_v49  ;;  %v1468_v52 = vpop.f32.mrf.mxu0  ;;  %v939_v56 = vpop.permute.xlu1 %938  ;;  %vm1693_vm2 = vcmp.ge.s32.totalorder %v1679_v60, 0 }
 0x147   : > { %v1764_v53 = vpack.c.bf16 %v1736_v50, %v1736_v50  ;;  %v1354_v55 = vsel %vm1336_vm10, %v1325_v10, %v1120_v35  ;;  %v1469_v51 = vadd.f32 %v6494_v5, %v1468_v52  ;;  %vm6564_vm1 = vmand %vm1693_vm2, %vm1707_vm3 }
 0x148   : > { %v1383_v57 = vsel %vm1365_vm11, %v1354_v55, %v6488_v61  ;;  %v870_v61 = vpop.permute.xlu2 %869 }
 0x149   : > { %v1820_v59 = vunpack.c.l.b16 %v1764_v53  ;;  %vm1532_vm13 = vcmp.ge.f32.partialorder %v1469_v51, 0.0  ;;  %v1560_v48 = vmul.f32 0.01, %v1469_v51  ;;  %5478 = vmatmul.msk.bf16.gmra.mxu0 %vm8750_vm12, %v1383_v57  ;;  %v1680_v57 = vadd.s32 3, %v6504_v19 }
 0x14b   : > { %v1588_v62 = vsel %vm1532_vm13, %v1469_v51, %v1560_v48  ;;  %v1846_v63 = vpack.c.b16 %v1820_v59, %v1819_v58  ;;  %vm6560_vm13 = vmand %vm1985_vm14, %vm1986_vm15  ;;  %vm1694_vm14 = vcmp.ge.s32.totalorder %v1680_v57, 0  ;;  %vm1708_vm15 = vcmp.lt.s32.totalorder %v1680_v57, 16 }
 0x14c   : > { %v1620_v2 = vmul.f32 %v6513_v17, %v1588_v62  ;;  %vm6615_vm2 = vmand %vm1694_vm14, %vm1708_vm15  ;;  %vm8773_vm14 = vcmask 220160  }
 0x14d   : > { %v868_v3 = vpop.permute.xlu0 %867  ;;  %v1867_v7 = vshrl.u32 %v1846_v63, 16  ;;  %v1870_v14 = vshll.u32 %v1846_v63, 16 }
 0x14e   : > { %v1470_v6 = vpop.f32.mrf.mxu0  ;;  %v1046_v11 = vpop.permute.xlu1 %1045  ;;  %v1652_v16 = vadd.f32 %v6524_v23, %v1620_v2  ;;  %v1182_v1 = vsel %vm1162_vm4, %v6250_v42, %v868_v3  ;;  %v1184_v2 = vsel %vm1162_vm4, %v6282_v8, %v870_v61 }
 0x14f   : > { %v1471_v9 = vadd.f32 %v6494_v5, %v1470_v6  ;;  %v1869_v12 = vrot.slane %v1867_v7, 7  ;;  %v1211_v24 = vsel %vm1191_vm5, %v1182_v1, %v939_v56 }
 0x150   : > { %v1737_v26 = vsel %vm6564_vm1, %v1652_v16, 0.0  ;;  %v1240_v33 = vsel %vm1220_vm6, %v1211_v24, %v6518_v22  ;;  %v1017_v37 = vpop.permute.xlu2 %1016 }
 0x151   : > { %vm1533_vm12 = vcmp.ge.f32.partialorder %v1471_v9, 0.0  ;;  %v1561_v21 = vmul.f32 0.01, %v1471_v9  ;;  %v1872_v54 = vor.u32 %v1870_v14, %v1869_v12  ;;  %v6570_v20 = vsel %vm6560_vm13, %v1869_v12, 0 }
 0x152   : > { %v2212_v15 = vrot.slane %v6570_v20, 1  ;;  %v1765_v32 = vpack.c.bf16 %v1737_v26, %v1737_v26 }
 0x153   : > { %v1589_v25 = vsel %vm1533_vm12, %v1471_v9, %v1561_v21  ;;  %v6575_v42 = vsel %vm6560_vm13, 0, %v1872_v54  ;;  %vm8769_vm12 = vcmask 220160  }
 0x154   : > { %v1621_v28 = vmul.f32 %v6513_v17, %v1589_v25  ;;  %v2211_v29 = vrot.slane %v6575_v42, 1  ;;  %v1821_v44 = vunpack.c.l.b16 %v1765_v32 }
 0x155   : > { %v1015_v30 = vpop.permute.xlu0 %1014 }
 0x156   : > { %v1653_v31 = vadd.f32 %v6524_v23, %v1621_v28  ;;  %v6586_v34 = vsel %vm877_vm0, %v2211_v29, %v2212_v15  ;;  %v1269_v35 = vsel %vm1249_vm7, %v1240_v33, %v1015_v30  ;;  %v1153_v36 = vpop.permute.xlu1 %1152 }
 0x157   : > { %2309 = vrot.lane.b32.xlu1 %v6586_v34, %s5933_s16  ;;  %v1298_v40 = vsel %vm1278_vm8, %v1269_v35, %v1046_v11 }
 0x158   : > { %v1738_v27 = vsel %vm6564_vm1, %v1653_v31, 0.0  ;;  %v1327_v0 = vsel %vm1307_vm9, %v1298_v40, %v6542_v46  ;;  %v1124_v46 = vpop.permute.xlu2 %1123 }
 0x159   : > { %v1766_v38 = vpack.c.bf16 %v1738_v27, %v1738_v27 }
 0x15b   : > { %v1822_v22 = vunpack.c.l.b16 %v1766_v38 }
 0x15d   : > { %v1847_v47 = vpack.c.b16 %v1822_v22, %v1821_v44  ;;  %v1473_v49 = vpop.f32.mrf.mxu0  ;;  %v1122_v50 = vpop.permute.xlu0 %1121 }
 0x15e   : > { %v1474_v10 = vadd.f32 %v6494_v5, %v1473_v49  ;;  %v1356_v52 = vsel %vm1336_vm10, %v1327_v0, %v1122_v50  ;;  %v974_v55 = vpop.permute.xlu1 %973 }
 0x15f   : > { %v1385_v53 = vsel %vm1365_vm11, %v1356_v52, %v1153_v36  ;;  %v1874_v51 = vshrl.u32 %v1847_v47, 16  ;;  %v1877_v59 = vshll.u32 %v1847_v47, 16 }
 0x160   : > { %vm1534_vm1 = vcmp.ge.f32.partialorder %v1474_v10, 0.0  ;;  %v1562_v56 = vmul.f32 0.01, %v1474_v10  ;;  %5479 = vmatmul.msk.bf16.gmra.mxu0 %vm8769_vm12, %v1385_v53  ;;  %v943_v33 = vpop.permute.xlu2 %942 }
 0x161   : > { %v1876_v58 = vrot.slane %v1874_v51, 7 }
 0x162   : > { %v1590_v48 = vsel %vm1534_vm1, %v1474_v10, %v1562_v56  ;;  %vm8772_vm1 = vsmask.f32 7424 }
 0x163   : > { %v1622_v60 = vmul.f32 %v6513_v17, %v1590_v48  ;;  %v1879_v62 = vor.u32 %v1877_v59, %v1876_v58  ;;  %v2004_v63 = vsel %vm6560_vm13, %v1876_v58, 0  ;;  %v1681_v59 = vadd.s32 4, %v6504_v19 }
 0x164   : > { %v2215_v8 = vrot.slane %v2004_v63, 1  ;;  %v2048_v16 = vshll.u32 %v2004_v63, 16 }
 0x165   : > { %v1475_v3 = vpop.f32.mrf.mxu0  ;;  %v941_v7 = vpop.permute.xlu0 %940  ;;  %v6608_v6 = vsel %vm6560_vm13, 0, %v1879_v62  ;;  %v1654_v9 = vadd.f32 %v6524_v23, %v1622_v60  ;;  %vm1695_vm15 = vcmp.ge.s32.totalorder %v1681_v59, 0 }
 0x166   : > { %v1476_v11 = vadd.f32 %v6494_v5, %v1475_v3  ;;  %2334 = vrot.lane.b32.xlu2 %v6608_v6, %s5934_s17  ;;  %v2214_v12 = vrot.slane %v6608_v6, 1  ;;  %v2043_v61 = vshll.u32 %v6608_v6, 16  ;;  %v1081_v1 = vpop.permute.xlu1 %1080  ;;  %v1213_v21 = vsel %vm1191_vm5, %v1184_v2, %v941_v7 }
 0x167   : > { %v2041_v24 = vshrl.u32 %v6608_v6, 16  ;;  %v1739_v26 = vsel %vm6615_vm2, %v1654_v9, 0.0  ;;  %v1242_v15 = vsel %vm1220_vm6, %v1213_v21, %v974_v55  ;;  %v2050_v31 = vrot.slane %v2048_v16, 1 }
 0x168   : > { %vm1535_vm3 = vcmp.ge.f32.partialorder %v1476_v11, 0.0  ;;  %v1563_v13 = vmul.f32 0.01, %v1476_v11  ;;  %v6622_v54 = vsel %vm877_vm0, %v2214_v12, %v2215_v8  ;;  %v2045_v25 = vrot.slane %v2043_v61, 1  ;;  %v1050_v57 = vpop.permute.xlu2 %1049 }
 0x169   : > { %2311 = vrot.lane.b32.xlu1 %v6622_v54, %s5933_s16  ;;  %v1767_v27 = vpack.c.bf16 %v1739_v26, %v1739_v26  ;;  %v1271_v38 = vsel %vm1249_vm7, %v1242_v15, %v1017_v37 }
 0x16a   : > { %v1591_v28 = vsel %vm1535_vm3, %v1476_v11, %v1563_v13  ;;  %v2046_v30 = vor.u32 %v2045_v25, %v2041_v24 }
 0x16b   : > { %v1623_v29 = vmul.f32 %v6513_v17, %v1591_v28  ;;  %v1823_v0 = vunpack.c.l.b16 %v1767_v27 }
 0x16c   : > { %v6633_v35 = vsel %vm8772_vm1, %v2046_v30, %v2050_v31 }
 0x16d   : > { %v1655_v32 = vadd.f32 %v6524_v23, %v1623_v29  ;;  %v1048_v36 = vpop.permute.xlu0 %1047  ;;  %2370 = vrot.lane.b32.xlu0 %v6633_v35, %s5935_s0 }
 0x16e   : > { %v1300_v44 = vsel %vm1278_vm8, %v1271_v38, %v1048_v36  ;;  %v872_v22 = vpop.permute.xlu1 %871 }
 0x16f   : > { %v1740_v40 = vsel %vm6615_vm2, %v1655_v32, 0.0  ;;  %v1329_v50 = vsel %vm1307_vm9, %v1300_v44, %v1081_v1  ;;  %vm1709_vm2 = vcmp.lt.s32.totalorder %v1681_v59, 16 }
 0x170   : > { %v1768_v47 = vpack.c.bf16 %v1740_v40, %v1740_v40  ;;  %v1358_v53 = vsel %vm1336_vm10, %v1329_v50, %v1124_v46  ;;  %v1186_v46 = vsel %vm1162_vm4, %v6334_v43, %v872_v22  ;;  %vm6663_vm3 = vmand %vm1695_vm15, %vm1709_vm2  ;;  %v1157_v30 = vpop.permute.xlu2 %1156  ;;  %v6681_v40 = vld [vmem:[%s8722_s5 + $0x88] sm:$0xff]  ;;  %vm8777_vm15 = vcmask 220160  }
 0x171   : > { %v1215_v9 = vsel %vm1191_vm5, %v1186_v46, %v943_v33  ;;  %5810 = vmatpush.bf16.msra.mxu3 %v6681_v40 }
 0x172   : > { %v1824_v49 = vunpack.c.l.b16 %v1768_v47 }
 0x174   : > { %v1848_v10 = vpack.c.b16 %v1824_v49, %v1823_v0  ;;  %v1478_v52 = vpop.f32.mrf.mxu0 }
 0x175   : > { %v1479_v37 = vadd.f32 %v6494_v5, %v1478_v52  ;;  %v1155_v55 = vpop.permute.xlu0 %1154 }
 0x176   : > { %v1387_v51 = vsel %vm1365_vm11, %v1358_v53, %v1155_v55  ;;  %v1881_v56 = vshrl.u32 %v1848_v10, 16  ;;  %v1019_v48 = vpop.permute.xlu1 %1018  ;;  %v1884_v62 = vshll.u32 %v1848_v10, 16 }
 0x177   : > { %vm1536_vm12 = vcmp.ge.f32.partialorder %v1479_v37, 0.0  ;;  %v1564_v58 = vmul.f32 0.01, %v1479_v37  ;;  %5480 = vmatmul.msk.bf16.gmra.mxu0 %vm8773_vm14, %v1387_v51 }
 0x178   : > { %v1883_v60 = vrot.slane %v1881_v56, 7  ;;  %v6699_v56 = vld [vmem:[%s8722_s5 + $0x80] sm:$0xff] }
 0x179   : > { %v1592_v63 = vsel %vm1536_vm12, %v1479_v37, %v1564_v58  ;;  %vm8776_vm12 = vsmask.f32 7424  ;;  %5811 = vmatpush.bf16.msra.mxu3 %v6699_v56 }
 0x17a   : > { %v1624_v2 = vmul.f32 %v6513_v17, %v1592_v63  ;;  %v1886_v3 = vor.u32 %v1884_v62, %v1883_v60  ;;  %v2005_v7 = vsel %vm6560_vm13, %v1883_v60, 0  ;;  %v978_v62 = vpop.permute.xlu2 %977 }
 0x17b   : > { %v2218_v13 = vrot.slane %v2005_v7, 1  ;;  %v2060_v21 = vshll.u32 %v2005_v7, 16 }
 0x17c   : > { %v1480_v11 = vpop.f32.mrf.mxu0  ;;  %v6655_v12 = vsel %vm6560_vm13, 0, %v1886_v3  ;;  %v1656_v14 = vadd.f32 %v6524_v23, %v1624_v2 }
 0x17d   : > { %v1481_v8 = vadd.f32 %v6494_v5, %v1480_v11  ;;  %2336 = vrot.lane.b32.xlu2 %v6655_v12, %s5934_s17  ;;  %v976_v43 = vpop.permute.xlu0 %975  ;;  %v2217_v61 = vrot.slane %v6655_v12, 1  ;;  %v2055_v16 = vshll.u32 %v6655_v12, 16  ;;  %v2053_v29 = vshrl.u32 %v6655_v12, 16 }
 0x17e   : > { %v1244_v25 = vsel %vm1220_vm6, %v1215_v9, %v976_v43  ;;  %v1126_v26 = vpop.permute.xlu1 %1125  ;;  %v1741_v31 = vsel %vm6663_vm3, %v1656_v14, 0.0  ;;  %v2062_v38 = vrot.slane %v2060_v21, 1 }
 0x17f   : > { %vm1537_vm1 = vcmp.ge.f32.partialorder %v1481_v8, 0.0  ;;  %v1565_v24 = vmul.f32 0.01, %v1481_v8  ;;  %v6669_v28 = vsel %vm877_vm0, %v2217_v61, %v2218_v13  ;;  %v2057_v15 = vrot.slane %v2055_v16, 1 }
 0x180   : > { %2313 = vrot.lane.b32.xlu1 %v6669_v28, %s5933_s16  ;;  %v1273_v36 = vsel %vm1249_vm7, %v1244_v25, %v1019_v48  ;;  %v1769_v47 = vpack.c.bf16 %v1741_v31, %v1741_v31 }
 0x181   : > { %v1593_v33 = vsel %vm1537_vm1, %v1481_v8, %v1565_v24  ;;  %v2058_v27 = vor.u32 %v2057_v15, %v2053_v29  ;;  %v1302_v0 = vsel %vm1278_vm8, %v1273_v36, %v1050_v57  ;;  %v1682_v57 = vadd.s32 5, %v6504_v19 }
 0x182   : > { %v1625_v32 = vmul.f32 %v6513_v17, %v1593_v33  ;;  %v1825_v59 = vunpack.c.l.b16 %v1769_v47 }
 0x183   : > { %v6685_v22 = vsel %vm8776_vm12, %v2058_v27, %v2062_v38  ;;  %vm1696_vm2 = vcmp.ge.s32.totalorder %v1682_v57, 0 }
 0x184   : > { %v1657_v44 = vadd.f32 %v6524_v23, %v1625_v32  ;;  %2372 = vrot.lane.b32.xlu0 %v6685_v22, %s5935_s0 }
 0x185   : > { %v1083_v49 = vpop.permute.xlu0 %1082 }
 0x186   : > { %v1742_v50 = vsel %vm6663_vm3, %v1657_v44, 0.0  ;;  %v1331_v10 = vsel %vm1307_vm9, %v1302_v0, %v1083_v49  ;;  %v1483_v52 = vpop.f32.mrf.mxu0  ;;  %v945_v51 = vpop.permute.xlu1 %944  ;;  %vm1710_vm3 = vcmp.lt.s32.totalorder %v1682_v57, 16 }
 0x187   : > { %v1770_v53 = vpack.c.bf16 %v1742_v50, %v1742_v50  ;;  %v1360_v37 = vsel %vm1336_vm10, %v1331_v10, %v1126_v26  ;;  %v1484_v55 = vadd.f32 %v6494_v5, %v1483_v52  ;;  %vm6710_vm1 = vmand %vm1696_vm2, %vm1710_vm3  ;;  %vm8781_vm2 = vcmask 220160  }
 0x188   : > { %v1389_v58 = vsel %vm1365_vm11, %v1360_v37, %v1157_v30  ;;  %v1085_v30 = vpop.permute.xlu2 %1084 }
 0x189   : > { %v1826_v48 = vunpack.c.l.b16 %v1770_v53  ;;  %vm1538_vm14 = vcmp.ge.f32.partialorder %v1484_v55, 0.0  ;;  %v1566_v60 = vmul.f32 0.01, %v1484_v55  ;;  %5481 = vmatmul.msk.bf16.vlgmr.msra.gmra.mxu1 %vm8777_vm15, %v1389_v58 }
 0x18b   : > { %v1849_v63 = vpack.c.b16 %v1826_v48, %v1825_v59  ;;  %v1594_v46 = vsel %vm1538_vm14, %v1484_v55, %v1566_v60  ;;  %vm8780_vm14 = vsmask.f32 7424 }
 0x18c   : > { %v1626_v2 = vmul.f32 %v6513_v17, %v1594_v46 }
 0x18d   : > { %v874_v3 = vpop.permute.xlu0 %873  ;;  %v1888_v7 = vshrl.u32 %v1849_v63, 16  ;;  %v1891_v11 = vshll.u32 %v1849_v63, 16 }
 0x18e   : > { %v1485_v9 = vpop.f32.mrf.mxu0  ;;  %v1658_v14 = vadd.f32 %v6524_v23, %v1626_v2  ;;  %v1188_v8 = vsel %vm1162_vm4, %v6365_v4, %v874_v3  ;;  %v1052_v1 = vpop.permute.xlu1 %1051 }
 0x18f   : > { %v1486_v43 = vadd.f32 %v6494_v5, %v1485_v9  ;;  %v1890_v61 = vrot.slane %v1888_v7, 7  ;;  %v1217_v24 = vsel %vm1191_vm5, %v1188_v8, %v945_v51  ;;  %v1683_v8 = vadd.s32 6, %v6504_v19 }
 0x190   : > { %v1743_v26 = vsel %vm6710_vm1, %v1658_v14, 0.0  ;;  %v1246_v36 = vsel %vm1220_vm6, %v1217_v24, %v978_v62  ;;  %v876_v7 = vpop.permute.xlu2 %875 }
 0x191   : > { %vm1539_vm12 = vcmp.ge.f32.partialorder %v1486_v43, 0.0  ;;  %v1567_v13 = vmul.f32 0.01, %v1486_v43  ;;  %v1893_v21 = vor.u32 %v1891_v11, %v1890_v61  ;;  %v2006_v25 = vsel %vm6560_vm13, %v1890_v61, 0 }
 0x192   : > { %v2221_v33 = vrot.slane %v2006_v25, 1  ;;  %v2072_v38 = vshll.u32 %v2006_v25, 16  ;;  %v1771_v50 = vpack.c.bf16 %v1743_v26, %v1743_v26  ;;  %vm1697_vm3 = vcmp.ge.s32.totalorder %v1683_v8, 0 }
 0x193   : > { %v1595_v4 = vsel %vm1539_vm12, %v1486_v43, %v1567_v13  ;;  %v6721_v29 = vsel %vm6560_vm13, 0, %v1893_v21  ;;  %v5769_v21 = vld [vmem:[%s8722_s5 + $0x78] sm:$0xff]  ;;  %v1190_v26 = vsel %vm1162_vm4, %v6397_v41, %v876_v7  ;;  %vm2398_vm4 = vcmask 261120  }
 0x194   : > { %v1627_v15 = vmul.f32 %v6513_v17, %v1595_v4  ;;  %2338 = vrot.lane.b32.xlu2 %v6721_v29, %s5934_s17  ;;  %v2220_v31 = vrot.slane %v6721_v29, 1  ;;  %v2067_v32 = vshll.u32 %v6721_v29, 16  ;;  %v2065_v0 = vshrl.u32 %v6721_v29, 16  ;;  %2834 = vmatpush.bf16.msra.mxu2 %v5769_v21 }
 0x195   : > { %v1021_v27 = vpop.permute.xlu0 %1020  ;;  %v2074_v37 = vrot.slane %v2072_v38, 1  ;;  %v1827_v59 = vunpack.c.l.b16 %v1771_v50 }
 0x196   : > { %v1659_v44 = vadd.f32 %v6524_v23, %v1627_v15  ;;  %v6731_v47 = vsel %vm877_vm0, %v2220_v31, %v2221_v33  ;;  %v2069_v49 = vrot.slane %v2067_v32, 1  ;;  %v1275_v10 = vsel %vm1249_vm7, %v1246_v36, %v1021_v27  ;;  %v1159_v58 = vpop.permute.xlu1 %1158 }
 0x197   : > { %2315 = vrot.lane.b32.xlu1 %v6731_v47, %s5933_s16  ;;  %v1304_v51 = vsel %vm1278_vm8, %v1275_v10, %v1052_v1  ;;  %v1684_v36 = vadd.s32 7, %v6504_v19 }
 0x198   : > { %v1744_v52 = vsel %vm6710_vm1, %v1659_v44, 0.0  ;;  %v2070_v53 = vor.u32 %v2069_v49, %v2065_v0  ;;  %v1333_v62 = vsel %vm1307_vm9, %v1304_v51, %v1085_v30  ;;  %vm1711_vm1 = vcmp.lt.s32.totalorder %v1683_v8, 16  ;;  %v5768_v44 = vld [vmem:[%s8722_s5 + $0x70] sm:$0xff]  ;;  %v1023_v50 = vpop.permute.xlu2 %1022 }
 0x199   : > { %v1772_v55 = vpack.c.bf16 %v1744_v52, %v1744_v52  ;;  %vm6768_vm12 = vmand %vm1697_vm3, %vm1711_vm1  ;;  %2835 = vmatpush.bf16.msra.mxu2 %v5768_v44 }
 0x19a   : > { %v6741_v57 = vsel %vm8780_vm14, %v2070_v53, %v2074_v37 }
 0x19b   : > { %v1828_v48 = vunpack.c.l.b16 %v1772_v55  ;;  %2374 = vrot.lane.b32.xlu0 %v6741_v57, %s5935_s0 }
 0x19d   : > { %v1850_v60 = vpack.c.b16 %v1828_v48, %v1827_v59  ;;  %v1488_v63 = vpop.f32.mrf.mxu0  ;;  %v1128_v46 = vpop.permute.xlu0 %1127 }
 0x19e   : > { %v1489_v2 = vadd.f32 %v6494_v5, %v1488_v63  ;;  %v1362_v3 = vsel %vm1336_vm10, %v1333_v62, %v1128_v46  ;;  %v980_v24 = vpop.permute.xlu1 %979 }
 0x19f   : > { %v1391_v9 = vsel %vm1365_vm11, %v1362_v3, %v1159_v58  ;;  %v1895_v11 = vshrl.u32 %v1850_v60, 16  ;;  %v1898_v61 = vshll.u32 %v1850_v60, 16  ;;  %v5767_v60 = vld [vmem:[%s8722_s5 + $0x68] sm:$0xff] }
 0x1a0   : > { %vm1540_vm15 = vcmp.ge.f32.partialorder %v1489_v2, 0.0  ;;  %v1568_v14 = vmul.f32 0.01, %v1489_v2  ;;  %5482 = vmatmul.msk.bf16.gmra.mxu1 %vm8781_vm2, %v1391_v9  ;;  %2836 = vmatpush.bf16.msra.mxu2 %v5767_v60 }
 0x1a1   : > { %v1897_v43 = vrot.slane %v1895_v11, 7 }
 0x1a2   : > { %v1596_v16 = vsel %vm1540_vm15, %v1489_v2, %v1568_v14  ;;  %v5766_v14 = vld [vmem:[%s8722_s5 + $0x60] sm:$0xff] }
 0x1a3   : > { %v1628_v1 = vmul.f32 %v6513_v17, %v1596_v16  ;;  %v1900_v13 = vor.u32 %v1898_v61, %v1897_v43  ;;  %v2007_v25 = vsel %vm6560_vm13, %v1897_v43, 0 }
 0x1a4   : > { %v2224_v41 = vrot.slane %v2007_v25, 1  ;;  %v2084_v38 = vshll.u32 %v2007_v25, 16  ;;  %2837 = vmatpush.bf16.msra.mxu2 %v5766_v14 }
 0x1a5   : > { %v1490_v4 = vpop.f32.mrf.mxu0  ;;  %v947_v15 = vpop.permute.xlu0 %946  ;;  %v6761_v30 = vsel %vm6560_vm13, 0, %v1900_v13  ;;  %v1660_v31 = vadd.f32 %v6524_v23, %v1628_v1  ;;  %v5765_v13 = vld [vmem:[%s8722_s5 + $0x58] sm:$0xff] }
 0x1a6   : > { %v1491_v33 = vadd.f32 %v6494_v5, %v1490_v4  ;;  %2340 = vrot.lane.b32.xlu2 %v6761_v30, %s5934_s17  ;;  %v2223_v32 = vrot.slane %v6761_v30, 1  ;;  %v2079_v27 = vshll.u32 %v6761_v30, 16  ;;  %v1219_v49 = vsel %vm1191_vm5, %v1190_v26, %v947_v15  ;;  %v1087_v11 = vpop.permute.xlu1 %1086  ;;  %v1130_v1 = vpop.permute.xlu2 %1129 }
 0x1a7   : > { %v2077_v52 = vshrl.u32 %v6761_v30, 16  ;;  %v1745_v37 = vsel %vm6768_vm12, %v1660_v31, 0.0  ;;  %v1248_v58 = vsel %vm1220_vm6, %v1219_v49, %v980_v24  ;;  %v2086_v48 = vrot.slane %v2084_v38, 1 }
 0x1a8   : > { %vm1541_vm14 = vcmp.ge.f32.partialorder %v1491_v33, 0.0  ;;  %v1569_v0 = vmul.f32 0.01, %v1491_v33  ;;  %v6778_v10 = vsel %vm877_vm0, %v2223_v32, %v2224_v41  ;;  %v2081_v53 = vrot.slane %v2079_v27, 1  ;;  %2838 = vmatpush.bf16.msra.mxu2 %v5765_v13  ;;  %v5764_v32 = vld [vmem:[%s8722_s5 + $0x50] sm:$0xff] }
 0x1a9   : > { %2317 = vrot.lane.b32.xlu1 %v6778_v10, %s5933_s16  ;;  %5560 = vmatmul.msk.bf16.vlgmr.msra.gmra.mxu3 %vm2398_vm4, %v6778_v10  ;;  %vm8784_vm5 = vsmask.f32 7424  ;;  %v1773_v2 = vpack.c.bf16 %v1745_v37, %v1745_v37  ;;  %v1277_v3 = vsel %vm1249_vm7, %v1248_v58, %v1023_v50  ;;  %vm8785_vm7 = vmmov %vm8781_vm2  ;;  %v5763_v50 = vld [vmem:[%s8722_s5 + $0x48] sm:$0xff] }
 0x1aa   : > { %v1597_v55 = vsel %vm1541_vm14, %v1491_v33, %v1569_v0  ;;  %v2082_v59 = vor.u32 %v2081_v53, %v2077_v52  ;;  %vm8788_vm15 = vmmov %vm8784_vm5 }
 0x1ab   : > { %v1629_v51 = vmul.f32 %v6513_v17, %v1597_v55  ;;  %v1829_v43 = vunpack.c.l.b16 %v1773_v2  ;;  %v5762_v2 = vld [vmem:[%s8722_s5 + $0x40] sm:$0xff] }
 0x1ac   : > { %v6794_v63 = vsel %vm8784_vm5, %v2082_v59, %v2086_v48  ;;  %2839 = vmatpush.bf16.msra.mxu2 %v5764_v32 }
 0x1ad   : > { %v1661_v62 = vadd.f32 %v6524_v23, %v1629_v51  ;;  %v1054_v46 = vpop.permute.xlu0 %1053  ;;  %2376 = vrot.lane.b32.xlu0 %v6794_v63, %s5935_s0 }
 0x1ae   : > { %v1306_v9 = vsel %vm1278_vm8, %v1277_v3, %v1054_v46  ;;  %vm1698_vm8 = vcmp.ge.s32.totalorder %v1684_v36, 0 }
 0x1af   : > { %v1746_v7 = vsel %vm6768_vm12, %v1661_v62, 0.0  ;;  %v1335_v16 = vsel %vm1307_vm9, %v1306_v9, %v1087_v11  ;;  %vm1712_vm9 = vcmp.lt.s32.totalorder %v1684_v36, 16 }
 0x1b0   : > { %v1774_v8 = vpack.c.bf16 %v1746_v7, %v1746_v7  ;;  %v1364_v25 = vsel %vm1336_vm10, %v1335_v16, %v1130_v1  ;;  %2840 = vmatpush.bf16.msra.mxu2 %v5763_v50  ;;  %vm6833_vm10 = vmand %vm1698_vm8, %vm1712_vm9  ;;  %vm2448_vm8 = vcmask 785408  }
 0x1b2   : > { %v1830_v61 = vunpack.c.l.b16 %v1774_v8 }
 0x1b4   : > { %v1851_v21 = vpack.c.b16 %v1830_v61, %v1829_v43  ;;  %v1493_v24 = vpop.f32.mrf.mxu0  ;;  %2841 = vmatpush.bf16.msra.mxu2 %v5762_v2 }
 0x1b5   : > { %v1494_v26 = vadd.f32 %v6494_v5, %v1493_v24  ;;  %v1161_v4 = vpop.permute.xlu0 %1160 }
 0x1b6   : > { %v1393_v15 = vsel %vm1365_vm11, %v1364_v25, %v1161_v4  ;;  %v1902_v31 = vshrl.u32 %v1851_v21, 16  ;;  %v1905_v27 = vshll.u32 %v1851_v21, 16 }
 0x1b7   : > { %vm1542_vm6 = vcmp.ge.f32.partialorder %v1494_v26, 0.0  ;;  %v1570_v33 = vmul.f32 0.01, %v1494_v26  ;;  %5483 = vmatmul.msk.bf16.gmra.mxu1 %vm8785_vm7, %v1393_v15  ;;  %vm2423_vm7 = vcmask 523264  }
 0x1b8   : > { %v1904_v41 = vrot.slane %v1902_v31, 7  ;;  %2909 = vmatpush.bf16.msrb.mxu2 %v6681_v40  ;;  %v1685_v40 = vadd.s32 8, %v6504_v19 }
 0x1b9   : > { %v1598_v38 = vsel %vm1542_vm6, %v1494_v26, %v1570_v33  ;;  %vm8791_vm6 = vmmov %vm8784_vm5 }
 0x1ba   : > { %v1630_v44 = vmul.f32 %v6513_v17, %v1598_v38  ;;  %v1907_v0 = vor.u32 %v1905_v27, %v1904_v41  ;;  %v2008_v49 = vsel %vm6560_vm13, %v1904_v41, 0  ;;  %vm1699_vm3 = vcmp.ge.s32.totalorder %v1685_v40, 0 }
 0x1bb   : > { %v2227_v51 = vrot.slane %v2008_v49, 1  ;;  %v2096_v48 = vshll.u32 %v2008_v49, 16  ;;  %vm1713_vm1 = vcmp.lt.s32.totalorder %v1685_v40, 16  ;;  %v2031_v41 = vshll.u32 %v6575_v42, 16 }
 0x1bc   : > { %v1495_v52 = vpop.f32.mrf.mxu0  ;;  %v6825_v53 = vsel %vm6560_vm13, 0, %v1907_v0  ;;  %v1662_v59 = vadd.f32 %v6524_v23, %v1630_v44  ;;  %2910 = vmatpush.bf16.msrb.mxu2 %v6699_v56  ;;  %vm6867_vm12 = vmand %vm1699_vm3, %vm1713_vm1  ;;  %v1686_v49 = vadd.s32 9, %v6504_v19 }
 0x1bd   : > { %v1496_v37 = vadd.f32 %v6494_v5, %v1495_v52  ;;  %2342 = vrot.lane.b32.xlu2 %v6825_v53, %s5934_s17  ;;  %v2226_v55 = vrot.slane %v6825_v53, 1  ;;  %v2091_v58 = vshll.u32 %v6825_v53, 16  ;;  %v2089_v3 = vshrl.u32 %v6825_v53, 16  ;;  %vm8794_vm3 = vmmov %vm8784_vm5 }
 0x1be   : > { %v1747_v11 = vsel %vm6833_vm10, %v1662_v59, 0.0  ;;  %v2098_v43 = vrot.slane %v2096_v48, 1 }
 0x1bf   : > { %vm1543_vm11 = vcmp.ge.f32.partialorder %v1496_v37, 0.0  ;;  %v1571_v62 = vmul.f32 0.01, %v1496_v37  ;;  %v6838_v46 = vsel %vm877_vm0, %v2226_v55, %v2227_v51  ;;  %v2093_v7 = vrot.slane %v2091_v58, 1 }
 0x1c0   : > { %2319 = vrot.lane.b32.xlu1 %v6838_v46, %s5933_s16  ;;  %5561 = vmatmul.msk.bf16.gmra.mxu3 %vm2398_vm4, %v6838_v46  ;;  %v1775_v1 = vpack.c.bf16 %v1747_v11, %v1747_v11  ;;  %v2033_v51 = vrot.slane %v2031_v41, 1 }
 0x1c1   : > { %v1599_v9 = vsel %vm1543_vm11, %v1496_v37, %v1571_v62  ;;  %v2094_v8 = vor.u32 %v2093_v7, %v2089_v3  ;;  %v2036_v3 = vshll.u32 %v6570_v20, 16  ;;  %v2029_v7 = vshrl.u32 %v6575_v42, 16 }
 0x1c2   : > { %v1631_v14 = vmul.f32 %v6513_v17, %v1599_v9  ;;  %v1831_v26 = vunpack.c.l.b16 %v1775_v1  ;;  %vm1714_vm11 = vcmp.lt.s32.totalorder %v1686_v49, 16 }
 0x1c3   : > { %v6854_v16 = vsel %vm8788_vm15, %v2094_v8, %v2098_v43  ;;  %v2034_v1 = vor.u32 %v2033_v51, %v2029_v7 }
 0x1c4   : > { %v1663_v61 = vadd.f32 %v6524_v23, %v1631_v14  ;;  %2378 = vrot.lane.b32.xlu0 %v6854_v16, %s5935_s0 }
 0x1c6   : > { %v1748_v13 = vsel %vm6833_vm10, %v1663_v61, 0.0  ;;  %v1498_v21 = vpop.f32.mrf.mxu0  ;;  %vm1700_vm10 = vcmp.ge.s32.totalorder %v1686_v49, 0 }
 0x1c7   : > { %v1776_v24 = vpack.c.bf16 %v1748_v13, %v1748_v13  ;;  %v1499_v25 = vadd.f32 %v6494_v5, %v1498_v21  ;;  %vm6924_vm15 = vmand %vm1700_vm10, %vm1714_vm11 }
 0x1c9   : > { %v1832_v4 = vunpack.c.l.b16 %v1776_v24  ;;  %vm1544_vm2 = vcmp.ge.f32.partialorder %v1499_v25, 0.0  ;;  %v1572_v15 = vmul.f32 0.01, %v1499_v25  ;;  %v2310_v40 = vpop.permute.xlu1 %2309 }
 0x1cb   : > { %v1852_v31 = vpack.c.b16 %v1832_v4, %v1831_v26  ;;  %v1600_v33 = vsel %vm1544_vm2, %v1499_v25, %v1572_v15  ;;  %v2038_v25 = vrot.slane %v2036_v3, 1 }
 0x1cc   : > { %v1632_v32 = vmul.f32 %v6513_v17, %v1600_v33 }
 0x1cd   : > { %v1909_v36 = vshrl.u32 %v1852_v31, 16  ;;  %v1912_v0 = vshll.u32 %v1852_v31, 16  ;;  %v6903_v31 = vsel %vm8791_vm6, %v2034_v1, %v2038_v25 }
 0x1ce   : > { %v1500_v27 = vpop.f32.mrf.mxu0  ;;  %v1664_v56 = vadd.f32 %v6524_v23, %v1632_v32  ;;  %v2487_v33 = vsel %vm2398_vm4, %v6903_v31, %v2310_v40 }
 0x1cf   : > { %v1501_v38 = vadd.f32 %v6494_v5, %v1500_v27  ;;  %v1911_v44 = vrot.slane %v1909_v36, 7  ;;  %v2335_v27 = vpop.permute.xlu2 %2334 }
 0x1d0   : > { %v1749_v55 = vsel %vm6867_vm12, %v1664_v56, 0.0 }
 0x1d1   : > { %vm1545_vm14 = vcmp.ge.f32.partialorder %v1501_v38, 0.0  ;;  %v1573_v50 = vmul.f32 0.01, %v1501_v38  ;;  %v1914_v52 = vor.u32 %v1912_v0, %v1911_v44  ;;  %v2009_v37 = vsel %vm6560_vm13, %v1911_v44, 0 }
 0x1d2   : > { %v2230_v62 = vrot.slane %v2009_v37, 1  ;;  %v2108_v9 = vshll.u32 %v2009_v37, 16  ;;  %v1777_v61 = vpack.c.bf16 %v1749_v55, %v1749_v55  ;;  %v2522_v0 = vsel %vm2423_vm7, %v2487_v33, %v2335_v27 }
 0x1d3   : > { %v1601_v58 = vsel %vm1545_vm14, %v1501_v38, %v1573_v50  ;;  %v6877_v59 = vsel %vm6560_vm13, 0, %v1914_v52 }
 0x1d4   : > { %v1633_v48 = vmul.f32 %v6513_v17, %v1601_v58  ;;  %2344 = vrot.lane.b32.xlu2 %v6877_v59, %s5934_s17  ;;  %v2229_v60 = vrot.slane %v6877_v59, 1  ;;  %v2103_v2 = vshll.u32 %v6877_v59, 16  ;;  %v2101_v8 = vshrl.u32 %v6877_v59, 16 }
 0x1d5   : > { %v2110_v21 = vrot.slane %v2108_v9, 1  ;;  %v1833_v4 = vunpack.c.l.b16 %v1777_v61 }
 0x1d6   : > { %v1665_v11 = vadd.f32 %v6524_v23, %v1633_v48  ;;  %v6888_v14 = vsel %vm877_vm0, %v2229_v60, %v2230_v62  ;;  %v2105_v43 = vrot.slane %v2103_v2, 1 }
 0x1d7   : > { %2321 = vrot.lane.b32.xlu1 %v6888_v14, %s5933_s16  ;;  %5562 = vmatmul.msk.bf16.gmra.mxu3 %vm2398_vm4, %v6888_v14  ;;  %v2337_v49 = vpop.permute.xlu2 %2336 }
 0x1d8   : > { %v1750_v20 = vsel %vm6867_vm12, %v1665_v11, 0.0  ;;  %v2106_v13 = vor.u32 %v2105_v43, %v2101_v8 }
 0x1d9   : > { %v1778_v24 = vpack.c.bf16 %v1750_v20, %v1750_v20 }
 0x1da   : > { %v6898_v26 = vsel %vm8784_vm5, %v2106_v13, %v2110_v21 }
 0x1db   : > { %v1834_v15 = vunpack.c.l.b16 %v1778_v24  ;;  %2380 = vrot.lane.b32.xlu0 %v6898_v26, %s5935_s0 }
 0x1dd   : > { %v1853_v32 = vpack.c.b16 %v1834_v15, %v1833_v4  ;;  %v1503_v36 = vpop.f32.mrf.mxu0 }
 0x1de   : > { %v1504_v41 = vadd.f32 %v6494_v5, %v1503_v36 }
 0x1df   : > { %v1916_v56 = vshrl.u32 %v1853_v32, 16  ;;  %v2371_v44 = vpop.permute.xlu0 %2370  ;;  %v1919_v37 = vshll.u32 %v1853_v32, 16 }
 0x1e0   : > { %vm1546_vm9 = vcmp.ge.f32.partialorder %v1504_v41, 0.0  ;;  %v1574_v38 = vmul.f32 0.01, %v1504_v41  ;;  %v2546_v50 = vsel %vm2448_vm8, %v2522_v0, %v2371_v44 }
 0x1e1   : > { %v1918_v52 = vrot.slane %v1916_v56, 7  ;;  %2842 = vmatmul.bf16.vlgmr.msra.gmra.mxu2 %v2546_v50 }
 0x1e2   : > { %v1602_v55 = vsel %vm1546_vm9, %v1504_v41, %v1574_v38  ;;  %v2312_v41 = vpop.permute.xlu1 %2311  ;;  %vm8797_vm9 = vmmov %vm8794_vm3 }
 0x1e3   : > { %v1634_v51 = vmul.f32 %v6513_v17, %v1602_v55  ;;  %v1921_v58 = vor.u32 %v1919_v37, %v1918_v52  ;;  %v2010_v48 = vsel %vm6560_vm13, %v1918_v52, 0 }
 0x1e4   : > { %v2233_v7 = vrot.slane %v2010_v48, 1  ;;  %v2120_v8 = vshll.u32 %v2010_v48, 16 }
 0x1e5   : > { %v1505_v60 = vpop.f32.mrf.mxu0  ;;  %v6916_v62 = vsel %vm6560_vm13, 0, %v1921_v58  ;;  %v1666_v11 = vadd.f32 %v6524_v23, %v1634_v51  ;;  %v1687_v51 = vadd.s32 10, %v6504_v19 }
 0x1e6   : > { %v1506_v2 = vadd.f32 %v6494_v5, %v1505_v60  ;;  %2346 = vrot.lane.b32.xlu2 %v6916_v62, %s5934_s17  ;;  %v2232_v3 = vrot.slane %v6916_v62, 1  ;;  %v2115_v9 = vshll.u32 %v6916_v62, 16  ;;  %v2113_v5 = vshrl.u32 %v6916_v62, 16 }
 0x1e7   : > { %v1751_v21 = vsel %vm6924_vm15, %v1666_v11, 0.0  ;;  %v2122_v40 = vrot.slane %v2120_v8, 1  ;;  %vm1701_vm12 = vcmp.ge.s32.totalorder %v1687_v51, 0  ;;  %vm1715_vm14 = vcmp.lt.s32.totalorder %v1687_v51, 16 }
 0x1e8   : > { %vm1547_vm2 = vcmp.ge.f32.partialorder %v1506_v2, 0.0  ;;  %v1575_v61 = vmul.f32 0.01, %v1506_v2  ;;  %v6929_v1 = vsel %vm877_vm0, %v2232_v3, %v2233_v7  ;;  %v2117_v20 = vrot.slane %v2115_v9, 1  ;;  %v6961_v3 = vld [vmem:[%s8720_s3] ss:$0 sm:$0xff]  ;;  %vm6981_vm5 = vmand %vm1701_vm12, %vm1715_vm14 }
 0x1e9   : > { %2323 = vrot.lane.b32.xlu1 %v6929_v1, %s5933_s16  ;;  %5563 = vmatmul.msk.bf16.gmra.mxu3 %vm2398_vm4, %v6929_v1  ;;  %v1779_v33 = vpack.c.bf16 %v1751_v21, %v1751_v21  ;;  %v6978_v21 = vld [vmem:[%s8721_s4] ss:$0 sm:$0xff]  ;;  %vm1691_vm14 = vcmp.ge.s32.totalorder %v6504_v19, 0 }
 0x1ea   : > { %v1603_v13 = vsel %vm1547_vm2, %v1506_v2, %v1575_v61  ;;  %v2118_v25 = vor.u32 %v2117_v20, %v2113_v5 }
 0x1eb   : > { %v1635_v24 = vmul.f32 %v6513_v17, %v1603_v13  ;;  %v1835_v27 = vunpack.c.l.b16 %v1779_v33  ;;  %v2490_v17 = vsel %vm2398_vm4, %v6633_v35, %v2312_v41 }
 0x1ec   : > { %v6941_v15 = vsel %vm8794_vm3, %v2118_v25, %v2122_v40  ;;  %v2524_v55 = vsel %vm2423_vm7, %v2490_v17, %v2337_v49 }
 0x1ed   : > { %v1667_v4 = vadd.f32 %v6524_v23, %v1635_v24  ;;  %2382 = vrot.lane.b32.xlu0 %v6941_v15, %s5935_s0  ;;  %v6952_v23 = vld [vmem:[%s8719_s2] ss:$0 sm:$0xff] }
 0x1ef   : > { %v1752_v32 = vsel %vm6924_vm15, %v1667_v4, 0.0 }
 0x1f0   : > { %v1780_v36 = vpack.c.bf16 %v1752_v32, %v1752_v32 }
 0x1f2   : > { %v1836_v56 = vunpack.c.l.b16 %v1780_v36 }
 0x1f4   : > { %v1854_v38 = vpack.c.b16 %v1836_v56, %v1835_v27  ;;  %v1508_v44 = vpop.f32.mrf.mxu0 }
 0x1f5   : > { %v1509_v0 = vadd.f32 %v6952_v23, %v1508_v44 }
 0x1f6   : > { %v1923_v50 = vshrl.u32 %v1854_v38, 16  ;;  %v2373_v37 = vpop.permute.xlu0 %2372  ;;  %v1926_v60 = vshll.u32 %v1854_v38, 16 }
 0x1f7   : > { %vm1548_vm1 = vcmp.ge.f32.partialorder %v1509_v0, 0.0  ;;  %v1576_v52 = vmul.f32 0.01, %v1509_v0  ;;  %v2549_v58 = vsel %vm2448_vm8, %v2524_v55, %v2373_v37  ;;  %v2314_v55 = vpop.permute.xlu1 %2313 }
 0x1f8   : > { %v1925_v48 = vrot.slane %v1923_v50, 7  ;;  %2847 = vmatmul.bf16.gmra.mxu2 %v2549_v58  ;;  %v1461_v50 = vadd.f32 %v6952_v23, %v6477_v45  ;;  %v2493_v45 = vsel %vm2398_vm4, %v6685_v22, %v2314_v55 }
 0x1f9   : > { %v1604_v2 = vsel %vm1548_vm1, %v1509_v0, %v1576_v52 }
 0x1fa   : > { %v1636_v7 = vmul.f32 %v6961_v3, %v1604_v2  ;;  %v1928_v9 = vor.u32 %v1926_v60, %v1925_v48  ;;  %v2011_v11 = vsel %vm6560_vm13, %v1925_v48, 0  ;;  %v1459_v48 = vadd.f32 %v6952_v23, %v6461_v39 }
 0x1fb   : > { %v2236_v20 = vrot.slane %v2011_v11, 1  ;;  %v2132_v25 = vshll.u32 %v2011_v11, 16  ;;  %v1688_v60 = vadd.s32 11, %v6504_v19  ;;  %v1557_v11 = vmul.f32 0.01, %v1461_v50 }
 0x1fc   : > { %v1510_v8 = vpop.f32.mrf.mxu0  ;;  %v6968_v43 = vsel %vm6560_vm13, 0, %v1928_v9  ;;  %v1668_v24 = vadd.f32 %v6978_v21, %v1636_v7  ;;  %vm1529_vm11 = vcmp.ge.f32.partialorder %v1461_v50, 0.0  ;;  %vm1528_vm15 = vcmp.ge.f32.partialorder %v1459_v48, 0.0 }
 0x1fd   : > { %v1511_v61 = vadd.f32 %v6952_v23, %v1510_v8  ;;  %2348 = vrot.lane.b32.xlu2 %v6968_v43, %s5934_s17  ;;  %v2235_v5 = vrot.slane %v6968_v43, 1  ;;  %v2127_v13 = vshll.u32 %v6968_v43, 16  ;;  %v2125_v32 = vshrl.u32 %v6968_v43, 16 }
 0x1fe   : > { %v1753_v27 = vsel %vm6981_vm5, %v1668_v24, 0.0  ;;  %v2134_v38 = vrot.slane %v2132_v25, 1  ;;  %vm1702_vm2 = vcmp.ge.s32.totalorder %v1688_v60, 0  ;;  %vm1716_vm3 = vcmp.lt.s32.totalorder %v1688_v60, 16 }
 0x1ff   : > { %vm1549_vm6 = vcmp.ge.f32.partialorder %v1511_v61, 0.0  ;;  %v1577_v4 = vmul.f32 0.01, %v1511_v61  ;;  %v6986_v33 = vsel %vm877_vm0, %v2235_v5, %v2236_v20  ;;  %v2129_v36 = vrot.slane %v2127_v13, 1  ;;  %v2339_v20 = vpop.permute.xlu2 %2338  ;;  %vm7018_vm1 = vmand %vm1702_vm2, %vm1716_vm3 }
 0x200   : > { %2325 = vrot.lane.b32.xlu1 %v6986_v33, %s5933_s16  ;;  %5564 = vmatmul.msk.bf16.gmra.mxu3 %vm2398_vm4, %v6986_v33  ;;  %v1781_v49 = vpack.c.bf16 %v1753_v27, %v1753_v27  ;;  %v1556_v5 = vmul.f32 0.01, %v1459_v48  ;;  %v2526_v24 = vsel %vm2423_vm7, %v2493_v45, %v2339_v20  ;;  %v1585_v40 = vsel %vm1529_vm11, %v1461_v50, %v1557_v11 }
 0x201   : > { %v1605_v41 = vsel %vm1549_vm6, %v1511_v61, %v1577_v4  ;;  %v2130_v17 = vor.u32 %v2129_v36, %v2125_v32 }
 0x202   : > { %v1637_v56 = vmul.f32 %v6961_v3, %v1605_v41  ;;  %v1837_v2 = vunpack.c.l.b16 %v1781_v49 }
 0x203   : > { %v6998_v0 = vsel %vm8797_vm9, %v2130_v17, %v2134_v38  ;;  %v1584_v17 = vsel %vm1528_vm15, %v1459_v48, %v1556_v5 }
 0x204   : > { %v1669_v44 = vadd.f32 %v6978_v21, %v1637_v56  ;;  %2384 = vrot.lane.b32.xlu0 %v6998_v0, %s5935_s0 }
 0x206   : > { %v1754_v52 = vsel %vm6981_vm5, %v1669_v44, 0.0  ;;  %v1513_v37 = vpop.f32.mrf.mxu1  ;;  %v1617_v44 = vmul.f32 %v6961_v3, %v1585_v40  ;;  %vm1705_vm5 = vcmp.lt.s32.totalorder %v6504_v19, 16 }
 0x207   : > { %v1782_v51 = vpack.c.bf16 %v1754_v52, %v1754_v52  ;;  %v1514_v58 = vadd.f32 %v6952_v23, %v1513_v37  ;;  %v1616_v37 = vmul.f32 %v6961_v3, %v1584_v17  ;;  %vm1719_vm6 = vmand %vm1691_vm14, %vm1705_vm5 }
 0x209   : > { %v1838_v7 = vunpack.c.l.b16 %v1782_v51  ;;  %vm1550_vm10 = vcmp.ge.f32.partialorder %v1514_v58, 0.0  ;;  %v1578_v9 = vmul.f32 0.01, %v1514_v58 }
 0x20b   : > { %v1855_v8 = vpack.c.b16 %v1838_v7, %v1837_v2  ;;  %v1606_v61 = vsel %vm1550_vm10, %v1514_v58, %v1578_v9  ;;  %v1649_v9 = vadd.f32 %v6978_v21, %v1617_v44 }
 0x20c   : > { %v1638_v13 = vmul.f32 %v6961_v3, %v1606_v61 }
 0x20d   : > { %v2375_v39 = vpop.permute.xlu0 %2374  ;;  %v1930_v25 = vshrl.u32 %v1855_v8, 16  ;;  %v1933_v56 = vshll.u32 %v1855_v8, 16  ;;  %v1734_v40 = vsel %vm1719_vm6, %v1649_v9, 0.0 }
 0x20e   : > { %v1515_v4 = vpop.f32.mrf.mxu1  ;;  %v2552_v32 = vsel %vm2448_vm8, %v2526_v24, %v2375_v39  ;;  %v1670_v36 = vadd.f32 %v6978_v21, %v1638_v13  ;;  %v1648_v13 = vadd.f32 %v6978_v21, %v1616_v37  ;;  %v1762_v17 = vpack.c.bf16 %v1734_v40, %v1734_v40  ;;  %v2341_v37 = vpop.permute.xlu2 %2340 }
 0x20f   : > { %v1516_v41 = vadd.f32 %v6952_v23, %v1515_v4  ;;  %2852 = vmatmul.bf16.gmra.mxu2 %v2552_v32  ;;  %v1932_v27 = vrot.slane %v1930_v25, 7  ;;  %v2316_v32 = vpop.permute.xlu1 %2315 }
 0x210   : > { %v1755_v55 = vsel %vm7018_vm1, %v1670_v36, 0.0  ;;  %v2496_v44 = vsel %vm2398_vm4, %v6741_v57, %v2316_v32 }
 0x211   : > { %vm1551_vm12 = vcmp.ge.f32.partialorder %v1516_v41, 0.0  ;;  %v1579_v49 = vmul.f32 0.01, %v1516_v41  ;;  %v1935_v50 = vor.u32 %v1933_v56, %v1932_v27  ;;  %v2012_v52 = vsel %vm6560_vm13, %v1932_v27, 0 }
 0x212   : > { %v2239_v2 = vrot.slane %v2012_v52, 1  ;;  %v2144_v11 = vshll.u32 %v2012_v52, 16  ;;  %v1783_v20 = vpack.c.bf16 %v1755_v55, %v1755_v55  ;;  %v1733_v56 = vsel %vm1719_vm6, %v1648_v13, 0.0 }
 0x213   : > { %v1607_v51 = vsel %vm1551_vm12, %v1516_v41, %v1579_v49  ;;  %v7030_v58 = vsel %vm6560_vm13, 0, %v1935_v50  ;;  %v1761_v52 = vpack.c.bf16 %v1733_v56, %v1733_v56 }
 0x214   : > { %v1639_v48 = vmul.f32 %v6961_v3, %v1607_v51  ;;  %2350 = vrot.lane.b32.xlu2 %v7030_v58, %s5934_s17  ;;  %v2238_v60 = vrot.slane %v7030_v58, 1  ;;  %v2139_v7 = vshll.u32 %v7030_v58, 16  ;;  %v2137_v61 = vshrl.u32 %v7030_v58, 16 }
 0x215   : > { %v2146_v25 = vrot.slane %v2144_v11, 1  ;;  %v1839_v41 = vunpack.c.l.b16 %v1783_v20  ;;  %v1818_v51 = vunpack.c.l.b16 %v1762_v17 }
 0x216   : > { %v1671_v45 = vadd.f32 %v6978_v21, %v1639_v48  ;;  %v7042_v8 = vsel %vm877_vm0, %v2238_v60, %v2239_v2  ;;  %v2141_v5 = vrot.slane %v2139_v7, 1  ;;  %v2528_v2 = vsel %vm2423_vm7, %v2496_v44, %v2341_v37 }
 0x217   : > { %2327 = vrot.lane.b32.xlu1 %v7042_v8, %s5933_s16  ;;  %5565 = vmatmul.msk.bf16.gmra.mxu3 %vm2398_vm4, %v7042_v8  ;;  %v1689_v7 = vadd.s32 12, %v6504_v19 }
 0x218   : > { %v1756_v39 = vsel %vm7018_vm1, %v1671_v45, 0.0  ;;  %v2142_v24 = vor.u32 %v2141_v5, %v2137_v61  ;;  %v1817_v5 = vunpack.c.l.b16 %v1761_v52  ;;  %vm8802_vm1 = vmmov %vm8797_vm9 }
 0x219   : > { %v1784_v4 = vpack.c.bf16 %v1756_v39, %v1756_v39  ;;  %vm1703_vm11 = vcmp.ge.s32.totalorder %v1689_v7, 0  ;;  %vm1717_vm15 = vcmp.lt.s32.totalorder %v1689_v7, 16 }
 0x21a   : > { %v7053_v36 = vsel %vm8797_vm9, %v2142_v24, %v2146_v25  ;;  %v1845_v40 = vpack.c.b16 %v1818_v51, %v1817_v5  ;;  %vm7076_vm2 = vmand %vm1703_vm11, %vm1717_vm15 }
 0x21b   : > { %v1840_v27 = vunpack.c.l.b16 %v1784_v4  ;;  %2386 = vrot.lane.b32.xlu0 %v7053_v36, %s5935_s0  ;;  %vm8806_vm11 = vmmov %vm8802_vm1 }
 0x21c   : > { %vm8807_vm15 = vmmov %vm8802_vm1 }
 0x21d   : > { %v1856_v38 = vpack.c.b16 %v1840_v27, %v1839_v41  ;;  %v1518_v49 = vpop.f32.mrf.mxu1 }
 0x21e   : > { %v1519_v50 = vadd.f32 %v6952_v23, %v1518_v49 }
 0x21f   : > { %v1937_v55 = vshrl.u32 %v1856_v38, 16  ;;  %v2377_v60 = vpop.permute.xlu0 %2376  ;;  %v1940_v45 = vshll.u32 %v1856_v38, 16 }
 0x220   : > { %vm1552_vm10 = vcmp.ge.f32.partialorder %v1519_v50, 0.0  ;;  %v1580_v48 = vmul.f32 0.01, %v1519_v50  ;;  %v2555_v9 = vsel %vm2448_vm8, %v2528_v2, %v2377_v60 }
 0x221   : > { %v1939_v11 = vrot.slane %v1937_v55, 7  ;;  %2857 = vmatmul.bf16.gmra.mxu2 %v2555_v9  ;;  %v1860_v55 = vshrl.u32 %v1845_v40, 16 }
 0x222   : > { %v1608_v61 = vsel %vm1552_vm10, %v1519_v50, %v1580_v48  ;;  %vm8805_vm10 = vmmov %vm8802_vm1 }
 0x223   : > { %v1640_v20 = vmul.f32 %v6961_v3, %v1608_v61  ;;  %v1942_v13 = vor.u32 %v1940_v45, %v1939_v11  ;;  %v2013_v39 = vsel %vm6560_vm13, %v1939_v11, 0  ;;  %v1862_v61 = vrot.slane %v1860_v55, 7 }
 0x224   : > { %v2242_v41 = vrot.slane %v2013_v39, 1  ;;  %v2156_v17 = vshll.u32 %v2013_v39, 16 }
 0x225   : > { %v1520_v24 = vpop.f32.mrf.mxu1  ;;  %v7068_v25 = vsel %vm6560_vm13, 0, %v1942_v13  ;;  %v1672_v56 = vadd.f32 %v6978_v21, %v1640_v20  ;;  %v2318_v20 = vpop.permute.xlu1 %2317  ;;  %v1863_v13 = vshll.u32 %v1845_v40, 16 }
 0x226   : > { %v1521_v4 = vadd.f32 %v6952_v23, %v1520_v24  ;;  %2352 = vrot.lane.b32.xlu2 %v7068_v25, %s5934_s17  ;;  %v2241_v32 = vrot.slane %v7068_v25, 1  ;;  %v2151_v27 = vshll.u32 %v7068_v25, 16  ;;  %v2149_v50 = vshrl.u32 %v7068_v25, 16 }
 0x227   : > { %v1757_v51 = vsel %vm7076_vm2, %v1672_v56, 0.0  ;;  %v2158_v2 = vrot.slane %v2156_v17, 1  ;;  %v2343_v17 = vpop.permute.xlu2 %2342 }
 0x228   : > { %vm1553_vm3 = vcmp.ge.f32.partialorder %v1521_v4, 0.0  ;;  %v1581_v38 = vmul.f32 0.01, %v1521_v4  ;;  %v7081_v49 = vsel %vm877_vm0, %v2241_v32, %v2242_v41  ;;  %v2153_v52 = vrot.slane %v2151_v27, 1 }
 0x229   : > { %2329 = vrot.lane.b32.xlu1 %v7081_v49, %s5933_s16  ;;  %5566 = vmatmul.msk.bf16.gmra.mxu3 %vm2398_vm4, %v7081_v49  ;;  %v1785_v11 = vpack.c.bf16 %v1757_v51, %v1757_v51  ;;  %v2499_v32 = vsel %vm2398_vm4, %v6794_v63, %v2318_v20 }
 0x22a   : > { %v1609_v37 = vsel %vm1553_vm3, %v1521_v4, %v1581_v38  ;;  %v2154_v60 = vor.u32 %v2153_v52, %v2149_v50  ;;  %v1865_v4 = vor.u32 %v1863_v13, %v1862_v61  ;;  %v2530_v52 = vsel %vm2423_vm7, %v2499_v32, %v2343_v17 }
 0x22b   : > { %v1641_v48 = vmul.f32 %v6961_v3, %v1609_v37  ;;  %v1841_v39 = vunpack.c.l.b16 %v1785_v11  ;;  %v1690_v37 = vadd.s32 13, %v6504_v19 }
 0x22c   : > { %v7093_v9 = vsel %vm8802_vm1, %v2154_v60, %v2158_v2  ;;  %v7105_v40 = vsel %vm6560_vm13, 0, %v1865_v4 }
 0x22d   : > { %v1673_v7 = vadd.f32 %v6978_v21, %v1641_v48  ;;  %2388 = vrot.lane.b32.xlu0 %v7093_v9, %s5935_s0  ;;  %vm1704_vm14 = vcmp.ge.s32.totalorder %v1690_v37, 0  ;;  %vm1718_vm5 = vcmp.lt.s32.totalorder %v1690_v37, 16 }
 0x22e   : > { %vm7127_vm6 = vmand %vm1704_vm14, %vm1718_vm5 }
 0x22f   : > { %v1758_v45 = vsel %vm7076_vm2, %v1673_v7, 0.0 }
 0x230   : > { %v1786_v5 = vpack.c.bf16 %v1758_v45, %v1758_v45  ;;  %v2019_v45 = vshll.u32 %v7105_v40, 16 }
 0x232   : > { %v1842_v24 = vunpack.c.l.b16 %v1786_v5  ;;  %v2021_v17 = vrot.slane %v2019_v45, 1 }
 0x234   : > { %v1523_v41 = vpop.f32.mrf.mxu1  ;;  %v1857_v27 = vpack.c.b16 %v1842_v24, %v1841_v39 }
 0x235   : > { %v1524_v56 = vadd.f32 %v6952_v23, %v1523_v41  ;;  %v7125_v41 = vsel %vm6560_vm13, %v1862_v61, 0  ;;  %v2017_v61 = vshrl.u32 %v7105_v40, 16 }
 0x236   : > { %v1944_v38 = vshrl.u32 %v1857_v27, 16  ;;  %v2379_v44 = vpop.permute.xlu0 %2378  ;;  %v1947_v48 = vshll.u32 %v1857_v27, 16 }
 0x237   : > { %vm1554_vm12 = vcmp.ge.f32.partialorder %v1524_v56, 0.0  ;;  %v1582_v50 = vmul.f32 0.01, %v1524_v56  ;;  %v2558_v55 = vsel %vm2448_vm8, %v2530_v52, %v2379_v44  ;;  %v2024_v52 = vshll.u32 %v7125_v41, 16 }
 0x238   : > { %v1946_v51 = vrot.slane %v1944_v38, 7  ;;  %2862 = vmatmul.bf16.gmra.mxu2 %v2558_v55 }
 0x239   : > { %v1610_v60 = vsel %vm1554_vm12, %v1524_v56, %v1582_v50  ;;  %v2026_v45 = vrot.slane %v2024_v52, 1 }
 0x23a   : > { %v1642_v2 = vmul.f32 %v6961_v3, %v1610_v60  ;;  %v1949_v7 = vor.u32 %v1947_v48, %v1946_v51  ;;  %v2014_v11 = vsel %vm6560_vm13, %v1946_v51, 0  ;;  %v2022_v60 = vor.u32 %v2021_v17, %v2017_v61 }
 0x23b   : > { %v2307_v39 = vrot.slane %v2014_v11, 1  ;;  %v2301_v32 = vshll.u32 %v2014_v11, 16 }
 0x23c   : > { %v1525_v5 = vpop.f32.mrf.mxu1  ;;  %v7115_v19 = vsel %vm6560_vm13, 0, %v1949_v7  ;;  %v1674_v4 = vadd.f32 %v6978_v21, %v1642_v2 }
 0x23d   : > { %v1526_v20 = vadd.f32 %v6952_v23, %v1525_v5  ;;  %2354 = vrot.lane.b32.xlu2 %v7115_v19, %s5934_s17  ;;  %v2306_v13 = vrot.slane %v7115_v19, 1  ;;  %v2296_v24 = vshll.u32 %v7115_v19, 16  ;;  %v2294_v38 = vshrl.u32 %v7115_v19, 16 }
 0x23e   : > { %v1759_v37 = vsel %vm7127_vm6, %v1674_v4, 0.0  ;;  %v2303_v48 = vrot.slane %v2301_v32, 1  ;;  %v2345_v32 = vpop.permute.xlu2 %2344 }
 0x23f   : > { %vm1555_vm9 = vcmp.ge.f32.partialorder %v1526_v20, 0.0  ;;  %v1583_v23 = vmul.f32 0.01, %v1526_v20  ;;  %v2308_v56 = vsel %vm877_vm0, %v2306_v13, %v2307_v39  ;;  %v2298_v50 = vrot.slane %v2296_v24, 1 }
 0x240   : > { %2331 = vrot.lane.b32.xlu1 %v2308_v56, %s5933_s16  ;;  %5567 = vmatmul.msk.bf16.gmra.mxu3 %vm2398_vm4, %v2308_v56  ;;  %v1787_v11 = vpack.c.bf16 %v1759_v37, %v1759_v37 }
 0x241   : > { %v1611_v44 = vsel %vm1555_vm9, %v1526_v20, %v1583_v23  ;;  %v2299_v51 = vor.u32 %v2298_v50, %v2294_v38  ;;  %v2320_v20 = vpop.permute.xlu1 %2319 }
 0x242   : > { %v1643_v55 = vmul.f32 %v6961_v3, %v1611_v44  ;;  %v2027_v3 = vsel %vm8806_vm11, %v2022_v60, %v2026_v45  ;;  %v1843_v39 = vunpack.c.l.b16 %v1787_v11 }
 0x243   : > { %v7142_v7 = vsel %vm8805_vm10, %v2299_v51, %v2303_v48 }
 0x244   : > { %v1675_v2 = vadd.f32 %v6978_v21, %v1643_v55  ;;  %2390 = vrot.lane.b32.xlu0 %v7142_v7, %s5935_s0  ;;  %v2502_v21 = vsel %vm2398_vm4, %v6854_v16, %v2320_v20  ;;  %v2209_v20 = vrot.slane %v7125_v41, 1 }
 0x245   : > { %v2532_v56 = vsel %vm2423_vm7, %v2502_v21, %v2345_v32 }
 0x246   : > { %v1760_v5 = vsel %vm7127_vm6, %v1675_v2, 0.0  ;;  %v2347_v21 = vpop.permute.xlu2 %2346 }
 0x247   : > { %v1788_v13 = vpack.c.bf16 %v1760_v5, %v1760_v5 }
 0x248   : > { %2160 = vrot.lane.b32.xlu1 %v2027_v3, %s5933_s16 }
 0x249   : > { %v1844_v24 = vunpack.c.l.b16 %v1788_v13  ;;  %v2322_v13 = vpop.permute.xlu1 %2321 }
 0x24b   : > { %v1858_v4 = vpack.c.b16 %v1844_v24, %v1843_v39  ;;  %v2505_v24 = vsel %vm2398_vm4, %v6898_v26, %v2322_v13 }
 0x24d   : > { %v2381_v23 = vpop.permute.xlu0 %2380  ;;  %v1951_v17 = vshrl.u32 %v1858_v4, 16  ;;  %v1954_v50 = vshll.u32 %v1858_v4, 16 }
 0x24e   : > { %v2561_v27 = vsel %vm2448_vm8, %v2532_v56, %v2381_v23 }
 0x24f   : > { %2867 = vmatmul.bf16.gmra.mxu2 %v2561_v27  ;;  %v1953_v38 = vrot.slane %v1951_v17, 7 }
 0x250   : > { %2162 = vrot.lane.b32.xlu1 %v6903_v31, %s5933_s16  ;;  %v2208_v31 = vrot.slane %v7105_v40, 1 }
 0x251   : > { %v1956_v44 = vor.u32 %v1954_v50, %v1953_v38  ;;  %v2015_v61 = vsel %vm6560_vm13, %v1953_v38, 0  ;;  %v5760_v50 = vld [vmem:[%s8722_s5 + $0x30] sm:$0xff] }
 0x252   : > { %v2366_v55 = vshll.u32 %v2015_v61, 16  ;;  %v2396_v48 = vrot.slane %v2015_v61, 1  ;;  %v2210_v39 = vsel %vm877_vm0, %v2208_v31, %v2209_v20  ;;  %v5754_v31 = vld [vmem:[%s8722_s5] sm:$0xff] }
 0x253   : > { %v2001_v52 = vsel %vm6560_vm13, 0, %v1956_v44 }
 0x254   : > { %2356 = vrot.lane.b32.xlu2 %v2001_v52, %s5934_s17  ;;  %v2361_v37 = vshll.u32 %v2001_v52, 16  ;;  %v2395_v51 = vrot.slane %v2001_v52, 1  ;;  %v2359_v60 = vshrl.u32 %v2001_v52, 16  ;;  %v2368_v5 = vrot.slane %v2366_v55, 1 }
 0x256   : > { %v2363_v2 = vrot.slane %v2361_v37, 1  ;;  %v2397_v11 = vsel %vm877_vm0, %v2395_v51, %v2396_v48 }
 0x257   : > { %5568 = vmatmul.msk.bf16.gmra.mxu3 %vm2398_vm4, %v2397_v11 }
 0x258   : > { %2164 = vrot.lane.b32.xlu1 %v6633_v35, %s5933_s16  ;;  %v2364_v45 = vor.u32 %v2363_v2, %v2359_v60  ;;  %v2534_v35 = vsel %vm2423_vm7, %v2505_v24, %v2347_v21  ;;  %v5756_v60 = vld [vmem:[%s8722_s5 + $0x10] sm:$0xff] }
 0x25a   : > { %v2369_v3 = vsel %vm8807_vm15, %v2364_v45, %v2368_v5 }
 0x25b   : > { %2392 = vrot.lane.b32.xlu0 %v2369_v3, %s5935_s0 }
 0x25c   : > { %2244 = vrot.lane.b32.xlu2 %v2210_v39, %s5934_s17 }
 0x25f   : > { %v2383_v4 = vpop.permute.xlu0 %2382 }
 0x260   : > { %2166 = vrot.lane.b32.xlu1 %v6685_v22, %s5933_s16  ;;  %v2564_v41 = vsel %vm2448_vm8, %v2534_v35, %v2383_v4  ;;  %v2324_v22 = vpop.permute.xlu1 %2323 }
 0x261   : > { %2872 = vmatmul.bf16.gmra.mxu2 %v2564_v41  ;;  %v2508_v32 = vsel %vm2398_vm4, %v6941_v15, %v2324_v22 }
 0x263   : > { %2269 = vrot.lane.b32.xlu0 %v6575_v42, %s5935_s0 }
 0x264   : > { %2246 = vrot.lane.b32.xlu2 %v6586_v34, %s5934_s17  ;;  %v2349_v34 = vpop.permute.xlu2 %2348  ;;  %v7215_v17 = vpop.f32.mrf.mxu2 }
 0x265   : > { %v2536_v23 = vsel %vm2423_vm7, %v2508_v32, %v2349_v34 }
 0x268   : > { %2168 = vrot.lane.b32.xlu1 %v6741_v57, %s5933_s16 }
 0x26b   : > { %2271 = vrot.lane.b32.xlu0 %v6608_v6, %s5935_s0 }
 0x26c   : > { %2248 = vrot.lane.b32.xlu2 %v6622_v54, %s5934_s17 }
 0x26e   : > { %v2351_v27 = vpop.permute.xlu2 %2350 }
 0x270   : > { %2170 = vrot.lane.b32.xlu1 %v6794_v63, %s5933_s16 }
 0x272   : > { %v2326_v63 = vpop.permute.xlu1 %2325 }
 0x273   : > { %2273 = vrot.lane.b32.xlu0 %v6655_v12, %s5935_s0 }
 0x274   : > { %2250 = vrot.lane.b32.xlu2 %v6669_v28, %s5934_s17 }
 0x276   : > { %v2385_v57 = vpop.permute.xlu0 %2384 }
 0x277   : > { %v2567_v56 = vsel %vm2448_vm8, %v2536_v23, %v2385_v57 }
 0x278   : > { %2172 = vrot.lane.b32.xlu1 %v6854_v16, %s5933_s16  ;;  %2877 = vmatmul.bf16.gmra.mxu2 %v2567_v56  ;;  %v2511_v16 = vsel %vm2398_vm4, %v6998_v0, %v2326_v63 }
 0x279   : > { %v2538_v38 = vsel %vm2423_vm7, %v2511_v16, %v2351_v27 }
 0x27b   : > { %2275 = vrot.lane.b32.xlu0 %v6721_v29, %s5935_s0 }
 0x27c   : > { %2252 = vrot.lane.b32.xlu2 %v6731_v47, %s5934_s17 }
 0x280   : > { %2174 = vrot.lane.b32.xlu1 %v6898_v26, %s5933_s16  ;;  %v2353_v52 = vpop.permute.xlu2 %2352 }
 0x283   : > { %2277 = vrot.lane.b32.xlu0 %v6761_v30, %s5935_s0 }
 0x284   : > { %2254 = vrot.lane.b32.xlu2 %v6778_v10, %s5934_s17 }
 0x288   : > { %2176 = vrot.lane.b32.xlu1 %v6941_v15, %s5933_s16  ;;  %v5761_v15 = vld [vmem:[%s8722_s5 + $0x38] sm:$0xff] }
 0x289   : > { %2765 = vmatpush.bf16.msrb.mxu1 %v5761_v15  ;;  %v2328_v44 = vpop.permute.xlu1 %2327 }
 0x28b   : > { %2279 = vrot.lane.b32.xlu0 %v6825_v53, %s5935_s0 }
 0x28c   : > { %2256 = vrot.lane.b32.xlu2 %v6838_v46, %s5934_s17  ;;  %v7230_v46 = vpop.f32.mrf.mxu2 }
 0x28d   : > { %v2387_v26 = vpop.permute.xlu0 %2386  ;;  %2766 = vmatpush.bf16.msrb.mxu1 %v5760_v50 }
 0x28e   : > { %v2570_v10 = vsel %vm2448_vm8, %v2538_v38, %v2387_v26 }
 0x28f   : > { %2882 = vmatmul.bf16.gmra.mxu2 %v2570_v10 }
 0x290   : > { %2178 = vrot.lane.b32.xlu1 %v6998_v0, %s5933_s16  ;;  %v2514_v0 = vsel %vm2398_vm4, %v7053_v36, %v2328_v44 }
 0x291   : > { %v2540_v55 = vsel %vm2423_vm7, %v2514_v0, %v2353_v52 }
 0x293   : > { %2281 = vrot.lane.b32.xlu0 %v6877_v59, %s5935_s0 }
 0x294   : > { %2258 = vrot.lane.b32.xlu2 %v6888_v14, %s5934_s17  ;;  %v5759_v14 = vld [vmem:[%s8722_s5 + $0x28] sm:$0xff]  ;;  %v7246_v61 = vpop.f32.mrf.mxu2 }
 0x295   : > { %2767 = vmatpush.bf16.msrb.mxu1 %v5759_v14 }
 0x298   : > { %2180 = vrot.lane.b32.xlu1 %v7053_v36, %s5933_s16  ;;  %v5757_v36 = vld [vmem:[%s8722_s5 + $0x18] sm:$0xff] }
 0x29b   : > { %2283 = vrot.lane.b32.xlu0 %v6916_v62, %s5935_s0  ;;  %v2330_v11 = vpop.permute.xlu1 %2329 }
 0x29c   : > { %2260 = vrot.lane.b32.xlu2 %v6929_v1, %s5934_s17  ;;  %v5758_v1 = vld [vmem:[%s8722_s5 + $0x20] sm:$0xff]  ;;  %v7262_v48 = vpop.f32.mrf.mxu2  ;;  %v2517_v45 = vsel %vm2398_vm4, %v7093_v9, %v2330_v11 }
 0x29d   : > { %2768 = vmatpush.bf16.msrb.mxu1 %v5758_v1 }
 0x29f   : > { %v2389_v37 = vpop.permute.xlu0 %2388 }
 0x2a0   : > { %2182 = vrot.lane.b32.xlu1 %v7093_v9, %s5933_s16  ;;  %v2573_v51 = vsel %vm2448_vm8, %v2540_v55, %v2389_v37 }
 0x2a1   : > { %2887 = vmatmul.bf16.gmra.mxu2 %v2573_v51  ;;  %2769 = vmatpush.bf16.msrb.mxu1 %v5757_v36 }
 0x2a3   : > { %2285 = vrot.lane.b32.xlu0 %v6968_v43, %s5935_s0 }
 0x2a4   : > { %2262 = vrot.lane.b32.xlu2 %v6986_v33, %s5934_s17  ;;  %v5755_v33 = vld [vmem:[%s8722_s5 + $0x8] sm:$0xff]  ;;  %v7274_v2 = vpop.f32.mrf.mxu2 }
 0x2a5   : > { %2770 = vmatpush.bf16.msrb.mxu1 %v5756_v60 }
 0x2a9   : > { %2771 = vmatpush.bf16.msrb.mxu1 %v5755_v33 }
 0x2ab   : > { %2287 = vrot.lane.b32.xlu0 %v7030_v58, %s5935_s0 }
 0x2ac   : > { %2264 = vrot.lane.b32.xlu2 %v7042_v8, %s5934_s17  ;;  %v2355_v8 = vpop.permute.xlu2 %2354  ;;  %v7287_v3 = vpop.f32.mrf.mxu2 }
 0x2ad   : > { %2772 = vmatpush.bf16.msrb.mxu1 %v5754_v31  ;;  %v2542_v20 = vsel %vm2423_vm7, %v2517_v45, %v2355_v8 }
 0x2b2   : > { %v2332_v24 = vpop.permute.xlu1 %2331 }
 0x2b3   : > { %2289 = vrot.lane.b32.xlu0 %v7068_v25, %s5935_s0 }
 0x2b4   : > { %2266 = vrot.lane.b32.xlu2 %v7081_v49, %s5934_s17  ;;  %v7291_v39 = vpop.f32.mrf.mxu2  ;;  %v2357_v9 = vpop.permute.xlu2 %2356  ;;  %v2520_v49 = vsel %vm2398_vm4, %v7142_v7, %v2332_v24 }
 0x2b5   : > { %v2544_v35 = vsel %vm2423_vm7, %v2520_v49, %v2357_v9 }
 0x2b6   : > { %v2391_v5 = vpop.permute.xlu0 %2390 }
 0x2b7   : > { %v2576_v13 = vsel %vm2448_vm8, %v2542_v20, %v2391_v5 }
 0x2b8   : > { %2892 = vmatmul.bf16.gmra.mxu2 %v2576_v13 }
 0x2ba   : > { %v2161_v22 = vpop.permute.xlu1 %2160 }
 0x2bb   : > { %2291 = vrot.lane.b32.xlu0 %v7115_v19, %s5935_s0  ;;  %v2400_v32 = vsel %vm2398_vm4, %v7105_v40, %v2161_v22 }
 0x2bc   : > { %v7295_v21 = vpop.f32.mrf.mxu2  ;;  %v2245_v19 = vpop.permute.xlu2 %2244 }
 0x2bd   : > { %v2425_v23 = vsel %vm2423_vm7, %v2400_v32, %v2245_v19 }
 0x2c2   : > { %v2163_v63 = vpop.permute.xlu1 %2162 }
 0x2c3   : > { %v2402_v16 = vsel %vm2398_vm4, %v6575_v42, %v2163_v63 }
 0x2c4   : > { %v7301_v34 = vpop.f32.mrf.mxu2  ;;  %v2247_v40 = vpop.permute.xlu2 %2246 }
 0x2c5   : > { %v2427_v26 = vsel %vm2423_vm7, %v2402_v16, %v2247_v40 }
 0x2ca   : > { %v2165_v15 = vpop.permute.xlu1 %2164 }
 0x2cc   : > { %v7305_v56 = vpop.f32.mrf.mxu2  ;;  %v2249_v42 = vpop.permute.xlu2 %2248 }
 0x2cd   : > { %v2393_v4 = vpop.permute.xlu0 %2392 }
 0x2ce   : > { %v2579_v41 = vsel %vm2448_vm8, %v2544_v35, %v2393_v4 }
 0x2cf   : > { %2897 = vmatmul.bf16.gmra.mxu2 %v2579_v41 }
 0x2d2   : > { %v2167_v37 = vpop.permute.xlu1 %2166 }
 0x2d4   : > { %v7312_v38 = vpop.f32.mrf.mxu2 }
 0x2d5   : > { %v2270_v57 = vpop.permute.xlu0 %2269 }
 0x2d6   : > { %v2450_v7 = vsel %vm2448_vm8, %v2425_v23, %v2270_v57 }
 0x2d7   : > { %2773 = vmatmul.bf16.vlgmr.msrb.gmra.mxu1 %v2450_v7  ;;  %v5787_v7 = vld [vmem:[%s8726_s9 + $0x78] sm:$0xff] }
 0x2d8   : > { %4100 = vmatpush.bf16.msra.mxu1 %v5787_v7 }
 0x2da   : > { %v2169_v33 = vpop.permute.xlu1 %2168 }
 0x2db   : > { %v2408_v11 = vsel %vm2398_vm4, %v6721_v29, %v2169_v33  ;;  %v5786_v33 = vld [vmem:[%s8726_s9 + $0x70] sm:$0xff] }
 0x2dc   : > { %v7317_v50 = vpop.f32.mrf.mxu2  ;;  %4101 = vmatpush.bf16.msra.mxu1 %v5786_v33 }
 0x2dd   : > { %v2272_v27 = vpop.permute.xlu0 %2271 }
 0x2de   : > { %v2453_v10 = vsel %vm2448_vm8, %v2427_v26, %v2272_v27 }
 0x2df   : > { %5557 = vmatmul.msk.bf16.vlgmr.msrb.gmra.mxu2 %vm2398_vm4, %v6622_v54  ;;  %v2404_v54 = vsel %vm2398_vm4, %v6608_v6, %v2165_v15  ;;  %v2251_v6 = vpop.permute.xlu2 %2250 }
 0x2e0   : > { %v2429_v14 = vsel %vm2423_vm7, %v2404_v54, %v2249_v42 }
 0x2e2   : > { %v2171_v20 = vpop.permute.xlu1 %2170 }
 0x2e3   : > { %v2410_v13 = vsel %vm2398_vm4, %v6761_v30, %v2171_v20 }
 0x2e4   : > { %v7323_v52 = vpop.f32.mrf.mxu2 }
 0x2e5   : > { %v2274_v44 = vpop.permute.xlu0 %2273 }
 0x2e6   : > { %v2456_v0 = vsel %vm2448_vm8, %v2429_v14, %v2274_v44 }
 0x2e7   : > { %2778 = vmatmul.bf16.gmra.mxu1 %v2453_v10 }
 0x2ea   : > { %v2173_v41 = vpop.permute.xlu1 %2172 }
 0x2eb   : > { %v2412_v22 = vsel %vm2398_vm4, %v6825_v53, %v2173_v41  ;;  %v7397_v41 = vstv %s5569_s23 }
 0x2ec   : > { %v7329_v55 = vpop.f32.mrf.mxu2  ;;  %vm3113_vm3 = vcmp.ge.s32.totalorder %v7397_v41, 0  ;;  %vm3125_vm1 = vcmp.lt.s32.totalorder %v7397_v41, 16 }
 0x2ed   : > { %v2276_v51 = vpop.permute.xlu0 %2275  ;;  %vm7409_vm12 = vmand %vm3113_vm3, %vm3125_vm1  ;;  %vm8812_vm1 = vsmask.f32 7424 }
 0x2ef   : > { %5558 = vmatmul.msk.bf16.gmra.mxu2 %vm2398_vm4, %v6669_v28  ;;  %v2406_v28 = vsel %vm2398_vm4, %v6655_v12, %v2167_v37 }
 0x2f0   : > { %v2431_v1 = vsel %vm2423_vm7, %v2406_v28, %v2251_v6 }
 0x2f1   : > { %v2459_v36 = vsel %vm2448_vm8, %v2431_v1, %v2276_v51  ;;  %v7377_v51 = vld [vmem:[%s8723_s6] ss:$0 sm:$0xff] }
 0x2f2   : > { %v2175_v63 = vpop.permute.xlu1 %2174 }
 0x2f3   : > { %v2414_v53 = vsel %vm2398_vm4, %v6877_v59, %v2175_v63 }
 0x2f5   : > { %v2278_v31 = vpop.permute.xlu0 %2277 }
 0x2f7   : > { %2783 = vmatmul.bf16.gmra.mxu1 %v2456_v0 }
 0x2fa   : > { %v2177_v54 = vpop.permute.xlu1 %2176 }
 0x2fb   : > { %v7333_v60 = vpop.f32.mrf.mxu2  ;;  %v2416_v44 = vsel %vm2398_vm4, %v6916_v62, %v2177_v54 }
 0x2fd   : > { %v2280_v24 = vpop.permute.xlu0 %2279 }
 0x2ff   : > { %5559 = vmatmul.msk.bf16.gmra.mxu2 %vm2398_vm4, %v6731_v47  ;;  %v2253_v47 = vpop.permute.xlu2 %2252 }
 0x300   : > { %v2433_v12 = vsel %vm2423_vm7, %v2408_v11, %v2253_v47 }
 0x301   : > { %v2462_v8 = vsel %vm2448_vm8, %v2433_v12, %v2278_v31 }
 0x303   : > { %v7337_v45 = vpop.f32.mrf.mxu2 }
 0x305   : > { %v2282_v32 = vpop.permute.xlu0 %2281 }
 0x307   : > { %2788 = vmatmul.bf16.gmra.mxu1 %v2459_v36  ;;  %v2255_v9 = vpop.permute.xlu2 %2254  ;;  %v2179_v36 = vpop.permute.xlu1 %2178 }
 0x308   : > { %v2435_v49 = vsel %vm2423_vm7, %v2410_v13, %v2255_v9  ;;  %v2418_v31 = vsel %vm2398_vm4, %v6968_v43, %v2179_v36  ;;  %v7391_v13 = vld [vmem:[%s8724_s7] ss:$0 sm:$0xff] }
 0x309   : > { %v2465_v4 = vsel %vm2448_vm8, %v2435_v49, %v2280_v24 }
 0x30d   : > { %v2284_v27 = vpop.permute.xlu0 %2283 }
 0x30f   : > { %v2257_v19 = vpop.permute.xlu2 %2256 }
 0x310   : > { %v2437_v57 = vsel %vm2423_vm7, %v2412_v22, %v2257_v19 }
 0x311   : > { %v2468_v30 = vsel %vm2448_vm8, %v2437_v57, %v2282_v32  ;;  %v7403_v32 = vld [vmem:[%s8725_s8] ss:$0 sm:$0xff] }
 0x312   : > { %v7341_v5 = vpop.f32.mrf.mxu2 }
 0x315   : > { %v2286_v14 = vpop.permute.xlu0 %2285 }
 0x317   : > { %2793 = vmatmul.bf16.gmra.mxu1 %v2462_v8  ;;  %v2259_v40 = vpop.permute.xlu2 %2258 }
 0x318   : > { %v2439_v26 = vsel %vm2423_vm7, %v2414_v53, %v2259_v40 }
 0x319   : > { %v2471_v10 = vsel %vm2448_vm8, %v2439_v26, %v2284_v27  ;;  %v2181_v26 = vpop.permute.xlu1 %2180 }
 0x31a   : > { %v7346_v29 = vpop.f32.mrf.mxu2 }
 0x31d   : > { %v2288_v12 = vpop.permute.xlu0 %2287 }
 0x31f   : > { %v2261_v0 = vpop.permute.xlu2 %2260 }
 0x320   : > { %v2441_v59 = vsel %vm2423_vm7, %v2416_v44, %v2261_v0  ;;  %v2420_v44 = vsel %vm2398_vm4, %v7030_v58, %v2181_v26 }
 0x321   : > { %v2474_v28 = vsel %vm2448_vm8, %v2441_v59, %v2286_v14 }
 0x324   : > { %v7349_v35 = vpop.f32.mrf.mxu2 }
 0x327   : > { %2798 = vmatmul.bf16.gmra.mxu1 %v2465_v4  ;;  %v2263_v20 = vpop.permute.xlu2 %2262 }
 0x32c   : > { %v7355_v23 = vpop.f32.mrf.mxu2 }
 0x32f   : > { %v2265_v59 = vpop.permute.xlu2 %2264 }
 0x337   : > { %2803 = vmatmul.bf16.gmra.mxu1 %v2468_v30 }
 0x33b   : > { %v7360_v16 = vpop.f32.mrf.mxu2 }
 0x343   : > { %v7366_v15 = vpop.f32.mrf.mxu2 }
 0x347   : > { %2808 = vmatmul.bf16.gmra.mxu1 %v2471_v10 }
 0x352   : > { %v7370_v42 = vpop.f32.mrf.mxu2 }
 0x354   : > { %v2774_v37 = vpop.f32.mrf.mxu1 }
 0x355   : > { %v2775_v62 = vadd.f32 %v7377_v51, %v2774_v37 }
 0x357   : > { %2813 = vmatmul.bf16.gmra.mxu1 %v2474_v28  ;;  %v2844_v11 = vadd.f32 %v7215_v17, %v2775_v62  ;;  %v2443_v17 = vsel %vm2423_vm7, %v2418_v31, %v2263_v20  ;;  %v2290_v28 = vpop.permute.xlu0 %2289  ;;  %v7424_v31 = vpop.f32.mrf.mxu3 }
 0x358   : > { %v2477_v4 = vsel %vm2448_vm8, %v2443_v17, %v2288_v12  ;;  %v5779_v12 = vld [vmem:[%s8726_s9 + $0x38] sm:$0xff] }
 0x359   : > { %4041 = vmatpush.bf16.msrb.mxu3 %v5779_v12 }
 0x35a   : > { %v7379_v6 = vpop.f32.mrf.mxu2 }
 0x35c   : > { %v2776_v1 = vpop.f32.mrf.mxu1 }
 0x35d   : > { %v2777_v9 = vadd.f32 %v7377_v51, %v2776_v1 }
 0x35f   : > { %v2846_v19 = vadd.f32 %v7230_v46, %v2777_v9 }
 0x362   : > { %v2912_v47 = vpop.f32.mrf.mxu2 }
 0x363   : > { %v2913_v8 = vadd.f32 %v2912_v47, %v2844_v11  ;;  %v2445_v11 = vsel %vm2423_vm7, %v2420_v44, %v2265_v59  ;;  %v2292_v44 = vpop.permute.xlu0 %2291 }
 0x364   : > { %v2779_v24 = vpop.f32.mrf.mxu1  ;;  %v2480_v20 = vsel %vm2448_vm8, %v2445_v11, %v2290_v28  ;;  %v3103_v11 = vadd.s32 2, %v7397_v41 }
 0x365   : > { %vm2972_vm2 = vcmp.ge.f32.partialorder %v2913_v8, 0.0  ;;  %v2996_v49 = vmul.f32 0.01, %v2913_v8  ;;  %v2780_v27 = vadd.f32 %v7377_v51, %v2779_v24 }
 0x366   : > { %vm3127_vm3 = vcmp.lt.s32.totalorder %v3103_v11, 16 }
 0x367   : > { %v3020_v43 = vsel %vm2972_vm2, %v2913_v8, %v2996_v49  ;;  %2818 = vmatmul.bf16.gmra.mxu1 %v2477_v4  ;;  %v2849_v14 = vadd.f32 %v7246_v61, %v2780_v27  ;;  %v3102_v8 = vadd.s32 1, %v7397_v41  ;;  %vm3115_vm2 = vcmp.ge.s32.totalorder %v3103_v11, 0 }
 0x368   : > { %v3048_v22 = vmul.f32 %v7391_v13, %v3020_v43 }
 0x369   : > { %vm3114_vm6 = vcmp.ge.s32.totalorder %v3102_v8, 0  ;;  %vm3126_vm9 = vcmp.lt.s32.totalorder %v3102_v8, 16 }
 0x36a   : > { %v2914_v57 = vpop.f32.mrf.mxu2  ;;  %v3076_v7 = vadd.f32 %v7403_v32, %v3048_v22  ;;  %vm7435_vm10 = vmand %vm3114_vm6, %vm3126_vm9 }
 0x36b   : > { %v2915_v30 = vadd.f32 %v2914_v57, %v2846_v19  ;;  %v2183_v19 = vpop.permute.xlu1 %2182 }
 0x36c   : > { %v2781_v63 = vpop.f32.mrf.mxu1  ;;  %v3149_v46 = vsel %vm7409_vm12, %v3076_v7, 0.0 }
 0x36d   : > { %vm2973_vm14 = vcmp.ge.f32.partialorder %v2915_v30, 0.0  ;;  %v2997_v40 = vmul.f32 0.01, %v2915_v30  ;;  %v3173_v1 = vpack.c.bf16 %v3149_v46, %v3149_v46  ;;  %v2782_v58 = vadd.f32 %v7377_v51, %v2781_v63  ;;  %v5785_v46 = vld [vmem:[%s8726_s9 + $0x68] sm:$0xff] }
 0x36e   : > { %4102 = vmatpush.bf16.msra.mxu1 %v5785_v46 }
 0x36f   : > { %v3021_v10 = vsel %vm2973_vm14, %v2915_v30, %v2997_v40  ;;  %v3221_v24 = vunpack.c.l.b16 %v3173_v1  ;;  %v2851_v4 = vadd.f32 %v7262_v48, %v2782_v58  ;;  %v2422_v48 = vsel %vm2398_vm4, %v7068_v25, %v2183_v19 }
 0x370   : > { %v3049_v54 = vmul.f32 %v7391_v13, %v3021_v10 }
 0x372   : > { %v3077_v0 = vadd.f32 %v7403_v32, %v3049_v54  ;;  %v2917_v37 = vpop.f32.mrf.mxu2  ;;  %v7445_v54 = vpop.f32.mrf.mxu3 }
 0x373   : > { %v2918_v62 = vadd.f32 %v2917_v37, %v2849_v14 }
 0x374   : > { %v3150_v36 = vsel %vm7409_vm12, %v3077_v0, 0.0  ;;  %v2784_v33 = vpop.f32.mrf.mxu1  ;;  %v2267_v0 = vpop.permute.xlu2 %2266  ;;  %vm7488_vm12 = vmand %vm3115_vm2, %vm3127_vm3 }
 0x375   : > { %v3174_v47 = vpack.c.bf16 %v3150_v36, %v3150_v36  ;;  %vm2974_vm5 = vcmp.ge.f32.partialorder %v2918_v62, 0.0  ;;  %v2998_v61 = vmul.f32 0.01, %v2918_v62  ;;  %v2785_v27 = vadd.f32 %v7377_v51, %v2784_v33  ;;  %vm8817_vm2 = vmmov %vm8812_vm1 }
 0x377   : > { %v3222_v9 = vunpack.c.l.b16 %v3174_v47  ;;  %v3022_v49 = vsel %vm2974_vm5, %v2918_v62, %v2998_v61  ;;  %2823 = vmatmul.bf16.gmra.mxu1 %v2480_v20  ;;  %v2854_v25 = vadd.f32 %v7274_v2, %v2785_v27  ;;  %v2447_v62 = vsel %vm2423_vm7, %v2422_v48, %v2267_v0  ;;  %v5789_v2 = vld [vmem:[%s8726_s9 + $0x88] sm:$0xff] }
 0x378   : > { %v3050_v17 = vmul.f32 %v7391_v13, %v3022_v49  ;;  %v2483_v58 = vsel %vm2448_vm8, %v2447_v62, %v2292_v44  ;;  %4165 = vmatpush.bf16.msra.mxu2 %v5789_v2 }
 0x379   : > { %v3245_v43 = vpack.c.b16 %v3222_v9, %v3221_v24 }
 0x37a   : > { %v2919_v22 = vpop.f32.mrf.mxu2  ;;  %v3078_v7 = vadd.f32 %v7403_v32, %v3050_v17  ;;  %v7478_v27 = vpop.f32.mrf.mxu3 }
 0x37b   : > { %v2920_v57 = vadd.f32 %v2919_v22, %v2851_v4  ;;  %v3258_v30 = vshrl.u32 %v3245_v43, 16  ;;  %v3261_v10 = vshll.u32 %v3245_v43, 16 }
 0x37c   : > { %v2786_v63 = vpop.f32.mrf.mxu1  ;;  %v3151_v37 = vsel %vm7435_vm10, %v3078_v7, 0.0 }
 0x37d   : > { %vm2975_vm11 = vcmp.ge.f32.partialorder %v2920_v57, 0.0  ;;  %v2999_v40 = vmul.f32 0.01, %v2920_v57  ;;  %v3260_v26 = vrot.slane %v3258_v30, 7  ;;  %v3175_v61 = vpack.c.bf16 %v3151_v37, %v3151_v37 }
 0x37e   : > { %v2787_v9 = vadd.f32 %v7377_v51, %v2786_v63  ;;  %v5788_v63 = vld [vmem:[%s8726_s9 + $0x80] sm:$0xff] }
 0x37f   : > { %v3023_v14 = vsel %vm2975_vm11, %v2920_v57, %v2999_v40  ;;  %v3263_v28 = vor.u32 %v3261_v10, %v3260_v26  ;;  %v3377_v1 = vsel %vm6560_vm13, %v3260_v26, 0  ;;  %v5778_v57 = vld [vmem:[%s8726_s9 + $0x30] sm:$0xff]  ;;  %v3223_v40 = vunpack.c.l.b16 %v3175_v61  ;;  %4166 = vmatpush.bf16.msra.mxu2 %v5788_v63 }
 0x380   : > { %v3051_v59 = vmul.f32 %v7391_v13, %v3023_v14  ;;  %v3550_v17 = vrot.slane %v3377_v1, 1  ;;  %v3397_v4 = vshll.u32 %v3377_v1, 16  ;;  %4042 = vmatpush.bf16.msrb.mxu3 %v5778_v57  ;;  %v2856_v37 = vadd.f32 %v7287_v3, %v2787_v9 }
 0x381   : > { %v7458_v47 = vsel %vm6560_vm13, 0, %v3263_v28  ;;  %v3104_v3 = vadd.s32 3, %v7397_v41 }
 0x382   : > { %v3079_v36 = vadd.f32 %v7403_v32, %v3051_v59  ;;  %v2922_v33 = vpop.f32.mrf.mxu2  ;;  %v3549_v8 = vrot.slane %v7458_v47, 1  ;;  %v3392_v20 = vshll.u32 %v7458_v47, 16  ;;  %v3390_v7 = vshrl.u32 %v7458_v47, 16 }
 0x383   : > { %v2923_v12 = vadd.f32 %v2922_v33, %v2854_v25  ;;  %v3399_v14 = vrot.slane %v3397_v4, 1  ;;  %v7500_v4 = vpop.f32.mrf.mxu3  ;;  %vm3116_vm6 = vcmp.ge.s32.totalorder %v3104_v3, 0  ;;  %vm3128_vm9 = vcmp.lt.s32.totalorder %v3104_v3, 16 }
 0x384   : > { %v3152_v24 = vsel %vm7435_vm10, %v3079_v36, 0.0  ;;  %v2789_v49 = vpop.f32.mrf.mxu1  ;;  %v3551_v30 = vsel %vm877_vm0, %v3549_v8, %v3550_v17  ;;  %v3394_v53 = vrot.slane %v3392_v20, 1  ;;  %vm7514_vm10 = vmand %vm3116_vm6, %vm3128_vm9 }
 0x385   : > { %v3176_v43 = vpack.c.bf16 %v3152_v24, %v3152_v24  ;;  %vm2976_vm15 = vcmp.ge.f32.partialorder %v2923_v12, 0.0  ;;  %v3000_v22 = vmul.f32 0.01, %v2923_v12  ;;  %v2790_v19 = vadd.f32 %v7377_v51, %v2789_v49  ;;  %3579 = vrot.lane.b32.xlu2 %v3551_v30, %s5934_s17 }
 0x386   : > { %v3395_v44 = vor.u32 %v3394_v53, %v3390_v7 }
 0x387   : > { %v3224_v48 = vunpack.c.l.b16 %v3176_v43  ;;  %v3024_v26 = vsel %vm2976_vm15, %v2923_v12, %v3000_v22  ;;  %v2859_v10 = vadd.f32 %v7291_v39, %v2790_v19  ;;  %2828 = vmatmul.bf16.gmra.mxu1 %v2483_v58 }
 0x388   : > { %v3052_v46 = vmul.f32 %v7391_v13, %v3024_v26  ;;  %v3400_v25 = vsel %vm8812_vm1, %v3395_v44, %v3399_v14 }
 0x389   : > { %v2928_v0 = vadd.f32 %v7424_v31, %v2859_v10  ;;  %v3246_v59 = vpack.c.b16 %v3224_v48, %v3223_v40  ;;  %3509 = vrot.lane.b32.xlu1 %v3400_v25, %s5933_s16 }
 0x38a   : > { %v3080_v28 = vadd.f32 %v7403_v32, %v3052_v46  ;;  %v2924_v39 = vpop.f32.mrf.mxu2 }
 0x38b   : > { %vm2978_vm14 = vcmp.ge.f32.partialorder %v2928_v0, 0.0  ;;  %v3002_v62 = vmul.f32 0.01, %v2928_v0  ;;  %v2925_v36 = vadd.f32 %v2924_v39, %v2856_v37  ;;  %v3265_v33 = vshrl.u32 %v3246_v59, 16  ;;  %v5777_v37 = vld [vmem:[%s8726_s9 + $0x28] sm:$0xff] }
 0x38c   : > { %v2791_v31 = vpop.f32.mrf.mxu1  ;;  %v3153_v61 = vsel %vm7488_vm12, %v3080_v28, 0.0  ;;  %v3268_v8 = vshll.u32 %v3246_v59, 16  ;;  %4043 = vmatpush.bf16.msrb.mxu3 %v5777_v37 }
 0x38d   : > { %v3026_v58 = vsel %vm2978_vm14, %v2928_v0, %v3002_v62  ;;  %vm2977_vm5 = vcmp.ge.f32.partialorder %v2925_v36, 0.0  ;;  %v3001_v2 = vmul.f32 0.01, %v2925_v36  ;;  %v2792_v11 = vadd.f32 %v7377_v51, %v2791_v31  ;;  %v5784_v0 = vld [vmem:[%s8726_s9 + $0x60] sm:$0xff] }
 0x38e   : > { %v3267_v12 = vrot.slane %v3265_v33, 7  ;;  %v3054_v20 = vmul.f32 %v7391_v13, %v3026_v58  ;;  %v3177_v43 = vpack.c.bf16 %v3153_v61, %v3153_v61  ;;  %4103 = vmatpush.bf16.msra.mxu1 %v5784_v0  ;;  %v2937_v58 = vpop.f32.mrf.mxu3 }
 0x38f   : > { %v3025_v24 = vsel %vm2977_vm5, %v2925_v36, %v3001_v2  ;;  %v2861_v49 = vadd.f32 %v7295_v21, %v2792_v11  ;;  %vm8820_vm5 = vmmov %vm8817_vm2 }
 0x390   : > { %v3053_v9 = vmul.f32 %v7391_v13, %v3025_v24  ;;  %v3270_v17 = vor.u32 %v3268_v8, %v3267_v12  ;;  %v3378_v22 = vsel %vm6560_vm13, %v3267_v12, 0  ;;  %v3082_v7 = vadd.f32 %v7403_v32, %v3054_v20 }
 0x391   : > { %v2930_v57 = vadd.f32 %v7445_v54, %v2861_v49  ;;  %v3553_v53 = vrot.slane %v3378_v22, 1  ;;  %v3225_v10 = vunpack.c.l.b16 %v3177_v43  ;;  %v3409_v39 = vshll.u32 %v3378_v22, 16 }
 0x392   : > { %v3081_v19 = vadd.f32 %v7403_v32, %v3053_v9  ;;  %v7508_v30 = vsel %vm6560_vm13, 0, %v3270_v17  ;;  %v3155_v1 = vsel %vm7514_vm10, %v3082_v7, 0.0  ;;  %v3105_v12 = vadd.s32 4, %v7397_v41 }
 0x393   : > { %3600 = vrot.lane.b32.xlu0 %v7508_v30, %s5935_s0  ;;  %v3552_v21 = vrot.slane %v7508_v30, 1  ;;  %vm2979_vm11 = vcmp.ge.f32.partialorder %v2930_v57, 0.0  ;;  %v3003_v54 = vmul.f32 0.01, %v2930_v57  ;;  %v3404_v26 = vshll.u32 %v7508_v30, 16 }
 0x394   : > { %v3154_v40 = vsel %vm7488_vm12, %v3081_v19, 0.0  ;;  %v2794_v48 = vpop.f32.mrf.mxu1  ;;  %v3402_v28 = vshrl.u32 %v7508_v30, 16  ;;  %v3179_v11 = vpack.c.bf16 %v3155_v1, %v3155_v1  ;;  %v3411_v8 = vrot.slane %v3409_v39, 1 }
 0x395   : > { %v3178_v46 = vpack.c.bf16 %v3154_v40, %v3154_v40  ;;  %v2795_v44 = vadd.f32 %v7377_v51, %v2794_v48  ;;  %v7523_v14 = vsel %vm877_vm0, %v3552_v21, %v3553_v53  ;;  %v3027_v59 = vsel %vm2979_vm11, %v2930_v57, %v3003_v54 }
 0x396   : > { %3636 = vrot.lane.b32.xlu1 %v7523_v14, %s5933_s16  ;;  %v3406_v25 = vrot.slane %v3404_v26, 1  ;;  %v3055_v36 = vmul.f32 %v7391_v13, %v3027_v59  ;;  %v3227_v57 = vunpack.c.l.b16 %v3179_v11  ;;  %vm3117_vm3 = vcmp.ge.s32.totalorder %v3105_v12, 0  ;;  %v2939_v59 = vpop.f32.mrf.mxu3 }
 0x397   : > { %v3226_v62 = vunpack.c.l.b16 %v3178_v46  ;;  %v2864_v33 = vadd.f32 %v7301_v34, %v2795_v44  ;;  %vm3129_vm1 = vcmp.lt.s32.totalorder %v3105_v12, 16 }
 0x398   : > { %v3407_v31 = vor.u32 %v3406_v25, %v3402_v28  ;;  %v3083_v2 = vadd.f32 %v7403_v32, %v3055_v36  ;;  %vm7559_vm12 = vmand %vm3117_vm3, %vm3129_vm1 }
 0x399   : > { %v3247_v3 = vpack.c.b16 %v3226_v62, %v3225_v10  ;;  %v2933_v61 = vadd.f32 %v7478_v27, %v2864_v33 }
 0x39a   : > { %v3156_v20 = vsel %vm7514_vm10, %v3083_v2, 0.0  ;;  %v7544_v17 = vsel %vm8817_vm2, %v3407_v31, %v3411_v8  ;;  %v5776_v2 = vld [vmem:[%s8726_s9 + $0x20] sm:$0xff] }
 0x39b   : > { %vm2980_vm15 = vcmp.ge.f32.partialorder %v2933_v61, 0.0  ;;  %v3004_v24 = vmul.f32 0.01, %v2933_v61  ;;  %v3272_v9 = vshrl.u32 %v3247_v3, 16  ;;  %v3180_v34 = vpack.c.bf16 %v3156_v20, %v3156_v20  ;;  %4044 = vmatpush.bf16.msrb.mxu3 %v5776_v2 }
 0x39c   : > { %v2796_v49 = vpop.f32.mrf.mxu1  ;;  %v3275_v27 = vshll.u32 %v3247_v3, 16 }
 0x39d   : > { %v3028_v43 = vsel %vm2980_vm15, %v2933_v61, %v3004_v24  ;;  %v2797_v22 = vadd.f32 %v7377_v51, %v2796_v49  ;;  %v3274_v19 = vrot.slane %v3272_v9, 7  ;;  %v3228_v7 = vunpack.c.l.b16 %v3180_v34 }
 0x39e   : > { %v3056_v21 = vmul.f32 %v7391_v13, %v3028_v43  ;;  %3511 = vrot.lane.b32.xlu1 %v7544_v17, %s5933_s16 }
 0x39f   : > { %v2866_v53 = vadd.f32 %v7305_v56, %v2797_v22  ;;  %v3277_v63 = vor.u32 %v3275_v27, %v3274_v19  ;;  %v3379_v40 = vsel %vm6560_vm13, %v3274_v19, 0  ;;  %v3248_v54 = vpack.c.b16 %v3228_v7, %v3227_v57  ;;  %v2942_v19 = vpop.f32.mrf.mxu3 }
 0x3a0   : > { %v3084_v48 = vadd.f32 %v7403_v32, %v3056_v21  ;;  %v3421_v46 = vshll.u32 %v3379_v40, 16  ;;  %v3556_v0 = vrot.slane %v3379_v40, 1  ;;  %v3106_v7 = vadd.s32 5, %v7397_v41 }
 0x3a1   : > { %v2935_v26 = vadd.f32 %v7500_v4, %v2866_v53  ;;  %v7557_v10 = vsel %vm6560_vm13, 0, %v3277_v63  ;;  %v3279_v62 = vshrl.u32 %v3248_v54, 16  ;;  %v3282_v8 = vshll.u32 %v3248_v54, 16 }
 0x3a2   : > { %3657 = vrot.lane.b32.xlu2 %v7557_v10, %s5934_s17  ;;  %v3555_v56 = vrot.slane %v7557_v10, 1  ;;  %v3416_v37 = vshll.u32 %v7557_v10, 16  ;;  %v3414_v39 = vshrl.u32 %v7557_v10, 16  ;;  %v3157_v36 = vsel %vm7559_vm12, %v3084_v48, 0.0 }
 0x3a3   : > { %vm2981_vm14 = vcmp.ge.f32.partialorder %v2935_v26, 0.0  ;;  %v3005_v4 = vmul.f32 0.01, %v2935_v26  ;;  %v3423_v3 = vrot.slane %v3421_v46, 1  ;;  %v3281_v12 = vrot.slane %v3279_v62, 7 }
 0x3a4   : > { %v2799_v28 = vpop.f32.mrf.mxu1  ;;  %v7568_v25 = vsel %vm877_vm0, %v3555_v56, %v3556_v0  ;;  %v3418_v1 = vrot.slane %v3416_v37, 1  ;;  %v3181_v49 = vpack.c.bf16 %v3157_v36, %v3157_v36  ;;  %vm3118_vm9 = vcmp.ge.s32.totalorder %v3106_v7, 0 }
 0x3a5   : > { %v3029_v33 = vsel %vm2981_vm14, %v2935_v26, %v3005_v4  ;;  %v2800_v31 = vadd.f32 %v7377_v51, %v2799_v28  ;;  %5642 = vmatmul.msk.bf16.vlgmr.msra.gmra.mxu2 %vm2398_vm4, %v7568_v25  ;;  %v3284_v34 = vor.u32 %v3282_v8, %v3281_v12  ;;  %v3380_v46 = vsel %vm6560_vm13, %v3281_v12, 0 }
 0x3a6   : > { %v3057_v61 = vmul.f32 %v7391_v13, %v3029_v33  ;;  %3638 = vrot.lane.b32.xlu1 %v7568_v25, %s5933_s16  ;;  %v3419_v11 = vor.u32 %v3418_v1, %v3414_v39  ;;  %v3229_v53 = vunpack.c.l.b16 %v3181_v49  ;;  %vm3130_vm10 = vcmp.lt.s32.totalorder %v3106_v7, 16 }
 0x3a7   : > { %v2869_v20 = vadd.f32 %v7312_v38, %v2800_v31  ;;  %v7595_v38 = vsel %vm6560_vm13, 0, %v3284_v34  ;;  %v3433_v1 = vshll.u32 %v3380_v46, 16  ;;  %vm7616_vm11 = vmand %vm3118_vm9, %vm3130_vm10 }
 0x3a8   : > { %v3085_v24 = vadd.f32 %v7403_v32, %v3057_v61  ;;  %v7585_v9 = vsel %vm8820_vm5, %v3419_v11, %v3423_v3  ;;  %v3428_v21 = vshll.u32 %v7595_v38, 16  ;;  %v3558_v56 = vrot.slane %v7595_v38, 1  ;;  %v2944_v61 = vpop.f32.mrf.mxu3 }
 0x3a9   : > { %v2938_v43 = vadd.f32 %v2937_v58, %v2869_v20  ;;  %3689 = vrot.lane.b32.xlu0 %v7585_v9, %s5935_s0  ;;  %v3426_v39 = vshrl.u32 %v7595_v38, 16  ;;  %v3435_v34 = vrot.slane %v3433_v1, 1 }
 0x3aa   : > { %v3158_v22 = vsel %vm7559_vm12, %v3085_v24, 0.0  ;;  %3581 = vrot.lane.b32.xlu2 %v7523_v14, %s5934_s17  ;;  %v5783_v14 = vld [vmem:[%s8726_s9 + $0x58] sm:$0xff]  ;;  %v3430_v0 = vrot.slane %v3428_v21, 1 }
 0x3ab   : > { %v3182_v27 = vpack.c.bf16 %v3158_v22, %v3158_v22  ;;  %vm2982_vm6 = vcmp.ge.f32.partialorder %v2938_v43, 0.0  ;;  %v3006_v57 = vmul.f32 0.01, %v2938_v43  ;;  %4104 = vmatpush.bf16.msra.mxu1 %v5783_v14 }
 0x3ac   : > { %v2801_v58 = vpop.f32.mrf.mxu1  ;;  %v3431_v2 = vor.u32 %v3430_v0, %v3426_v39 }
 0x3ad   : > { %v3230_v63 = vunpack.c.l.b16 %v3182_v27  ;;  %v3030_v40 = vsel %vm2982_vm6, %v2938_v43, %v3006_v57  ;;  %v2802_v54 = vadd.f32 %v7377_v51, %v2801_v58  ;;  %vm8825_vm6 = vmmov %vm8817_vm2 }
 0x3ae   : > { %v3058_v48 = vmul.f32 %v7391_v13, %v3030_v40  ;;  %3513 = vrot.lane.b32.xlu1 %v7585_v9, %s5933_s16  ;;  %v7634_v22 = vsel %vm8817_vm2, %v3431_v2, %v3435_v34 }
 0x3af   : > { %v2871_v26 = vadd.f32 %v7317_v50, %v2802_v54  ;;  %v3249_v44 = vpack.c.b16 %v3230_v63, %v3229_v53  ;;  %v3559_v50 = vrot.slane %v3380_v46, 1  ;;  %v3107_v53 = vadd.s32 6, %v7397_v41  ;;  %v5775_v46 = vld [vmem:[%s8726_s9 + $0x18] sm:$0xff] }
 0x3b0   : > { %v3086_v28 = vadd.f32 %v7403_v32, %v3058_v48  ;;  %v2947_v40 = vpop.f32.mrf.mxu3  ;;  %4045 = vmatpush.bf16.msrb.mxu3 %v5775_v46 }
 0x3b1   : > { %v2940_v37 = vadd.f32 %v2939_v59, %v2871_v26  ;;  %3602 = vrot.lane.b32.xlu0 %v7557_v10, %s5935_s0  ;;  %v3286_v4 = vshrl.u32 %v3249_v44, 16  ;;  %v3289_v33 = vshll.u32 %v3249_v44, 16  ;;  %v7621_v3 = vsel %vm877_vm0, %v3558_v56, %v3559_v50 }
 0x3b2   : > { %3659 = vrot.lane.b32.xlu2 %v7595_v38, %s5934_s17  ;;  %v3159_v20 = vsel %vm7616_vm11, %v3086_v28, 0.0  ;;  %vm3119_vm1 = vcmp.ge.s32.totalorder %v3107_v53, 0  ;;  %vm3131_vm12 = vcmp.lt.s32.totalorder %v3107_v53, 16 }
 0x3b3   : > { %vm2983_vm15 = vcmp.ge.f32.partialorder %v2940_v37, 0.0  ;;  %v3007_v36 = vmul.f32 0.01, %v2940_v37  ;;  %v3288_v59 = vrot.slane %v3286_v4, 7  ;;  %v3183_v27 = vpack.c.bf16 %v3159_v20, %v3159_v20  ;;  %vm7665_vm14 = vmand %vm3119_vm1, %vm3131_vm12 }
 0x3b4   : > { %v2804_v31 = vpop.f32.mrf.mxu1 }
 0x3b5   : > { %v3031_v11 = vsel %vm2983_vm15, %v2940_v37, %v3007_v36  ;;  %v2805_v12 = vadd.f32 %v7377_v51, %v2804_v31  ;;  %5643 = vmatmul.msk.bf16.gmra.mxu2 %vm2398_vm4, %v7621_v3  ;;  %v3291_v8 = vor.u32 %v3289_v33, %v3288_v59  ;;  %v3231_v54 = vunpack.c.l.b16 %v3183_v27 }
 0x3b6   : > { %v3059_v24 = vmul.f32 %v7391_v13, %v3031_v11  ;;  %3640 = vrot.lane.b32.xlu1 %v7621_v3, %s5933_s16  ;;  %v3381_v56 = vsel %vm6560_vm13, %v3288_v59, 0 }
 0x3b7   : > { %v2874_v49 = vadd.f32 %v7323_v52, %v2805_v12  ;;  %v7640_v7 = vsel %vm6560_vm13, 0, %v3291_v8  ;;  %v3445_v62 = vshll.u32 %v3381_v56, 16 }
 0x3b8   : > { %v3087_v43 = vadd.f32 %v7403_v32, %v3059_v24  ;;  %v3561_v37 = vrot.slane %v7640_v7, 1  ;;  %v3438_v1 = vshrl.u32 %v7640_v7, 16  ;;  %v5782_v24 = vld [vmem:[%s8726_s9 + $0x50] sm:$0xff]  ;;  %v2949_v27 = vpop.f32.mrf.mxu3 }
 0x3b9   : > { %v2943_v57 = vadd.f32 %v2942_v19, %v2874_v49  ;;  %3691 = vrot.lane.b32.xlu0 %v7634_v22, %s5935_s0  ;;  %v3440_v19 = vshll.u32 %v7640_v7, 16  ;;  %4105 = vmatpush.bf16.msra.mxu1 %v5782_v24 }
 0x3ba   : > { %v3160_v58 = vsel %vm7616_vm11, %v3087_v43, 0.0  ;;  %3583 = vrot.lane.b32.xlu2 %v7568_v25, %s5934_s17  ;;  %v3447_v43 = vrot.slane %v3445_v62, 1 }
 0x3bb   : > { %v3184_v52 = vpack.c.bf16 %v3160_v58, %v3160_v58  ;;  %vm2984_vm3 = vcmp.ge.f32.partialorder %v2943_v57, 0.0  ;;  %v3008_v21 = vmul.f32 0.01, %v2943_v57  ;;  %v3442_v4 = vrot.slane %v3440_v19, 1 }
 0x3bc   : > { %v2806_v63 = vpop.f32.mrf.mxu1 }
 0x3bd   : > { %v3232_v14 = vunpack.c.l.b16 %v3184_v52  ;;  %v3032_v48 = vsel %vm2984_vm3, %v2943_v57, %v3008_v21  ;;  %v2807_v26 = vadd.f32 %v7377_v51, %v2806_v63  ;;  %v3443_v11 = vor.u32 %v3442_v4, %v3438_v1  ;;  %vm8828_vm3 = vmmov %vm8825_vm6 }
 0x3be   : > { %v3060_v25 = vmul.f32 %v7391_v13, %v3032_v48  ;;  %3515 = vrot.lane.b32.xlu1 %v7634_v22, %s5933_s16 }
 0x3bf   : > { %v2876_v44 = vadd.f32 %v7329_v55, %v2807_v26  ;;  %v3250_v0 = vpack.c.b16 %v3232_v14, %v3231_v54  ;;  %v3562_v55 = vrot.slane %v3381_v56, 1  ;;  %v7686_v52 = vsel %vm8825_vm6, %v3443_v11, %v3447_v43  ;;  %v5774_v56 = vld [vmem:[%s8726_s9 + $0x10] sm:$0xff] }
 0x3c0   : > { %v3088_v39 = vadd.f32 %v7403_v32, %v3060_v25  ;;  %v3108_v14 = vadd.s32 7, %v7397_v41  ;;  %4046 = vmatpush.bf16.msrb.mxu3 %v5774_v56 }
 0x3c1   : > { %v2945_v28 = vadd.f32 %v2944_v61, %v2876_v44  ;;  %3604 = vrot.lane.b32.xlu0 %v7595_v38, %s5935_s0  ;;  %v3293_v50 = vshrl.u32 %v3250_v0, 16  ;;  %v3296_v31 = vshll.u32 %v3250_v0, 16  ;;  %v7670_v61 = vsel %vm877_vm0, %v3561_v37, %v3562_v55 }
 0x3c2   : > { %3661 = vrot.lane.b32.xlu2 %v7640_v7, %s5934_s17  ;;  %v3161_v34 = vsel %vm7665_vm14, %v3088_v39, 0.0  ;;  %vm3120_vm10 = vcmp.ge.s32.totalorder %v3108_v14, 0  ;;  %vm3132_vm11 = vcmp.lt.s32.totalorder %v3108_v14, 16 }
 0x3c3   : > { %vm2985_vm5 = vcmp.ge.f32.partialorder %v2945_v28, 0.0  ;;  %v3009_v59 = vmul.f32 0.01, %v2945_v28  ;;  %v3295_v33 = vrot.slane %v3293_v50, 7  ;;  %v3185_v21 = vpack.c.bf16 %v3161_v34, %v3161_v34  ;;  %vm7717_vm15 = vmand %vm3120_vm10, %vm3132_vm11 }
 0x3c4   : > { %v2809_v2 = vpop.f32.mrf.mxu1 }
 0x3c5   : > { %v3033_v12 = vsel %vm2985_vm5, %v2945_v28, %v3009_v59  ;;  %v2810_v8 = vadd.f32 %v7377_v51, %v2809_v2  ;;  %5644 = vmatmul.msk.bf16.gmra.mxu2 %vm2398_vm4, %v7670_v61  ;;  %v3298_v20 = vor.u32 %v3296_v31, %v3295_v33  ;;  %v3233_v26 = vunpack.c.l.b16 %v3185_v21 }
 0x3c6   : > { %v3061_v49 = vmul.f32 %v7391_v13, %v3033_v12  ;;  %3642 = vrot.lane.b32.xlu1 %v7670_v61, %s5933_s16  ;;  %v3382_v4 = vsel %vm6560_vm13, %v3295_v33, 0 }
 0x3c7   : > { %v2879_v57 = vadd.f32 %v7333_v60, %v2810_v8  ;;  %v7692_v63 = vsel %vm6560_vm13, 0, %v3298_v20  ;;  %v3457_v59 = vshll.u32 %v3382_v4, 16 }
 0x3c8   : > { %v3089_v58 = vadd.f32 %v7403_v32, %v3061_v49  ;;  %v3564_v50 = vrot.slane %v7692_v63, 1  ;;  %v3450_v36 = vshrl.u32 %v7692_v63, 16 }
 0x3c9   : > { %v2948_v53 = vadd.f32 %v2947_v40, %v2879_v57  ;;  %3693 = vrot.lane.b32.xlu0 %v7686_v52, %s5935_s0  ;;  %v3452_v40 = vshll.u32 %v7692_v63, 16  ;;  %v3459_v57 = vrot.slane %v3457_v59, 1 }
 0x3ca   : > { %v3162_v19 = vsel %vm7665_vm14, %v3089_v58, 0.0  ;;  %3585 = vrot.lane.b32.xlu2 %v7621_v3, %s5934_s17  ;;  %v2952_v3 = vpop.f32.mrf.mxu3 }
 0x3cb   : > { %v3186_v60 = vpack.c.bf16 %v3162_v19, %v3162_v19  ;;  %vm2986_vm9 = vcmp.ge.f32.partialorder %v2948_v53, 0.0  ;;  %v3010_v54 = vmul.f32 0.01, %v2948_v53  ;;  %v3454_v39 = vrot.slane %v3452_v40, 1 }
 0x3cc   : > { %v2811_v48 = vpop.f32.mrf.mxu1 }
 0x3cd   : > { %v3234_v46 = vunpack.c.l.b16 %v3186_v60  ;;  %v3034_v25 = vsel %vm2986_vm9, %v2948_v53, %v3010_v54  ;;  %v2812_v44 = vadd.f32 %v7377_v51, %v2811_v48  ;;  %v3455_v20 = vor.u32 %v3454_v39, %v3450_v36  ;;  %vm8831_vm9 = vmmov %vm8828_vm3 }
 0x3ce   : > { %v3062_v0 = vmul.f32 %v7391_v13, %v3034_v25  ;;  %3517 = vrot.lane.b32.xlu1 %v7686_v52, %s5933_s16 }
 0x3cf   : > { %v2881_v37 = vadd.f32 %v7337_v45, %v2812_v44  ;;  %v3251_v28 = vpack.c.b16 %v3234_v46, %v3233_v26  ;;  %v3565_v45 = vrot.slane %v3382_v4, 1  ;;  %v7735_v53 = vsel %vm8828_vm3, %v3455_v20, %v3459_v57 }
 0x3d0   : > { %v3090_v62 = vadd.f32 %v7403_v32, %v3062_v0  ;;  %v3109_v26 = vadd.s32 8, %v7397_v41 }
 0x3d1   : > { %v2950_v55 = vadd.f32 %v2949_v27, %v2881_v37  ;;  %3606 = vrot.lane.b32.xlu0 %v7640_v7, %s5935_s0  ;;  %v3300_v1 = vshrl.u32 %v3251_v28, 16  ;;  %v3303_v11 = vshll.u32 %v3251_v28, 16  ;;  %v7722_v8 = vsel %vm877_vm0, %v3564_v50, %v3565_v45  ;;  %v5781_v37 = vld [vmem:[%s8726_s9 + $0x48] sm:$0xff] }
 0x3d2   : > { %3663 = vrot.lane.b32.xlu2 %v7692_v63, %s5934_s17  ;;  %v3163_v43 = vsel %vm7717_vm15, %v3090_v62, 0.0  ;;  %v2954_v19 = vpop.f32.mrf.mxu3  ;;  %4106 = vmatpush.bf16.msra.mxu1 %v5781_v37  ;;  %vm3121_vm12 = vcmp.ge.s32.totalorder %v3109_v26, 0  ;;  %vm3133_vm14 = vcmp.lt.s32.totalorder %v3109_v26, 16 }
 0x3d3   : > { %vm2987_vm2 = vcmp.ge.f32.partialorder %v2950_v55, 0.0  ;;  %v3011_v31 = vmul.f32 0.01, %v2950_v55  ;;  %v3302_v2 = vrot.slane %v3300_v1, 7  ;;  %v3187_v60 = vpack.c.bf16 %v3163_v43, %v3163_v43  ;;  %vm7769_vm5 = vmand %vm3121_vm12, %vm3133_vm14 }
 0x3d4   : > { %v2814_v12 = vpop.f32.mrf.mxu1 }
 0x3d5   : > { %v3035_v24 = vsel %vm2987_vm2, %v2950_v55, %v3011_v31  ;;  %v2815_v34 = vadd.f32 %v7377_v51, %v2814_v12  ;;  %5645 = vmatmul.msk.bf16.gmra.mxu2 %vm2398_vm4, %v7722_v8  ;;  %v3305_v49 = vor.u32 %v3303_v11, %v3302_v2  ;;  %v3235_v44 = vunpack.c.l.b16 %v3187_v60 }
 0x3d6   : > { %v3063_v27 = vmul.f32 %v7391_v13, %v3035_v24  ;;  %3644 = vrot.lane.b32.xlu1 %v7722_v8, %s5933_s16  ;;  %v3383_v50 = vsel %vm6560_vm13, %v3302_v2, 0 }
 0x3d7   : > { %v2884_v58 = vadd.f32 %v7341_v5, %v2815_v34  ;;  %v7741_v14 = vsel %vm6560_vm13, 0, %v3305_v49  ;;  %v3469_v31 = vshll.u32 %v3383_v50, 16 }
 0x3d8   : > { %v3091_v21 = vadd.f32 %v7403_v32, %v3063_v27  ;;  %v3464_v25 = vshll.u32 %v7741_v14, 16  ;;  %v3567_v55 = vrot.slane %v7741_v14, 1  ;;  %v3462_v33 = vshrl.u32 %v7741_v14, 16 }
 0x3d9   : > { %v2953_v54 = vadd.f32 %v2952_v3, %v2884_v58  ;;  %3695 = vrot.lane.b32.xlu0 %v7735_v53, %s5935_s0 }
 0x3da   : > { %v3164_v48 = vsel %vm7717_vm15, %v3091_v21, 0.0  ;;  %3587 = vrot.lane.b32.xlu2 %v7670_v61, %s5934_s17  ;;  %v5773_v61 = vld [vmem:[%s8726_s9 + $0x8] sm:$0xff]  ;;  %v3466_v1 = vrot.slane %v3464_v25, 1  ;;  %v2957_v62 = vpop.f32.mrf.mxu3 }
 0x3db   : > { %v3188_v5 = vpack.c.bf16 %v3164_v48, %v3164_v48  ;;  %vm2988_vm1 = vcmp.ge.f32.partialorder %v2953_v54, 0.0  ;;  %v3012_v40 = vmul.f32 0.01, %v2953_v54  ;;  %4047 = vmatpush.bf16.msrb.mxu3 %v5773_v61 }
 0x3dc   : > { %v2816_v46 = vpop.f32.mrf.mxu1  ;;  %v3467_v49 = vor.u32 %v3466_v1, %v3462_v33 }
 0x3dd   : > { %v3236_v56 = vunpack.c.l.b16 %v3188_v5  ;;  %v3036_v0 = vsel %vm2988_vm1, %v2953_v54, %v3012_v40  ;;  %v2817_v3 = vadd.f32 %v7377_v51, %v2816_v46  ;;  %v5772_v54 = vld [vmem:[%s8726_s9] sm:$0xff]  ;;  %vm8834_vm1 = vmmov %vm8831_vm9 }
 0x3de   : > { %v3064_v4 = vmul.f32 %v7391_v13, %v3036_v0  ;;  %3519 = vrot.lane.b32.xlu1 %v7735_v53, %s5933_s16  ;;  %v3110_v0 = vadd.s32 9, %v7397_v41 }
 0x3df   : > { %v2886_v28 = vadd.f32 %v7346_v29, %v2817_v3  ;;  %v3252_v39 = vpack.c.b16 %v3236_v56, %v3235_v44  ;;  %v3568_v29 = vrot.slane %v3383_v50, 1  ;;  %4048 = vmatpush.bf16.msrb.mxu3 %v5772_v54 }
 0x3e0   : > { %v3092_v59 = vadd.f32 %v7403_v32, %v3064_v4  ;;  %vm3122_vm11 = vcmp.ge.s32.totalorder %v3110_v0, 0  ;;  %vm3134_vm15 = vcmp.lt.s32.totalorder %v3110_v0, 16 }
 0x3e1   : > { %v2955_v45 = vadd.f32 %v2954_v19, %v2886_v28  ;;  %3608 = vrot.lane.b32.xlu0 %v7692_v63, %s5935_s0  ;;  %v3307_v36 = vshrl.u32 %v3252_v39, 16  ;;  %v3310_v20 = vshll.u32 %v3252_v39, 16  ;;  %v7774_v34 = vsel %vm877_vm0, %v3567_v55, %v3568_v29  ;;  %vm7818_vm2 = vmand %vm3122_vm11, %vm3134_vm15 }
 0x3e2   : > { %3665 = vrot.lane.b32.xlu2 %v7741_v14, %s5934_s17  ;;  %v3165_v58 = vsel %vm7769_vm5, %v3092_v59, 0.0  ;;  %v3471_v19 = vrot.slane %v3469_v31, 1  ;;  %v2959_v25 = vpop.f32.mrf.mxu3 }
 0x3e3   : > { %vm2989_vm6 = vcmp.ge.f32.partialorder %v2955_v45, 0.0  ;;  %v3013_v11 = vmul.f32 0.01, %v2955_v45  ;;  %v3309_v12 = vrot.slane %v3307_v36, 7  ;;  %v3189_v40 = vpack.c.bf16 %v3165_v58, %v3165_v58 }
 0x3e4   : > { %v2819_v24 = vpop.f32.mrf.mxu1  ;;  %v7790_v5 = vsel %vm8831_vm9, %v3467_v49, %v3471_v19 }
 0x3e5   : > { %v3037_v43 = vsel %vm2989_vm6, %v2955_v45, %v3013_v11  ;;  %v2820_v27 = vadd.f32 %v7377_v51, %v2819_v24  ;;  %5646 = vmatmul.msk.bf16.gmra.mxu2 %vm2398_vm4, %v7774_v34  ;;  %v3312_v57 = vor.u32 %v3310_v20, %v3309_v12  ;;  %v3237_v61 = vunpack.c.l.b16 %v3189_v40  ;;  %v7822_v20 = vpop.permute.xlu2 %3579 }
 0x3e6   : > { %v3065_v21 = vmul.f32 %v7391_v13, %v3037_v43  ;;  %3646 = vrot.lane.b32.xlu1 %v7774_v34, %s5933_s16  ;;  %v3384_v55 = vsel %vm6560_vm13, %v3309_v12, 0 }
 0x3e7   : > { %v2889_v60 = vadd.f32 %v7349_v35, %v2820_v27  ;;  %v7796_v46 = vsel %vm6560_vm13, 0, %v3312_v57  ;;  %v3481_v29 = vshll.u32 %v3384_v55, 16  ;;  %v7830_v27 = vld [vmem:[%s8723_s6] ss:$0 sm:$0xff] }
 0x3e8   : > { %v3093_v48 = vadd.f32 %v7403_v32, %v3065_v21  ;;  %v3476_v37 = vshll.u32 %v7796_v46, 16  ;;  %v3474_v59 = vshrl.u32 %v7796_v46, 16  ;;  %v5780_v21 = vld [vmem:[%s8726_s9 + $0x40] sm:$0xff] }
 0x3e9   : > { %v2958_v26 = vadd.f32 %v2957_v62, %v2889_v60  ;;  %3697 = vrot.lane.b32.xlu0 %v7790_v5, %s5935_s0  ;;  %v3570_v62 = vrot.slane %v7796_v46, 1  ;;  %v7843_v60 = vld [vmem:[%s8724_s7] ss:$0 sm:$0xff]  ;;  %4107 = vmatpush.bf16.msra.mxu1 %v5780_v21 }
 0x3ea   : > { %v3166_v35 = vsel %vm7769_vm5, %v3093_v48, 0.0  ;;  %3589 = vrot.lane.b32.xlu2 %v7722_v8, %s5934_s17  ;;  %v3478_v45 = vrot.slane %v3476_v37, 1  ;;  %v2962_v33 = vpop.f32.mrf.mxu3  ;;  %v3483_v48 = vrot.slane %v3481_v29, 1 }
 0x3eb   : > { %v3190_v44 = vpack.c.bf16 %v3166_v35, %v3166_v35  ;;  %vm2990_vm10 = vcmp.ge.f32.partialorder %v2958_v26, 0.0  ;;  %v3014_v56 = vmul.f32 0.01, %v2958_v26 }
 0x3ec   : > { %v2821_v3 = vpop.f32.mrf.mxu1  ;;  %v3479_v49 = vor.u32 %v3478_v45, %v3474_v59 }
 0x3ed   : > { %v3238_v4 = vunpack.c.l.b16 %v3190_v44  ;;  %v3038_v28 = vsel %vm2990_vm10, %v2958_v26, %v3014_v56  ;;  %v2822_v50 = vadd.f32 %v7377_v51, %v2821_v3  ;;  %v7852_v26 = vld [vmem:[%s8725_s8] ss:$0 sm:$0xff]  ;;  %vm8837_vm10 = vmmov %vm8834_vm1 }
 0x3ee   : > { %v3066_v39 = vmul.f32 %v7391_v13, %v3038_v28  ;;  %3521 = vrot.lane.b32.xlu1 %v7790_v5, %s5933_s16 }
 0x3ef   : > { %v2891_v8 = vadd.f32 %v7355_v23, %v2822_v50  ;;  %v3253_v1 = vpack.c.b16 %v3238_v4, %v3237_v61  ;;  %v3571_v23 = vrot.slane %v3384_v55, 1  ;;  %v3111_v61 = vadd.s32 10, %v7397_v41 }
 0x3f0   : > { %v3094_v13 = vadd.f32 %v7403_v32, %v3066_v39 }
 0x3f1   : > { %v2960_v36 = vadd.f32 %v2959_v25, %v2891_v8  ;;  %3610 = vrot.lane.b32.xlu0 %v7741_v14, %s5935_s0  ;;  %v3314_v51 = vshrl.u32 %v3253_v1, 16  ;;  %v3317_v12 = vshll.u32 %v3253_v1, 16  ;;  %v7825_v32 = vsel %vm877_vm0, %v3570_v62, %v3571_v23 }
 0x3f2   : > { %3667 = vrot.lane.b32.xlu2 %v7796_v46, %s5934_s17  ;;  %v3167_v19 = vsel %vm7818_vm2, %v3094_v13, 0.0  ;;  %v7856_v25 = vsel %vm8834_vm1, %v3479_v49, %v3483_v48  ;;  %v2964_v62 = vpop.f32.mrf.mxu3  ;;  %vm3123_vm14 = vcmp.ge.s32.totalorder %v3111_v61, 0  ;;  %vm3135_vm5 = vcmp.lt.s32.totalorder %v3111_v61, 16 }
 0x3f3   : > { %vm2991_vm3 = vcmp.ge.f32.partialorder %v2960_v36, 0.0  ;;  %v3015_v2 = vmul.f32 0.01, %v2960_v36  ;;  %v3316_v11 = vrot.slane %v3314_v51, 7  ;;  %v3191_v44 = vpack.c.bf16 %v3167_v19, %v3167_v19  ;;  %vm7888_vm6 = vmand %vm3123_vm14, %vm3135_vm5 }
 0x3f4   : > { %v2824_v24 = vpop.f32.mrf.mxu1  ;;  %vm8841_vm14 = vmmov %vm8837_vm10 }
 0x3f5   : > { %v3039_v43 = vsel %vm2991_vm3, %v2960_v36, %v3015_v2  ;;  %v2825_v57 = vadd.f32 %v7830_v27, %v2824_v24  ;;  %5647 = vmatmul.msk.bf16.gmra.mxu2 %vm2398_vm4, %v7825_v32  ;;  %v3319_v58 = vor.u32 %v3317_v12, %v3316_v11  ;;  %v3239_v39 = vunpack.c.l.b16 %v3191_v44 }
 0x3f6   : > { %v3067_v54 = vmul.f32 %v7843_v60, %v3039_v43  ;;  %3648 = vrot.lane.b32.xlu1 %v7825_v32, %s5933_s16 }
 0x3f7   : > { %v2894_v40 = vadd.f32 %v7360_v16, %v2825_v57  ;;  %v7862_v0 = vsel %vm6560_vm13, 0, %v3319_v58 }
 0x3f8   : > { %v3095_v35 = vadd.f32 %v7852_v26, %v3067_v54  ;;  %v3488_v50 = vshll.u32 %v7862_v0, 16  ;;  %v3573_v23 = vrot.slane %v7862_v0, 1 }
 0x3f9   : > { %v2963_v56 = vadd.f32 %v2962_v33, %v2894_v40  ;;  %3699 = vrot.lane.b32.xlu0 %v7856_v25, %s5935_s0 }
 0x3fa   : > { %v3168_v16 = vsel %vm7818_vm2, %v3095_v35, 0.0  ;;  %3591 = vrot.lane.b32.xlu2 %v7774_v34, %s5934_s17  ;;  %v3385_v34 = vsel %vm6560_vm13, %v3316_v11, 0  ;;  %v3490_v59 = vrot.slane %v3488_v50, 1 }
 0x3fb   : > { %v3192_v3 = vpack.c.bf16 %v3168_v16, %v3168_v16  ;;  %vm2992_vm12 = vcmp.ge.f32.partialorder %v2963_v56, 0.0  ;;  %v3016_v37 = vmul.f32 0.01, %v2963_v56  ;;  %v3510_v36 = vpop.permute.xlu1 %3509  ;;  %v3574_v33 = vrot.slane %v3385_v34, 1 }
 0x3fc   : > { %v7869_v4 = vpop.permute.xlu2 %3657  ;;  %v2826_v28 = vpop.f32.mrf.mxu1  ;;  %v3714_v11 = vsel %vm2398_vm4, %v7458_v47, %v3510_v36  ;;  %v3493_v12 = vshll.u32 %v3385_v34, 16  ;;  %v3112_v34 = vadd.s32 11, %v7397_v41 }
 0x3fd   : > { %v3240_v8 = vunpack.c.l.b16 %v3192_v3  ;;  %v3040_v55 = vsel %vm2992_vm12, %v2963_v56, %v3016_v37  ;;  %v2827_v1 = vadd.f32 %v7830_v27, %v2826_v28  ;;  %v7895_v19 = vsel %vm877_vm0, %v3573_v23, %v3574_v33  ;;  %v2967_v56 = vpop.f32.mrf.mxu3  ;;  %vm8840_vm12 = vmmov %vm8837_vm10 }
 0x3fe   : > { %v3068_v45 = vmul.f32 %v7843_v60, %v3040_v55  ;;  %3523 = vrot.lane.b32.xlu1 %v7856_v25, %s5933_s16  ;;  %v3734_v35 = vsel %vm2423_vm7, %v3714_v11, %v7822_v20  ;;  %v3495_v61 = vrot.slane %v3493_v12, 1  ;;  %vm3124_vm15 = vcmp.ge.s32.totalorder %v3112_v34, 0 }
 0x3ff   : > { %v2896_v51 = vadd.f32 %v7366_v15, %v2827_v1  ;;  %v3254_v13 = vpack.c.b16 %v3240_v8, %v3239_v39  ;;  %v3486_v15 = vshrl.u32 %v7862_v0, 16  ;;  %vm3136_vm2 = vcmp.lt.s32.totalorder %v3112_v34, 16 }
 0x400   : > { %v3096_v2 = vadd.f32 %v7852_v26, %v3068_v45  ;;  %vm7941_vm3 = vmand %vm3124_vm15, %vm3136_vm2 }
 0x401   : > { %v2965_v29 = vadd.f32 %v2964_v62, %v2896_v51  ;;  %3612 = vrot.lane.b32.xlu0 %v7796_v46, %s5935_s0  ;;  %v3321_v31 = vshrl.u32 %v3254_v13, 16  ;;  %v3324_v57 = vshll.u32 %v3254_v13, 16  ;;  %v3491_v47 = vor.u32 %v3490_v59, %v3486_v15 }
 0x402   : > { %3669 = vrot.lane.b32.xlu2 %v7862_v0, %s5934_s17  ;;  %v3169_v16 = vsel %vm7888_vm6, %v3096_v2, 0.0 }
 0x403   : > { %vm2993_vm9 = vcmp.ge.f32.partialorder %v2965_v29, 0.0  ;;  %v3017_v49 = vmul.f32 0.01, %v2965_v29  ;;  %v3323_v43 = vrot.slane %v3321_v31, 7  ;;  %v7911_v20 = vsel %vm8837_vm10, %v3491_v47, %v3495_v61 }
 0x404   : > { %v7892_v58 = vpop.permute.xlu2 %3581  ;;  %v2829_v21 = vpop.f32.mrf.mxu1  ;;  %v3193_v1 = vpack.c.bf16 %v3169_v16, %v3169_v16 }
 0x405   : > { %v3041_v54 = vsel %vm2993_vm9, %v2965_v29, %v3017_v49  ;;  %v2830_v48 = vadd.f32 %v7830_v27, %v2829_v21  ;;  %v3601_v40 = vpop.permute.xlu0 %3600  ;;  %5648 = vmatmul.msk.bf16.gmra.mxu2 %vm2398_vm4, %v7895_v19  ;;  %v3326_v44 = vor.u32 %v3324_v57, %v3323_v43  ;;  %v3386_v41 = vsel %vm6560_vm13, %v3323_v43, 0  ;;  %v2969_v11 = vpop.f32.mrf.mxu3 }
 0x406   : > { %v3069_v3 = vmul.f32 %v7843_v60, %v3041_v54  ;;  %3650 = vrot.lane.b32.xlu1 %v7895_v19, %s5933_s16  ;;  %v3754_v37 = vsel %vm2448_vm8, %v3734_v35, %v3601_v40  ;;  %v3241_v59 = vunpack.c.l.b16 %v3193_v1  ;;  %v3505_v21 = vshll.u32 %v3386_v41, 16 }
 0x407   : > { %v2899_v28 = vadd.f32 %v7370_v42, %v2830_v48  ;;  %4049 = vmatmul.bf16.vlgmr.msrb.gmra.mxu3 %v3754_v37  ;;  %v7917_v55 = vsel %vm6560_vm13, 0, %v3326_v44 }
 0x408   : > { %v3097_v50 = vadd.f32 %v7852_v26, %v3069_v3  ;;  %v3637_v39 = vpop.permute.xlu1 %3636  ;;  %v3500_v51 = vshll.u32 %v7917_v55, 16  ;;  %v3498_v43 = vshrl.u32 %v7917_v55, 16  ;;  %v3507_v61 = vrot.slane %v3505_v21, 1 }
 0x409   : > { %v2968_v8 = vadd.f32 %v2967_v56, %v2899_v28  ;;  %3701 = vrot.lane.b32.xlu0 %v7911_v20, %s5935_s0  ;;  %v3785_v28 = vsel %vm2398_vm4, %v7544_v17, %v3637_v39 }
 0x40a   : > { %v3170_v62 = vsel %vm7888_vm6, %v3097_v50, 0.0  ;;  %3593 = vrot.lane.b32.xlu2 %v7825_v32, %s5934_s17  ;;  %v3502_v12 = vrot.slane %v3500_v51, 1 }
 0x40b   : > { %vm2994_vm11 = vcmp.ge.f32.partialorder %v2968_v8, 0.0  ;;  %v3018_v42 = vmul.f32 0.01, %v2968_v8  ;;  %v3194_v45 = vpack.c.bf16 %v3170_v62, %v3170_v62 }
 0x40c   : > { %v2831_v36 = vpop.f32.mrf.mxu1  ;;  %v7927_v31 = vpop.permute.xlu2 %3659  ;;  %v3503_v44 = vor.u32 %v3502_v12, %v3498_v43 }
 0x40d   : > { %v3042_v13 = vsel %vm2994_vm11, %v2968_v8, %v3018_v42  ;;  %v2832_v23 = vadd.f32 %v7830_v27, %v2831_v36  ;;  %v3242_v29 = vunpack.c.l.b16 %v3194_v45  ;;  %v3576_v27 = vrot.slane %v7917_v55, 1 }
 0x40e   : > { %v3070_v33 = vmul.f32 %v7843_v60, %v3042_v13  ;;  %3525 = vrot.lane.b32.xlu1 %v7911_v20, %s5933_s16  ;;  %v7959_v62 = vsel %vm8840_vm12, %v3503_v44, %v3507_v61 }
 0x40f   : > { %v2901_v32 = vadd.f32 %v7379_v6, %v2832_v23  ;;  %v3255_v2 = vpack.c.b16 %v3242_v29, %v3241_v59  ;;  %v3577_v6 = vrot.slane %v3386_v41, 1 }
 0x410   : > { %v3512_v15 = vpop.permute.xlu1 %3511  ;;  %v3098_v57 = vadd.f32 %v7852_v26, %v3070_v33 }
 0x411   : > { %v2970_v24 = vadd.f32 %v2969_v11, %v2901_v32  ;;  %3614 = vrot.lane.b32.xlu0 %v7862_v0, %s5935_s0  ;;  %v3328_v49 = vshrl.u32 %v3255_v2, 16  ;;  %v3331_v40 = vshll.u32 %v3255_v2, 16  ;;  %v7946_v35 = vsel %vm877_vm0, %v3576_v27, %v3577_v6 }
 0x412   : > { %3671 = vrot.lane.b32.xlu2 %v7917_v55, %s5934_s17  ;;  %v3171_v3 = vsel %vm7941_vm3, %v3098_v57, 0.0  ;;  %v3716_v29 = vsel %vm2398_vm4, %v7508_v30, %v3512_v15 }
 0x413   : > { %vm2995_vm1 = vcmp.ge.f32.partialorder %v2970_v24, 0.0  ;;  %v3019_v54 = vmul.f32 0.01, %v2970_v24  ;;  %v3330_v48 = vrot.slane %v3328_v49, 7  ;;  %v3195_v42 = vpack.c.bf16 %v3171_v3, %v3171_v3 }
 0x414   : > { %v3584_v8 = vpop.permute.xlu2 %3583  ;;  %v3736_v30 = vsel %vm2423_vm7, %v3716_v29, %v7892_v58 }
 0x415   : > { %v3043_v56 = vsel %vm2995_vm1, %v2970_v24, %v3019_v54  ;;  %5649 = vmatmul.msk.bf16.gmra.mxu2 %vm2398_vm4, %v7946_v35  ;;  %v3333_v16 = vor.u32 %v3331_v40, %v3330_v48  ;;  %v3243_v51 = vunpack.c.l.b16 %v3195_v42  ;;  %v3387_v23 = vsel %vm6560_vm13, %v3330_v48, 0 }
 0x416   : > { %v3071_v37 = vmul.f32 %v7843_v60, %v3043_v56  ;;  %3652 = vrot.lane.b32.xlu1 %v7946_v35, %s5933_s16  ;;  %v3634_v2 = vrot.slane %v3387_v23, 1  ;;  %v3628_v27 = vshll.u32 %v3387_v23, 16 }
 0x417   : > { %v7965_v60 = vsel %vm6560_vm13, 0, %v3333_v16 }
 0x418   : > { %v3099_v50 = vadd.f32 %v7852_v26, %v3071_v37  ;;  %v3639_v1 = vpop.permute.xlu1 %3638  ;;  %v3814_v26 = vsel %vm2423_vm7, %v3785_v28, %v7869_v4  ;;  %v3623_v36 = vshll.u32 %v7965_v60, 16  ;;  %v3633_v33 = vrot.slane %v7965_v60, 1 }
 0x419   : > { %3703 = vrot.lane.b32.xlu0 %v7959_v62, %s5935_s0  ;;  %v3621_v11 = vshrl.u32 %v7965_v60, 16  ;;  %v3630_v6 = vrot.slane %v3628_v27, 1  ;;  %v3788_v21 = vsel %vm2398_vm4, %v7585_v9, %v3639_v1 }
 0x41a   : > { %v3172_v45 = vsel %vm7941_vm3, %v3099_v50, 0.0  ;;  %3595 = vrot.lane.b32.xlu2 %v7895_v19, %s5934_s17  ;;  %v3625_v32 = vrot.slane %v3623_v36, 1  ;;  %v7989_v24 = vsel %vm877_vm0, %v3633_v33, %v3634_v2  ;;  %v3816_v40 = vsel %vm2423_vm7, %v3788_v21, %v7927_v31 }
 0x41b   : > { %v3196_v17 = vpack.c.bf16 %v3172_v45, %v3172_v45  ;;  %v3690_v39 = vpop.permute.xlu0 %3689 }
 0x41c   : > { %v3834_v34 = vsel %vm2448_vm8, %v3814_v26, %v3690_v39  ;;  %v3662_v41 = vpop.permute.xlu2 %3661  ;;  %v3626_v49 = vor.u32 %v3625_v32, %v3621_v11 }
 0x41d   : > { %v3244_v13 = vunpack.c.l.b16 %v3196_v17  ;;  %4108 = vmatmul.bf16.vlgmr.msra.gmra.mxu1 %v3834_v34 }
 0x41e   : > { %v7996_v54 = vsel %vm8841_vm14, %v3626_v49, %v3630_v6 }
 0x41f   : > { %v3256_v59 = vpack.c.b16 %v3244_v13, %v3243_v51 }
 0x420   : > { %v3514_v19 = vpop.permute.xlu1 %3513 }
 0x421   : > { %3616 = vrot.lane.b32.xlu0 %v7917_v55, %s5935_s0  ;;  %v3335_v4 = vshrl.u32 %v3256_v59, 16  ;;  %v3338_v43 = vshll.u32 %v3256_v59, 16  ;;  %v3718_v3 = vsel %vm2398_vm4, %v7557_v10, %v3514_v19 }
 0x422   : > { %3673 = vrot.lane.b32.xlu2 %v7965_v60, %s5934_s17  ;;  %v3738_v50 = vsel %vm2423_vm7, %v3718_v3, %v3584_v8 }
 0x423   : > { %v3603_v12 = vpop.permute.xlu0 %3602  ;;  %v3337_v57 = vrot.slane %v3335_v4, 7 }
 0x424   : > { %v3757_v15 = vsel %vm2448_vm8, %v3736_v30, %v3603_v12  ;;  %v3586_v44 = vpop.permute.xlu2 %3585 }
 0x425   : > { %4054 = vmatmul.bf16.gmra.mxu3 %v3757_v15  ;;  %5650 = vmatmul.msk.bf16.gmra.mxu2 %vm2398_vm4, %v7989_v24  ;;  %v3340_v58 = vor.u32 %v3338_v43, %v3337_v57  ;;  %v8009_v9 = vsel %vm6560_vm13, %v3337_v57, 0 }
 0x426   : > { %v3711_v31 = vrot.slane %v8009_v9, 1 }
 0x427   : > { %v8005_v16 = vsel %vm6560_vm13, 0, %v3340_v58 }
 0x428   : > { %v3641_v47 = vpop.permute.xlu1 %3640  ;;  %v3710_v61 = vrot.slane %v8005_v16, 1 }
 0x429   : > { %3705 = vrot.lane.b32.xlu0 %v7996_v54, %s5935_s0  ;;  %v3791_v17 = vsel %vm2398_vm4, %v7634_v22, %v3641_v47 }
 0x42a   : > { %v3712_v42 = vsel %vm877_vm0, %v3710_v61, %v3711_v31  ;;  %v3818_v39 = vsel %vm2423_vm7, %v3791_v17, %v3662_v41 }
 0x42b   : > { %v3692_v48 = vpop.permute.xlu0 %3691 }
 0x42c   : > { %v3837_v56 = vsel %vm2448_vm8, %v3816_v40, %v3692_v48  ;;  %v3664_v45 = vpop.permute.xlu2 %3663 }
 0x42d   : > { %4113 = vmatmul.bf16.gmra.mxu1 %v3837_v56 }
 0x430   : > { %v3516_v37 = vpop.permute.xlu1 %3515 }
 0x431   : > { %v3720_v8 = vsel %vm2398_vm4, %v7595_v38, %v3516_v37 }
 0x432   : > { %v3740_v23 = vsel %vm2423_vm7, %v3720_v8, %v3586_v44 }
 0x433   : > { %v3605_v28 = vpop.permute.xlu0 %3604 }
 0x434   : > { %v3760_v1 = vsel %vm2448_vm8, %v3738_v50, %v3605_v28  ;;  %v3588_v36 = vpop.permute.xlu2 %3587 }
 0x435   : > { %4059 = vmatmul.bf16.gmra.mxu3 %v3760_v1  ;;  %5651 = vmatmul.msk.bf16.gmra.mxu2 %vm2398_vm4, %v3712_v42  ;;  %v4168_v1 = vpop.f32.mrf.mxu2 }
 0x438   : > { %v3643_v10 = vpop.permute.xlu1 %3642 }
 0x439   : > { %v3794_v22 = vsel %vm2398_vm4, %v7686_v52, %v3643_v10 }
 0x43a   : > { %v3820_v32 = vsel %vm2423_vm7, %v3794_v22, %v3664_v45 }
 0x43b   : > { %v3694_v26 = vpop.permute.xlu0 %3693 }
 0x43c   : > { %v3840_v34 = vsel %vm2448_vm8, %v3818_v39, %v3694_v26  ;;  %v3666_v19 = vpop.permute.xlu2 %3665 }
 0x43d   : > { %4118 = vmatmul.bf16.gmra.mxu1 %v3840_v34  ;;  %v4170_v8 = vpop.f32.mrf.mxu2 }
 0x440   : > { %v3518_v51 = vpop.permute.xlu1 %3517 }
 0x441   : > { %v3722_v38 = vsel %vm2398_vm4, %v7640_v7, %v3518_v51 }
 0x442   : > { %v3742_v11 = vsel %vm2423_vm7, %v3722_v38, %v3588_v36 }
 0x443   : > { %v3607_v13 = vpop.permute.xlu0 %3606 }
 0x444   : > { %v3763_v59 = vsel %vm2448_vm8, %v3740_v23, %v3607_v13  ;;  %v3590_v27 = vpop.permute.xlu2 %3589 }
 0x445   : > { %4064 = vmatmul.bf16.gmra.mxu3 %v3763_v59 }
 0x448   : > { %v3645_v29 = vpop.permute.xlu1 %3644 }
 0x449   : > { %v3797_v52 = vsel %vm2398_vm4, %v7735_v53, %v3645_v29 }
 0x44a   : > { %v3822_v49 = vsel %vm2423_vm7, %v3797_v52, %v3666_v19 }
 0x44b   : > { %v3696_v33 = vpop.permute.xlu0 %3695 }
 0x44c   : > { %v3843_v4 = vsel %vm2448_vm8, %v3820_v32, %v3696_v33  ;;  %v3668_v6 = vpop.permute.xlu2 %3667 }
 0x44d   : > { %4123 = vmatmul.bf16.gmra.mxu1 %v3843_v4 }
 0x450   : > { %v3520_v41 = vpop.permute.xlu1 %3519 }
 0x451   : > { %v3724_v7 = vsel %vm2398_vm4, %v7692_v63, %v3520_v41 }
 0x452   : > { %v3744_v47 = vsel %vm2423_vm7, %v3724_v7, %v3590_v27  ;;  %v8080_v7 = vld [vmem:[%s8728_s11] ss:$0 sm:$0xff] }
 0x453   : > { %v3609_v2 = vpop.permute.xlu0 %3608 }
 0x454   : > { %v3766_v12 = vsel %vm2448_vm8, %v3742_v11, %v3609_v2  ;;  %v3592_v48 = vpop.permute.xlu2 %3591 }
 0x455   : > { %4069 = vmatmul.bf16.gmra.mxu3 %v3766_v12 }
 0x458   : > { %v3647_v30 = vpop.permute.xlu1 %3646 }
 0x459   : > { %v3800_v53 = vsel %vm2398_vm4, %v7790_v5, %v3647_v30 }
 0x45a   : > { %v3824_v44 = vsel %vm2423_vm7, %v3800_v53, %v3668_v6 }
 0x45b   : > { %v3698_v15 = vpop.permute.xlu0 %3697 }
 0x45c   : > { %v3846_v57 = vsel %vm2448_vm8, %v3822_v49, %v3698_v15  ;;  %v3670_v37 = vpop.permute.xlu2 %3669 }
 0x45d   : > { %4128 = vmatmul.bf16.gmra.mxu1 %v3846_v57 }
 0x460   : > { %v3522_v43 = vpop.permute.xlu1 %3521 }
 0x461   : > { %v3726_v63 = vsel %vm2398_vm4, %v7741_v14, %v3522_v43 }
 0x462   : > { %v3746_v31 = vsel %vm2423_vm7, %v3726_v63, %v3592_v48 }
 0x463   : > { %v3611_v21 = vpop.permute.xlu0 %3610 }
 0x464   : > { %v3769_v58 = vsel %vm2448_vm8, %v3744_v47, %v3611_v21  ;;  %v3594_v17 = vpop.permute.xlu2 %3593 }
 0x465   : > { %4074 = vmatmul.bf16.gmra.mxu3 %v3769_v58  ;;  %v8084_v58 = vstv %s5652_s27 }
 0x466   : > { %vm4337_vm6 = vcmp.ge.s32.totalorder %v8084_v58, 0  ;;  %vm4347_vm9 = vcmp.lt.s32.totalorder %v8084_v58, 16 }
 0x467   : > { %vm4357_vm10 = vmand %vm4337_vm6, %vm4347_vm9 }
 0x468   : > { %v3649_v3 = vpop.permute.xlu1 %3648 }
 0x469   : > { %v3803_v5 = vsel %vm2398_vm4, %v7856_v25, %v3649_v3 }
 0x46a   : > { %v3826_v45 = vsel %vm2423_vm7, %v3803_v5, %v3670_v37 }
 0x46b   : > { %v3700_v40 = vpop.permute.xlu0 %3699 }
 0x46c   : > { %v3849_v56 = vsel %vm2448_vm8, %v3824_v44, %v3700_v40  ;;  %v3672_v25 = vpop.permute.xlu2 %3671  ;;  %v8092_v40 = vld [vmem:[%s8729_s12] ss:$0 sm:$0xff] }
 0x46d   : > { %4133 = vmatmul.bf16.gmra.mxu1 %v3849_v56 }
 0x470   : > { %v3524_v50 = vpop.permute.xlu1 %3523 }
 0x471   : > { %v3728_v14 = vsel %vm2398_vm4, %v7796_v46, %v3524_v50  ;;  %v4173_v46 = vpop.f32.mrf.mxu2 }
 0x472   : > { %v3748_v34 = vsel %vm2423_vm7, %v3728_v14, %v3594_v17 }
 0x473   : > { %v3613_v61 = vpop.permute.xlu0 %3612 }
 0x474   : > { %v3772_v28 = vsel %vm2448_vm8, %v3746_v31, %v3613_v61  ;;  %v3596_v29 = vpop.permute.xlu2 %3595 }
 0x475   : > { %4079 = vmatmul.bf16.gmra.mxu3 %v3772_v28 }
 0x478   : > { %v3651_v26 = vpop.permute.xlu1 %3650 }
 0x479   : > { %v3806_v51 = vsel %vm2398_vm4, %v7911_v20, %v3651_v26  ;;  %v8070_v20 = vld [vmem:[%s8727_s10] ss:$0 sm:$0xff]  ;;  %v4175_v2 = vpop.f32.mrf.mxu2 }
 0x47a   : > { %v3828_v59 = vsel %vm2423_vm7, %v3806_v51, %v3672_v25 }
 0x47b   : > { %v3702_v42 = vpop.permute.xlu0 %3701 }
 0x47c   : > { %v3852_v10 = vsel %vm2448_vm8, %v3826_v45, %v3702_v42  ;;  %v3674_v27 = vpop.permute.xlu2 %3673 }
 0x47d   : > { %4138 = vmatmul.bf16.gmra.mxu1 %v3852_v10 }
 0x480   : > { %v3526_v13 = vpop.permute.xlu1 %3525 }
 0x481   : > { %v3730_v19 = vsel %vm2398_vm4, %v7862_v0, %v3526_v13  ;;  %v8086_v48 = vpop.f32.mrf.mxu2 }
 0x482   : > { %v3750_v32 = vsel %vm2423_vm7, %v3730_v19, %v3596_v29 }
 0x483   : > { %v3615_v39 = vpop.permute.xlu0 %3614 }
 0x484   : > { %v3775_v36 = vsel %vm2448_vm8, %v3748_v34, %v3615_v39 }
 0x485   : > { %4084 = vmatmul.bf16.gmra.mxu3 %v3775_v36 }
 0x488   : > { %v3653_v41 = vpop.permute.xlu1 %3652 }
 0x489   : > { %v3809_v11 = vsel %vm2398_vm4, %v7959_v62, %v3653_v41  ;;  %v8099_v45 = vpop.f32.mrf.mxu2 }
 0x48a   : > { %v4050_v4 = vpop.f32.mrf.mxu3  ;;  %v3830_v15 = vsel %vm2423_vm7, %v3809_v11, %v3674_v27 }
 0x48b   : > { %v3704_v23 = vpop.permute.xlu0 %3703  ;;  %v4051_v0 = vadd.f32 %v8070_v20, %v4050_v4 }
 0x48c   : > { %v3855_v22 = vsel %vm2448_vm8, %v3828_v59, %v3704_v23 }
 0x48d   : > { %4143 = vmatmul.bf16.gmra.mxu1 %v3855_v22 }
 0x492   : > { %v4052_v6 = vpop.f32.mrf.mxu3 }
 0x493   : > { %v3617_v33 = vpop.permute.xlu0 %3616  ;;  %v4053_v21 = vadd.f32 %v8070_v20, %v4052_v6 }
 0x494   : > { %v3778_v38 = vsel %vm2448_vm8, %v3750_v32, %v3617_v33  ;;  %v8105_v32 = vpop.f32.mrf.mxu2 }
 0x495   : > { %4089 = vmatmul.bf16.gmra.mxu3 %v3778_v38 }
 0x49a   : > { %v4109_v12 = vpop.f32.mrf.mxu1 }
 0x49b   : > { %v4110_v52 = vadd.f32 %v4109_v12, %v4051_v0  ;;  %v3706_v30 = vpop.permute.xlu0 %3705 }
 0x49c   : > { %v3858_v49 = vsel %vm2448_vm8, %v3830_v15, %v3706_v30 }
 0x49d   : > { %v4169_v57 = vadd.f32 %v4168_v1, %v4110_v52  ;;  %4148 = vmatmul.bf16.gmra.mxu1 %v3858_v49 }
 0x49f   : > { %vm4218_vm5 = vcmp.ge.f32.partialorder %v4169_v57, 0.0  ;;  %v4238_v43 = vmul.f32 0.01, %v4169_v57 }
 0x4a1   : > { %v4258_v47 = vsel %vm4218_vm5, %v4169_v57, %v4238_v43  ;;  %vm8844_vm5 = vsmask.f32 7424 }
 0x4a2   : > { %v4282_v53 = vmul.f32 %v8080_v7, %v4258_v47  ;;  %v4111_v44 = vpop.f32.mrf.mxu1 }
 0x4a3   : > { %v4112_v56 = vadd.f32 %v4111_v44, %v4053_v21 }
 0x4a4   : > { %v4306_v63 = vadd.f32 %v8092_v40, %v4282_v53 }
 0x4a5   : > { %v4171_v3 = vadd.f32 %v4170_v8, %v4112_v56  ;;  %v4328_v8 = vadd.s32 1, %v8084_v58 }
 0x4a6   : > { %v4367_v50 = vsel %vm4357_vm10, %v4306_v63, 0.0 }
 0x4a7   : > { %vm4219_vm11 = vcmp.ge.f32.partialorder %v4171_v3, 0.0  ;;  %v4239_v37 = vmul.f32 0.01, %v4171_v3  ;;  %v4387_v10 = vpack.c.bf16 %v4367_v50, %v4367_v50  ;;  %vm4338_vm2 = vcmp.ge.s32.totalorder %v4328_v8, 0 }
 0x4a8   : > { %v4055_v61 = vpop.f32.mrf.mxu3  ;;  %vm4348_vm3 = vcmp.lt.s32.totalorder %v4328_v8, 16 }
 0x4a9   : > { %v4259_v31 = vsel %vm4219_vm11, %v4171_v3, %v4239_v37  ;;  %v4056_v28 = vadd.f32 %v8070_v20, %v4055_v61  ;;  %v4427_v25 = vunpack.c.l.b16 %v4387_v10  ;;  %vm8108_vm1 = vmand %vm4338_vm2, %vm4348_vm3 }
 0x4aa   : > { %v4283_v5 = vmul.f32 %v8080_v7, %v4259_v31  ;;  %v4114_v1 = vpop.f32.mrf.mxu1  ;;  %vm8847_vm2 = vmmov %vm8844_vm5 }
 0x4ab   : > { %v4115_v42 = vadd.f32 %v4114_v1, %v4056_v28  ;;  %v8131_v1 = vpop.f32.mrf.mxu2 }
 0x4ac   : > { %v4307_v17 = vadd.f32 %v8092_v40, %v4283_v5 }
 0x4ad   : > { %v4174_v14 = vadd.f32 %v4173_v46, %v4115_v42  ;;  %v4329_v42 = vadd.s32 2, %v8084_v58 }
 0x4ae   : > { %v4368_v26 = vsel %vm4357_vm10, %v4307_v17, 0.0 }
 0x4af   : > { %v4388_v39 = vpack.c.bf16 %v4368_v26, %v4368_v26  ;;  %vm4220_vm15 = vcmp.ge.f32.partialorder %v4174_v14, 0.0  ;;  %v4240_v34 = vmul.f32 0.01, %v4174_v14  ;;  %vm4339_vm6 = vcmp.ge.s32.totalorder %v4329_v42, 0 }
 0x4b0   : > { %v4057_v36 = vpop.f32.mrf.mxu3  ;;  %vm4349_vm9 = vcmp.lt.s32.totalorder %v4329_v42, 16 }
 0x4b1   : > { %v4428_v51 = vunpack.c.l.b16 %v4388_v39  ;;  %v4260_v13 = vsel %vm4220_vm15, %v4174_v14, %v4240_v34  ;;  %v4058_v23 = vadd.f32 %v8070_v20, %v4057_v36  ;;  %vm8140_vm10 = vmand %vm4339_vm6, %vm4349_vm9 }
 0x4b2   : > { %v4284_v59 = vmul.f32 %v8080_v7, %v4260_v13  ;;  %v4116_v22 = vpop.f32.mrf.mxu1  ;;  %vm8850_vm6 = vmmov %vm8847_vm2 }
 0x4b3   : > { %v4117_v29 = vadd.f32 %v4116_v22, %v4058_v23  ;;  %v4447_v19 = vpack.c.b16 %v4428_v51, %v4427_v25 }
 0x4b4   : > { %v4308_v4 = vadd.f32 %v8092_v40, %v4284_v59 }
 0x4b5   : > { %v4176_v46 = vadd.f32 %v4175_v2, %v4117_v29  ;;  %v4458_v33 = vshrl.u32 %v4447_v19, 16  ;;  %v4461_v0 = vshll.u32 %v4447_v19, 16 }
 0x4b6   : > { %v4369_v2 = vsel %vm8108_vm1, %v4308_v4, 0.0 }
 0x4b7   : > { %vm4221_vm12 = vcmp.ge.f32.partialorder %v4176_v46, 0.0  ;;  %v4241_v41 = vmul.f32 0.01, %v4176_v46  ;;  %v4460_v11 = vrot.slane %v4458_v33, 7  ;;  %v4389_v3 = vpack.c.bf16 %v4369_v2, %v4369_v2 }
 0x4b8   : > { %v4060_v27 = vpop.f32.mrf.mxu3 }
 0x4b9   : > { %v4261_v12 = vsel %vm4221_vm12, %v4176_v46, %v4241_v41  ;;  %v4061_v52 = vadd.f32 %v8070_v20, %v4060_v27  ;;  %v4463_v30 = vor.u32 %v4461_v0, %v4460_v11  ;;  %v4557_v57 = vsel %vm6560_vm13, %v4460_v11, 0  ;;  %v8145_v0 = vpop.f32.mrf.mxu2 }
 0x4ba   : > { %v4285_v15 = vmul.f32 %v8080_v7, %v4261_v12  ;;  %v4119_v49 = vpop.f32.mrf.mxu1  ;;  %v4696_v21 = vrot.slane %v4557_v57, 1  ;;  %v4575_v56 = vshll.u32 %v4557_v57, 16  ;;  %v4429_v14 = vunpack.c.l.b16 %v4389_v3 }
 0x4bb   : > { %v4120_v6 = vadd.f32 %v4119_v49, %v4061_v52  ;;  %v8120_v43 = vsel %vm6560_vm13, 0, %v4463_v30 }
 0x4bc   : > { %v4309_v47 = vadd.f32 %v8092_v40, %v4285_v15  ;;  %v4695_v53 = vrot.slane %v8120_v43, 1  ;;  %v4570_v44 = vshll.u32 %v8120_v43, 16  ;;  %v4568_v31 = vshrl.u32 %v8120_v43, 16 }
 0x4bd   : > { %v4179_v63 = vadd.f32 %v8086_v48, %v4120_v6  ;;  %v4577_v48 = vrot.slane %v4575_v56, 1 }
 0x4be   : > { %v4370_v37 = vsel %vm8108_vm1, %v4309_v47, 0.0  ;;  %v4697_v61 = vsel %vm877_vm0, %v4695_v53, %v4696_v21  ;;  %v4572_v28 = vrot.slane %v4570_v44, 1 }
 0x4bf   : > { %v4390_v50 = vpack.c.bf16 %v4370_v37, %v4370_v37  ;;  %vm4222_vm14 = vcmp.ge.f32.partialorder %v4179_v63, 0.0  ;;  %v4242_v5 = vmul.f32 0.01, %v4179_v63  ;;  %4719 = vrot.lane.b32.xlu2 %v4697_v61, %s5934_s17 }
 0x4c0   : > { %v4062_v17 = vpop.f32.mrf.mxu3  ;;  %v4573_v10 = vor.u32 %v4572_v28, %v4568_v31  ;;  %v4330_v31 = vadd.s32 3, %v8084_v58 }
 0x4c1   : > { %v4430_v26 = vunpack.c.l.b16 %v4390_v50  ;;  %v4262_v39 = vsel %vm4222_vm14, %v4179_v63, %v4242_v5  ;;  %v4063_v34 = vadd.f32 %v8070_v20, %v4062_v17 }
 0x4c2   : > { %v4286_v8 = vmul.f32 %v8080_v7, %v4262_v39  ;;  %v4121_v36 = vpop.f32.mrf.mxu1  ;;  %v4578_v25 = vsel %vm8844_vm5, %v4573_v10, %v4577_v48  ;;  %v5797_v48 = vld [vmem:[%s8730_s13 + $0x38] sm:$0xff]  ;;  %vm4340_vm3 = vcmp.ge.s32.totalorder %v4330_v31, 0  ;;  %vm4350_vm1 = vcmp.lt.s32.totalorder %v4330_v31, 16 }
 0x4c3   : > { %v4122_v51 = vadd.f32 %v4121_v36, %v4063_v34  ;;  %4663 = vrot.lane.b32.xlu1 %v4578_v25, %s5933_s16  ;;  %v4448_v13 = vpack.c.b16 %v4430_v26, %v4429_v14  ;;  %5125 = vmatpush.bf16.msrb.mxu0 %v5797_v48  ;;  %v4190_v36 = vpop.f32.mrf.mxu2  ;;  %vm8183_vm12 = vmand %vm4340_vm3, %vm4350_vm1 }
 0x4c4   : > { %v4310_v22 = vadd.f32 %v8092_v40, %v4286_v8  ;;  %vm8853_vm3 = vmmov %vm8850_vm6 }
 0x4c5   : > { %v4181_v23 = vadd.f32 %v8099_v45, %v4122_v51  ;;  %v4465_v59 = vshrl.u32 %v4448_v13, 16  ;;  %v4468_v33 = vshll.u32 %v4448_v13, 16  ;;  %vm8854_vm1 = vmmov %vm8853_vm3 }
 0x4c6   : > { %v4371_v45 = vsel %vm8140_vm10, %v4310_v22, 0.0 }
 0x4c7   : > { %vm4223_vm11 = vcmp.ge.f32.partialorder %v4181_v23, 0.0  ;;  %v4243_v19 = vmul.f32 0.01, %v4181_v23  ;;  %v4467_v46 = vrot.slane %v4465_v59, 7  ;;  %v4391_v47 = vpack.c.bf16 %v4371_v45, %v4371_v45 }
 0x4c8   : > { %v4065_v4 = vpop.f32.mrf.mxu3 }
 0x4c9   : > { %v4263_v38 = vsel %vm4223_vm11, %v4181_v23, %v4243_v19  ;;  %v4066_v41 = vadd.f32 %v8070_v20, %v4065_v4  ;;  %v4470_v11 = vor.u32 %v4468_v33, %v4467_v46  ;;  %v4558_v52 = vsel %vm6560_vm13, %v4467_v46, 0 }
 0x4ca   : > { %v4287_v27 = vmul.f32 %v8080_v7, %v4263_v38  ;;  %v4124_v12 = vpop.f32.mrf.mxu1  ;;  %v4699_v15 = vrot.slane %v4558_v52, 1  ;;  %v4587_v21 = vshll.u32 %v4558_v52, 16  ;;  %v4431_v5 = vunpack.c.l.b16 %v4391_v47 }
 0x4cb   : > { %v4125_v30 = vadd.f32 %v4124_v12, %v4066_v41  ;;  %v8154_v2 = vsel %vm6560_vm13, 0, %v4470_v11 }
 0x4cc   : > { %v4311_v49 = vadd.f32 %v8092_v40, %v4287_v27  ;;  %4736 = vrot.lane.b32.xlu0 %v8154_v2, %s5935_s0  ;;  %v4698_v57 = vrot.slane %v8154_v2, 1  ;;  %v4582_v6 = vshll.u32 %v8154_v2, 16  ;;  %v4580_v3 = vshrl.u32 %v8154_v2, 16 }
 0x4cd   : > { %v4184_v53 = vadd.f32 %v8105_v32, %v4125_v30  ;;  %v4589_v32 = vrot.slane %v4587_v21, 1 }
 0x4ce   : > { %v4372_v44 = vsel %vm8140_vm10, %v4311_v49, 0.0  ;;  %v8165_v56 = vsel %vm877_vm0, %v4698_v57, %v4699_v15  ;;  %v4584_v63 = vrot.slane %v4582_v6, 1  ;;  %v4193_v6 = vpop.f32.mrf.mxu2 }
 0x4cf   : > { %v4392_v37 = vpack.c.bf16 %v4372_v44, %v4372_v44  ;;  %vm4224_vm15 = vcmp.ge.f32.partialorder %v4184_v53, 0.0  ;;  %v4244_v61 = vmul.f32 0.01, %v4184_v53  ;;  %4721 = vrot.lane.b32.xlu2 %v8165_v56, %s5934_s17 }
 0x4d0   : > { %v4067_v28 = vpop.f32.mrf.mxu3  ;;  %v4585_v50 = vor.u32 %v4584_v63, %v4580_v3  ;;  %v4331_v63 = vadd.s32 4, %v8084_v58 }
 0x4d1   : > { %v4432_v42 = vunpack.c.l.b16 %v4392_v37  ;;  %v4264_v17 = vsel %vm4224_vm15, %v4184_v53, %v4244_v61  ;;  %v4068_v10 = vadd.f32 %v8070_v20, %v4067_v28 }
 0x4d2   : > { %v4288_v14 = vmul.f32 %v8080_v7, %v4264_v17  ;;  %v4126_v26 = vpop.f32.mrf.mxu1  ;;  %v8177_v39 = vsel %vm8847_vm2, %v4585_v50, %v4589_v32  ;;  %vm4341_vm9 = vcmp.ge.s32.totalorder %v4331_v63, 0  ;;  %vm4351_vm10 = vcmp.lt.s32.totalorder %v4331_v63, 16 }
 0x4d3   : > { %v4127_v34 = vadd.f32 %v4126_v26, %v4068_v10  ;;  %4665 = vrot.lane.b32.xlu1 %v8177_v39, %s5933_s16  ;;  %v4449_v8 = vpack.c.b16 %v4432_v42, %v4431_v5  ;;  %v5796_v5 = vld [vmem:[%s8730_s13 + $0x30] sm:$0xff]  ;;  %vm8230_vm11 = vmand %vm4341_vm9, %vm4351_vm10 }
 0x4d4   : > { %v4312_v13 = vadd.f32 %v8092_v40, %v4288_v14  ;;  %5126 = vmatpush.bf16.msrb.mxu0 %v5796_v5  ;;  %vm8857_vm10 = vmmov %vm8854_vm1 }
 0x4d5   : > { %v4186_v25 = vadd.f32 %v8131_v1, %v4127_v34  ;;  %v4472_v51 = vshrl.u32 %v4449_v8, 16  ;;  %v4475_v29 = vshll.u32 %v4449_v8, 16 }
 0x4d6   : > { %v4373_v1 = vsel %vm8183_vm12, %v4312_v13, 0.0 }
 0x4d7   : > { %vm4225_vm14 = vcmp.ge.f32.partialorder %v4186_v25, 0.0  ;;  %v4245_v59 = vmul.f32 0.01, %v4186_v25  ;;  %3597 = vrot.lane.b32.xlu2 %v7946_v35, %s5934_s17  ;;  %v4474_v22 = vrot.slane %v4472_v51, 7  ;;  %v4393_v49 = vpack.c.bf16 %v4373_v1, %v4373_v1 }
 0x4d8   : > { %v4070_v19 = vpop.f32.mrf.mxu3 }
 0x4d9   : > { %v4265_v46 = vsel %vm4225_vm14, %v4186_v25, %v4245_v59  ;;  %v4071_v33 = vadd.f32 %v8070_v20, %v4070_v19  ;;  %v4477_v4 = vor.u32 %v4475_v29, %v4474_v22  ;;  %v4559_v11 = vsel %vm6560_vm13, %v4474_v22, 0  ;;  %v4195_v22 = vpop.f32.mrf.mxu2 }
 0x4da   : > { %v4289_v38 = vmul.f32 %v8080_v7, %v4265_v46  ;;  %v4129_v41 = vpop.f32.mrf.mxu1  ;;  %v4702_v27 = vrot.slane %v4559_v11, 1  ;;  %v4599_v15 = vshll.u32 %v4559_v11, 16  ;;  %v4433_v31 = vunpack.c.l.b16 %v4393_v49 }
 0x4db   : > { %v4130_v45 = vadd.f32 %v4129_v41, %v4071_v33  ;;  %3527 = vrot.lane.b32.xlu1 %v7959_v62, %s5933_s16  ;;  %v8199_v35 = vsel %vm6560_vm13, 0, %v4477_v4  ;;  %v3680_v25 = vshll.u32 %v8005_v16, 16 }
 0x4dc   : > { %v4313_v12 = vadd.f32 %v8092_v40, %v4289_v38  ;;  %4738 = vrot.lane.b32.xlu0 %v8199_v35, %s5935_s0  ;;  %v4701_v52 = vrot.slane %v8199_v35, 1  ;;  %v4594_v30 = vshll.u32 %v8199_v35, 16  ;;  %v4592_v47 = vshrl.u32 %v8199_v35, 16 }
 0x4dd   : > { %v4189_v57 = vadd.f32 %v8145_v0, %v4130_v45  ;;  %v4601_v61 = vrot.slane %v4599_v15, 1  ;;  %v3685_v38 = vshll.u32 %v8009_v9, 16 }
 0x4de   : > { %v4374_v62 = vsel %vm8183_vm12, %v4313_v12, 0.0  ;;  %v8210_v21 = vsel %vm877_vm0, %v4701_v52, %v4702_v27  ;;  %v4596_v53 = vrot.slane %v4594_v30, 1  ;;  %v3682_v27 = vrot.slane %v3680_v25, 1 }
 0x4df   : > { %v4394_v44 = vpack.c.bf16 %v4374_v62, %v4374_v62  ;;  %vm4226_vm5 = vcmp.ge.f32.partialorder %v4189_v57, 0.0  ;;  %v4246_v3 = vmul.f32 0.01, %v4189_v57  ;;  %4723 = vrot.lane.b32.xlu2 %v8210_v21, %s5934_s17 }
 0x4e0   : > { %v4072_v37 = vpop.f32.mrf.mxu3  ;;  %v4597_v0 = vor.u32 %v4596_v53, %v4592_v47 }
 0x4e1   : > { %v4434_v28 = vunpack.c.l.b16 %v4394_v44  ;;  %v4266_v50 = vsel %vm4226_vm5, %v4189_v57, %v4246_v3  ;;  %v4073_v32 = vadd.f32 %v8070_v20, %v4072_v37  ;;  %v3678_v57 = vshrl.u32 %v8005_v16, 16  ;;  %v4198_v5 = vpop.f32.mrf.mxu2 }
 0x4e2   : > { %v4290_v42 = vmul.f32 %v8080_v7, %v4266_v50  ;;  %v4131_v17 = vpop.f32.mrf.mxu1  ;;  %v8222_v10 = vsel %vm8850_vm6, %v4597_v0, %v4601_v61 }
 0x4e3   : > { %v4132_v48 = vadd.f32 %v4131_v17, %v4073_v32  ;;  %4667 = vrot.lane.b32.xlu1 %v8222_v10, %s5933_s16  ;;  %v4450_v14 = vpack.c.b16 %v4434_v28, %v4433_v31  ;;  %v3683_v63 = vor.u32 %v3682_v27, %v3678_v57 }
 0x4e4   : > { %3618 = vrot.lane.b32.xlu0 %v7965_v60, %s5935_s0  ;;  %v4314_v8 = vadd.f32 %v8092_v40, %v4290_v42 }
 0x4e5   : > { %v4191_v26 = vadd.f32 %v4190_v36, %v4132_v48  ;;  %v4479_v34 = vshrl.u32 %v4450_v14, 16  ;;  %v4482_v59 = vshll.u32 %v4450_v14, 16 }
 0x4e6   : > { %v4375_v46 = vsel %vm8230_vm11, %v4314_v8, 0.0 }
 0x4e7   : > { %vm4227_vm15 = vcmp.ge.f32.partialorder %v4191_v26, 0.0  ;;  %v4247_v13 = vmul.f32 0.01, %v4191_v26  ;;  %3675 = vrot.lane.b32.xlu2 %v8005_v16, %s5934_s17  ;;  %v4481_v23 = vrot.slane %v4479_v34, 7  ;;  %v4395_v15 = vpack.c.bf16 %v4375_v46, %v4375_v46 }
 0x4e8   : > { %v4075_v29 = vpop.f32.mrf.mxu3  ;;  %v3687_v16 = vrot.slane %v3685_v38, 1 }
 0x4e9   : > { %v4267_v60 = vsel %vm4227_vm15, %v4191_v26, %v4247_v13  ;;  %v4076_v36 = vadd.f32 %v8070_v20, %v4075_v29  ;;  %v4484_v19 = vor.u32 %v4482_v59, %v4481_v23  ;;  %v4560_v1 = vsel %vm6560_vm13, %v4481_v23, 0 }
 0x4ea   : > { %v4291_v33 = vmul.f32 %v8080_v7, %v4267_v60  ;;  %v4134_v4 = vpop.f32.mrf.mxu1  ;;  %v4705_v45 = vrot.slane %v4560_v1, 1  ;;  %v4611_v9 = vshll.u32 %v4560_v1, 16  ;;  %v4435_v31 = vunpack.c.l.b16 %v4395_v15 }
 0x4eb   : > { %v4135_v41 = vadd.f32 %v4134_v4, %v4076_v36  ;;  %v8245_v11 = vsel %vm6560_vm13, 0, %v4484_v19  ;;  %v3688_v26 = vsel %vm8854_vm1, %v3683_v63, %v3687_v16 }
 0x4ec   : > { %v4315_v12 = vadd.f32 %v8092_v40, %v4291_v33  ;;  %3654 = vrot.lane.b32.xlu0 %v7989_v24, %s5933_s16  ;;  %4740 = vrot.lane.b32.xlu1 %v8245_v11, %s5935_s0  ;;  %v4704_v52 = vrot.slane %v8245_v11, 1  ;;  %v4606_v30 = vshll.u32 %v8245_v11, 16  ;;  %v4604_v24 = vshrl.u32 %v8245_v11, 16 }
 0x4ed   : > { %v4194_v49 = vadd.f32 %v4193_v6, %v4135_v41  ;;  %v4332_v6 = vadd.s32 5, %v8084_v58  ;;  %v4613_v61 = vrot.slane %v4611_v9, 1 }
 0x4ee   : > { %v4376_v62 = vsel %vm8230_vm11, %v4315_v12, 0.0  ;;  %v8258_v47 = vsel %vm877_vm0, %v4704_v52, %v4705_v45  ;;  %v4608_v53 = vrot.slane %v4606_v30, 1  ;;  %v4200_v12 = vpop.f32.mrf.mxu2 }
 0x4ef   : > { %v4396_v44 = vpack.c.bf16 %v4376_v62, %v4376_v62  ;;  %vm4228_vm2 = vcmp.ge.f32.partialorder %v4194_v49, 0.0  ;;  %v4248_v3 = vmul.f32 0.01, %v4194_v49  ;;  %4725 = vrot.lane.b32.xlu2 %v8258_v47, %s5934_s17  ;;  %vm4342_vm12 = vcmp.ge.s32.totalorder %v4332_v6, 0 }
 0x4f0   : > { %v4077_v37 = vpop.f32.mrf.mxu3  ;;  %v4609_v0 = vor.u32 %v4608_v53, %v4604_v24  ;;  %vm4352_vm14 = vcmp.lt.s32.totalorder %v4332_v6, 16  ;;  %v4333_v6 = vadd.s32 6, %v8084_v58 }
 0x4f1   : > { %v4436_v28 = vunpack.c.l.b16 %v4396_v44  ;;  %v4268_v50 = vsel %vm4228_vm2, %v4194_v49, %v4248_v3  ;;  %v4078_v32 = vadd.f32 %v8070_v20, %v4077_v37  ;;  %vm8274_vm5 = vmand %vm4342_vm12, %vm4352_vm14 }
 0x4f2   : > { %v4292_v42 = vmul.f32 %v8080_v7, %v4268_v50  ;;  %v4136_v17 = vpop.f32.mrf.mxu1  ;;  %v8267_v48 = vsel %vm8853_vm3, %v4609_v0, %v4613_v61  ;;  %vm4343_vm11 = vcmp.ge.s32.totalorder %v4333_v6, 0  ;;  %vm4353_vm15 = vcmp.lt.s32.totalorder %v4333_v6, 16  ;;  %vm8860_vm12 = vmmov %vm8857_vm10 }
 0x4f3   : > { %v4137_v14 = vadd.f32 %v4136_v17, %v4078_v32  ;;  %v4451_v34 = vpack.c.b16 %v4436_v28, %v4435_v31  ;;  %vm8313_vm2 = vmand %vm4343_vm11, %vm4353_vm15  ;;  %v4334_v6 = vadd.s32 7, %v8084_v58 }
 0x4f4   : > { %3707 = vrot.lane.b32.xlu0 %v3688_v26, %s5935_s0  ;;  %4669 = vrot.lane.b32.xlu1 %v8267_v48, %s5933_s16  ;;  %v4316_v51 = vadd.f32 %v8092_v40, %v4292_v42  ;;  %vm8863_vm11 = vmmov %vm8860_vm12 }
 0x4f5   : > { %v4196_v8 = vadd.f32 %v4195_v22, %v4137_v14  ;;  %v4486_v25 = vshrl.u32 %v4451_v34, 16  ;;  %v4489_v29 = vshll.u32 %v4451_v34, 16  ;;  %v5795_v22 = vld [vmem:[%s8730_s13 + $0x28] sm:$0xff]  ;;  %vm4344_vm14 = vcmp.ge.s32.totalorder %v4334_v6, 0 }
 0x4f6   : > { %v4377_v33 = vsel %vm8274_vm5, %v4316_v51, 0.0  ;;  %5127 = vmatpush.bf16.msrb.mxu0 %v5795_v22 }
 0x4f7   : > { %vm4229_vm6 = vcmp.ge.f32.partialorder %v4196_v8, 0.0  ;;  %v4249_v23 = vmul.f32 0.01, %v4196_v8  ;;  %v4488_v59 = vrot.slane %v4486_v25, 7  ;;  %v4397_v49 = vpack.c.bf16 %v4377_v33, %v4377_v33 }
 0x4f8   : > { %v4080_v60 = vpop.f32.mrf.mxu3 }
 0x4f9   : > { %v4269_v36 = vsel %vm4229_vm6, %v4196_v8, %v4249_v23  ;;  %v4081_v19 = vadd.f32 %v8070_v20, %v4080_v60  ;;  %v4491_v46 = vor.u32 %v4489_v29, %v4488_v59  ;;  %v4561_v38 = vsel %vm6560_vm13, %v4488_v59, 0  ;;  %v4203_v8 = vpop.f32.mrf.mxu2 }
 0x4fa   : > { %v4293_v4 = vmul.f32 %v8080_v7, %v4269_v36  ;;  %v4139_v1 = vpop.f32.mrf.mxu1  ;;  %v4708_v27 = vrot.slane %v4561_v38, 1  ;;  %v4623_v15 = vshll.u32 %v4561_v38, 16  ;;  %v4437_v61 = vunpack.c.l.b16 %v4397_v49 }
 0x4fb   : > { %v4140_v41 = vadd.f32 %v4139_v1, %v4081_v19  ;;  %v8289_v45 = vsel %vm6560_vm13, 0, %v4491_v46 }
 0x4fc   : > { %v4317_v52 = vadd.f32 %v8092_v40, %v4293_v4  ;;  %4742 = vrot.lane.b32.xlu0 %v8289_v45, %s5935_s0  ;;  %v4707_v30 = vrot.slane %v8289_v45, 1  ;;  %v4618_v9 = vshll.u32 %v8289_v45, 16  ;;  %v4616_v53 = vshrl.u32 %v8289_v45, 16 }
 0x4fd   : > { %v4199_v57 = vadd.f32 %v4198_v5, %v4140_v41  ;;  %v4625_v0 = vrot.slane %v4623_v15, 1 }
 0x4fe   : > { %v4378_v62 = vsel %vm8274_vm5, %v4317_v52, 0.0  ;;  %v8299_v24 = vsel %vm877_vm0, %v4707_v30, %v4708_v27  ;;  %v4620_v44 = vrot.slane %v4618_v9, 1  ;;  %vm4354_vm5 = vcmp.lt.s32.totalorder %v4334_v6, 16 }
 0x4ff   : > { %v4398_v3 = vpack.c.bf16 %v4378_v62, %v4378_v62  ;;  %vm4230_vm9 = vcmp.ge.f32.partialorder %v4199_v57, 0.0  ;;  %v4250_v63 = vmul.f32 0.01, %v4199_v57  ;;  %4727 = vrot.lane.b32.xlu2 %v8299_v24, %s5934_s17  ;;  %vm8355_vm6 = vmand %vm4344_vm14, %vm4354_vm5 }
 0x500   : > { %v4082_v37 = vpop.f32.mrf.mxu3  ;;  %v4621_v16 = vor.u32 %v4620_v44, %v4616_v53  ;;  %vm8867_vm14 = vmmov %vm8863_vm11 }
 0x501   : > { %v4438_v31 = vunpack.c.l.b16 %v4398_v3  ;;  %v4270_v28 = vsel %vm4230_vm9, %v4199_v57, %v4250_v63  ;;  %v4083_v50 = vadd.f32 %v8070_v20, %v4082_v37  ;;  %v4205_v63 = vpop.f32.mrf.mxu2 }
 0x502   : > { %v4294_v32 = vmul.f32 %v8080_v7, %v4270_v28  ;;  %v4141_v5 = vpop.f32.mrf.mxu1  ;;  %v8308_v42 = vsel %vm8857_vm10, %v4621_v16, %v4625_v0 }
 0x503   : > { %v4142_v17 = vadd.f32 %v4141_v5, %v4083_v50  ;;  %4671 = vrot.lane.b32.xlu1 %v8308_v42, %s5933_s16  ;;  %v4452_v14 = vpack.c.b16 %v4438_v31, %v4437_v61 }
 0x504   : > { %v4318_v25 = vadd.f32 %v8092_v40, %v4294_v32  ;;  %v5794_v32 = vld [vmem:[%s8730_s13 + $0x20] sm:$0xff] }
 0x505   : > { %v4201_v26 = vadd.f32 %v4200_v12, %v4142_v17  ;;  %v4493_v34 = vshrl.u32 %v4452_v14, 16  ;;  %v4496_v59 = vshll.u32 %v4452_v14, 16  ;;  %5128 = vmatpush.bf16.msrb.mxu0 %v5794_v32 }
 0x506   : > { %v4379_v46 = vsel %vm8313_vm2, %v4318_v25, 0.0 }
 0x507   : > { %vm4231_vm3 = vcmp.ge.f32.partialorder %v4201_v26, 0.0  ;;  %v4251_v13 = vmul.f32 0.01, %v4201_v26  ;;  %v4495_v23 = vrot.slane %v4493_v34, 7  ;;  %v4399_v9 = vpack.c.bf16 %v4379_v46, %v4379_v46 }
 0x508   : > { %v4085_v29 = vpop.f32.mrf.mxu3 }
 0x509   : > { %v4271_v60 = vsel %vm4231_vm3, %v4201_v26, %v4251_v13  ;;  %v4086_v36 = vadd.f32 %v8070_v20, %v4085_v29  ;;  %v4498_v19 = vor.u32 %v4496_v59, %v4495_v23  ;;  %v4562_v4 = vsel %vm6560_vm13, %v4495_v23, 0 }
 0x50a   : > { %v4295_v22 = vmul.f32 %v8080_v7, %v4271_v60  ;;  %v4144_v33 = vpop.f32.mrf.mxu1  ;;  %v4711_v41 = vrot.slane %v4562_v4, 1  ;;  %v4635_v30 = vshll.u32 %v4562_v4, 16  ;;  %v4439_v61 = vunpack.c.l.b16 %v4399_v9  ;;  %v4208_v4 = vpop.f32.mrf.mxu2 }
 0x50b   : > { %v4145_v1 = vadd.f32 %v4144_v33, %v4086_v36  ;;  %v8325_v38 = vsel %vm6560_vm13, 0, %v4498_v19  ;;  %v5792_v36 = vld [vmem:[%s8730_s13 + $0x10] sm:$0xff] }
 0x50c   : > { %v4319_v27 = vadd.f32 %v8092_v40, %v4295_v22  ;;  %4744 = vrot.lane.b32.xlu0 %v8325_v38, %s5935_s0  ;;  %v4710_v12 = vrot.slane %v8325_v38, 1  ;;  %v4630_v52 = vshll.u32 %v8325_v38, 16  ;;  %v4628_v62 = vshrl.u32 %v8325_v38, 16 }
 0x50d   : > { %v4204_v15 = vadd.f32 %v4203_v8, %v4145_v1  ;;  %v4637_v0 = vrot.slane %v4635_v30, 1  ;;  %v5793_v8 = vld [vmem:[%s8730_s13 + $0x18] sm:$0xff] }
 0x50e   : > { %v4380_v49 = vsel %vm8313_vm2, %v4319_v27, 0.0  ;;  %v8335_v57 = vsel %vm877_vm0, %v4710_v12, %v4711_v41  ;;  %v4632_v53 = vrot.slane %v4630_v52, 1  ;;  %5129 = vmatpush.bf16.msrb.mxu0 %v5793_v8 }
 0x50f   : > { %v4400_v44 = vpack.c.bf16 %v4380_v49, %v4380_v49  ;;  %vm4232_vm1 = vcmp.ge.f32.partialorder %v4204_v15, 0.0  ;;  %v4252_v3 = vmul.f32 0.01, %v4204_v15  ;;  %4729 = vrot.lane.b32.xlu2 %v8335_v57, %s5934_s17 }
 0x510   : > { %v4087_v37 = vpop.f32.mrf.mxu3  ;;  %v4633_v16 = vor.u32 %v4632_v53, %v4628_v62 }
 0x511   : > { %v4440_v31 = vunpack.c.l.b16 %v4400_v44  ;;  %v4272_v28 = vsel %vm4232_vm1, %v4204_v15, %v4252_v3  ;;  %v4088_v50 = vadd.f32 %v8070_v20, %v4087_v37  ;;  %v5791_v15 = vld [vmem:[%s8730_s13 + $0x8] sm:$0xff] }
 0x512   : > { %v4296_v5 = vmul.f32 %v8080_v7, %v4272_v28  ;;  %v4146_v17 = vpop.f32.mrf.mxu1  ;;  %v8347_v14 = vsel %vm8860_vm12, %v4633_v16, %v4637_v0  ;;  %5130 = vmatpush.bf16.msrb.mxu0 %v5792_v36  ;;  %v5790_v28 = vld [vmem:[%s8730_s13] sm:$0xff]  ;;  %vm8866_vm12 = vmmov %vm8863_vm11 }
 0x513   : > { %v4147_v26 = vadd.f32 %v4146_v17, %v4088_v50  ;;  %4673 = vrot.lane.b32.xlu1 %v8347_v14, %s5933_s16  ;;  %v4453_v34 = vpack.c.b16 %v4440_v31, %v4439_v61  ;;  %v4335_v50 = vadd.s32 8, %v8084_v58 }
 0x514   : > { %v4320_v13 = vadd.f32 %v8092_v40, %v4296_v5 }
 0x515   : > { %v4206_v25 = vadd.f32 %v4205_v63, %v4147_v26  ;;  %v4500_v51 = vshrl.u32 %v4453_v34, 16  ;;  %v4503_v60 = vshll.u32 %v4453_v34, 16  ;;  %vm4345_vm15 = vcmp.ge.s32.totalorder %v4335_v50, 0 }
 0x516   : > { %v4381_v1 = vsel %vm8355_vm6, %v4320_v13, 0.0  ;;  %5131 = vmatpush.bf16.msrb.mxu0 %v5791_v15  ;;  %vm4355_vm2 = vcmp.lt.s32.totalorder %v4335_v50, 16 }
 0x517   : > { %vm4233_vm9 = vcmp.ge.f32.partialorder %v4206_v25, 0.0  ;;  %v4253_v59 = vmul.f32 0.01, %v4206_v25  ;;  %v4502_v29 = vrot.slane %v4500_v51, 7  ;;  %v4401_v3 = vpack.c.bf16 %v4381_v1, %v4381_v1  ;;  %vm8400_vm3 = vmand %vm4345_vm15, %vm4355_vm2 }
 0x518   : > { %v4090_v19 = vpop.f32.mrf.mxu3 }
 0x519   : > { %v4273_v46 = vsel %vm4233_vm9, %v4206_v25, %v4253_v59  ;;  %v4091_v22 = vadd.f32 %v8070_v20, %v4090_v19  ;;  %v4505_v33 = vor.u32 %v4503_v60, %v4502_v29  ;;  %v4563_v12 = vsel %vm6560_vm13, %v4502_v29, 0  ;;  %v4210_v60 = vpop.f32.mrf.mxu2 }
 0x51a   : > { %v4297_v41 = vmul.f32 %v8080_v7, %v4273_v46  ;;  %v4149_v27 = vpop.f32.mrf.mxu1  ;;  %v4714_v9 = vrot.slane %v4563_v12, 1  ;;  %v4647_v44 = vshll.u32 %v4563_v12, 16  ;;  %v4441_v26 = vunpack.c.l.b16 %v4401_v3  ;;  %5132 = vmatpush.bf16.msrb.mxu0 %v5790_v28 }
 0x51b   : > { %v4150_v52 = vadd.f32 %v4149_v27, %v4091_v22  ;;  %v8370_v30 = vsel %vm6560_vm13, 0, %v4505_v33 }
 0x51c   : > { %v4321_v49 = vadd.f32 %v8092_v40, %v4297_v41  ;;  %4746 = vrot.lane.b32.xlu0 %v8370_v30, %s5935_s0  ;;  %v4713_v62 = vrot.slane %v8370_v30, 1  ;;  %v4642_v53 = vshll.u32 %v8370_v30, 16  ;;  %v4640_v16 = vshrl.u32 %v8370_v30, 16 }
 0x51d   : > { %v4209_v63 = vadd.f32 %v4208_v4, %v4150_v52  ;;  %v4649_v17 = vrot.slane %v4647_v44, 1 }
 0x51e   : > { %v4382_v6 = vsel %vm8355_vm6, %v4321_v49, 0.0  ;;  %v8383_v37 = vsel %vm877_vm0, %v4713_v62, %v4714_v9  ;;  %v4644_v0 = vrot.slane %v4642_v53, 1 }
 0x51f   : > { %v4402_v61 = vpack.c.bf16 %v4382_v6, %v4382_v6  ;;  %vm4234_vm10 = vcmp.ge.f32.partialorder %v4209_v63, 0.0  ;;  %v4254_v31 = vmul.f32 0.01, %v4209_v63  ;;  %4731 = vrot.lane.b32.xlu2 %v8383_v37, %s5934_s17 }
 0x520   : > { %v4092_v32 = vpop.f32.mrf.mxu3  ;;  %v4645_v5 = vor.u32 %v4644_v0, %v4640_v16 }
 0x521   : > { %v4442_v34 = vunpack.c.l.b16 %v4402_v61  ;;  %v4274_v8 = vsel %vm4234_vm10, %v4209_v63, %v4254_v31  ;;  %v4093_v25 = vadd.f32 %v8070_v20, %v4092_v32 }
 0x522   : > { %v4298_v51 = vmul.f32 %v8080_v7, %v4274_v8  ;;  %v4151_v13 = vpop.f32.mrf.mxu1  ;;  %v8395_v23 = vsel %vm8863_vm11, %v4645_v5, %v4649_v17 }
 0x523   : > { %v4152_v59 = vadd.f32 %v4151_v13, %v4093_v25  ;;  %4675 = vrot.lane.b32.xlu1 %v8395_v23, %s5933_s16  ;;  %v4454_v29 = vpack.c.b16 %v4442_v34, %v4441_v26  ;;  %v4720_v13 = vpop.permute.xlu2 %4719 }
 0x524   : > { %v4322_v46 = vadd.f32 %v8092_v40, %v4298_v51 }
 0x525   : > { %v4211_v36 = vadd.f32 %v4210_v60, %v4152_v59  ;;  %v4507_v19 = vshrl.u32 %v4454_v29, 16  ;;  %v4510_v4 = vshll.u32 %v4454_v29, 16 }
 0x526   : > { %v4383_v12 = vsel %vm8400_vm3, %v4322_v46, 0.0 }
 0x527   : > { %vm4235_vm1 = vcmp.ge.f32.partialorder %v4211_v36, 0.0  ;;  %v4255_v22 = vmul.f32 0.01, %v4211_v36  ;;  %v4509_v33 = vrot.slane %v4507_v19, 7  ;;  %v4403_v3 = vpack.c.bf16 %v4383_v12, %v4383_v12 }
 0x529   : > { %v4275_v1 = vsel %vm4235_vm1, %v4211_v36, %v4255_v22  ;;  %v4512_v41 = vor.u32 %v4510_v4, %v4509_v33  ;;  %v4564_v27 = vsel %vm6560_vm13, %v4509_v33, 0  ;;  %v4443_v31 = vunpack.c.l.b16 %v4403_v3 }
 0x52a   : > { %v4299_v52 = vmul.f32 %v8080_v7, %v4275_v1  ;;  %v4717_v15 = vrot.slane %v4564_v27, 1  ;;  %v4659_v44 = vshll.u32 %v4564_v27, 16 }
 0x52b   : > { %v8411_v9 = vsel %vm6560_vm13, 0, %v4512_v41  ;;  %v4722_v36 = vpop.permute.xlu2 %4721 }
 0x52c   : > { %v4323_v49 = vadd.f32 %v8092_v40, %v4299_v52  ;;  %4748 = vrot.lane.b32.xlu0 %v8411_v9, %s5935_s0  ;;  %v4716_v62 = vrot.slane %v8411_v9, 1  ;;  %v4654_v53 = vshll.u32 %v8411_v9, 16  ;;  %v4652_v6 = vshrl.u32 %v8411_v9, 16 }
 0x52d   : > { %v4661_v61 = vrot.slane %v4659_v44, 1 }
 0x52e   : > { %v4384_v63 = vsel %vm8400_vm3, %v4323_v49, 0.0  ;;  %v8421_v7 = vsel %vm877_vm0, %v4716_v62, %v4717_v15  ;;  %v4656_v16 = vrot.slane %v4654_v53, 1 }
 0x52f   : > { %v4404_v0 = vpack.c.bf16 %v4384_v63, %v4384_v63  ;;  %4733 = vrot.lane.b32.xlu2 %v8421_v7, %s5934_s17 }
 0x530   : > { %v4657_v40 = vor.u32 %v4656_v16, %v4652_v6 }
 0x531   : > { %v4444_v28 = vunpack.c.l.b16 %v4404_v0 }
 0x532   : > { %v8427_v50 = vsel %vm8866_vm12, %v4657_v40, %v4661_v61 }
 0x533   : > { %4677 = vrot.lane.b32.xlu1 %v8427_v50, %s5933_s16  ;;  %v4455_v32 = vpack.c.b16 %v4444_v28, %v4443_v31  ;;  %v3598_v4 = vpop.permute.xlu2 %3597 }
 0x535   : > { %v4514_v5 = vshrl.u32 %v4455_v32, 16  ;;  %v4517_v26 = vshll.u32 %v4455_v32, 16  ;;  %v4664_v34 = vpop.permute.xlu1 %4663 }
 0x536   : > { %v4834_v25 = vsel %vm2398_vm4, %v8120_v43, %v4664_v34  ;;  %v5807_v43 = vld [vmem:[%s8730_s13 + $0x88] sm:$0xff] }
 0x537   : > { %4785 = vrot.lane.b32.xlu2 %v8199_v35, %s5934_s17  ;;  %v8433_v17 = vrot.slane %v4514_v5, 7  ;;  %v4850_v29 = vsel %vm2423_vm7, %v4834_v25, %v4720_v13  ;;  %5229 = vmatpush.bf16.msra.mxu3 %v5807_v43  ;;  %v5805_v13 = vld [vmem:[%s8730_s13 + $0x78] sm:$0xff] }
 0x538   : > { %5174 = vmatpush.bf16.msra.mxu0 %v5805_v13 }
 0x539   : > { %v4519_v8 = vor.u32 %v4517_v26, %v8433_v17 }
 0x53b   : > { %4768 = vrot.lane.b32.xlu1 %v8165_v56, %s5933_s16  ;;  %v8442_v51 = vsel %vm6560_vm13, 0, %v4519_v8  ;;  %v5806_v56 = vld [vmem:[%s8730_s13 + $0x80] sm:$0xff]  ;;  %v4724_v15 = vpop.permute.xlu2 %4723 }
 0x53c   : > { %4750 = vrot.lane.b32.xlu0 %v8442_v51, %s5935_s0  ;;  %5230 = vmatpush.bf16.msra.mxu3 %v5806_v56  ;;  %v4755_v0 = vshll.u32 %v8442_v51, 16  ;;  %v4753_v32 = vshrl.u32 %v8442_v51, 16  ;;  %v4765_v34 = vrot.slane %v8442_v51, 1 }
 0x53e   : > { %v4737_v59 = vpop.permute.xlu0 %4736  ;;  %v4757_v31 = vrot.slane %v4755_v0, 1 }
 0x53f   : > { %4787 = vrot.lane.b32.xlu2 %v8245_v11, %s5934_s17  ;;  %v4866_v60 = vsel %vm2448_vm8, %v4850_v29, %v4737_v59 }
 0x540   : > { %5133 = vmatmul.bf16.vlgmr.msrb.gmra.mxu0 %v4866_v60  ;;  %v4758_v8 = vor.u32 %v4757_v31, %v4753_v32 }
 0x543   : > { %4770 = vrot.lane.b32.xlu1 %v8210_v21, %s5933_s16  ;;  %v3676_v3 = vpop.permute.xlu2 %3675 }
 0x544   : > { %4813 = vrot.lane.b32.xlu0 %v8222_v10, %s5935_s0 }
 0x545   : > { %v4666_v19 = vpop.permute.xlu1 %4665 }
 0x546   : > { %v4836_v46 = vsel %vm2398_vm4, %v8154_v2, %v4666_v19 }
 0x547   : > { %4789 = vrot.lane.b32.xlu2 %v8289_v45, %s5934_s17  ;;  %v4852_v33 = vsel %vm2423_vm7, %v4836_v46, %v4722_v36  ;;  %v5804_v46 = vld [vmem:[%s8730_s13 + $0x70] sm:$0xff] }
 0x548   : > { %5175 = vmatpush.bf16.msra.mxu0 %v5804_v46 }
 0x54b   : > { %4772 = vrot.lane.b32.xlu1 %v8258_v47, %s5933_s16  ;;  %v4726_v28 = vpop.permute.xlu2 %4725 }
 0x54c   : > { %4815 = vrot.lane.b32.xlu0 %v8267_v48, %s5935_s0 }
 0x54d   : > { %v3528_v20 = vpop.permute.xlu1 %3527 }
 0x54e   : > { %v4739_v22 = vpop.permute.xlu0 %4738  ;;  %v3732_v2 = vsel %vm2398_vm4, %v7917_v55, %v3528_v20 }
 0x54f   : > { %4791 = vrot.lane.b32.xlu2 %v8325_v38, %s5934_s17  ;;  %v4869_v1 = vsel %vm2448_vm8, %v4852_v33, %v4739_v22  ;;  %v3752_v12 = vsel %vm2423_vm7, %v3732_v2, %v3598_v4 }
 0x550   : > { %5138 = vmatmul.bf16.gmra.mxu0 %v4869_v1 }
 0x553   : > { %4774 = vrot.lane.b32.xlu1 %v8299_v24, %s5933_s16 }
 0x554   : > { %4817 = vrot.lane.b32.xlu0 %v8308_v42, %s5935_s0 }
 0x555   : > { %v4668_v41 = vpop.permute.xlu1 %4667 }
 0x556   : > { %v3619_v27 = vpop.permute.xlu0 %3618  ;;  %v4838_v55 = vsel %vm2398_vm4, %v8199_v35, %v4668_v41  ;;  %v5800_v41 = vld [vmem:[%s8730_s13 + $0x50] sm:$0xff] }
 0x557   : > { %4793 = vrot.lane.b32.xlu2 %v8370_v30, %s5934_s17  ;;  %v3781_v52 = vsel %vm2448_vm8, %v3752_v12, %v3619_v27  ;;  %v4854_v53 = vsel %vm2423_vm7, %v4838_v55, %v4724_v15  ;;  %v5798_v12 = vld [vmem:[%s8730_s13 + $0x40] sm:$0xff] }
 0x558   : > { %4094 = vmatmul.bf16.gmra.mxu3 %v3781_v52 }
 0x559   : > { %v4728_v43 = vpop.permute.xlu2 %4727 }
 0x55b   : > { %4776 = vrot.lane.b32.xlu1 %v8335_v57, %s5933_s16 }
 0x55c   : > { %4819 = vrot.lane.b32.xlu0 %v8347_v14, %s5935_s0 }
 0x55e   : > { %v4741_v49 = vpop.permute.xlu1 %4740  ;;  %v3655_v62 = vpop.permute.xlu0 %3654 }
 0x55f   : > { %4795 = vrot.lane.b32.xlu2 %v8411_v9, %s5934_s17  ;;  %v4872_v44 = vsel %vm2448_vm8, %v4854_v53, %v4741_v49  ;;  %v3812_v35 = vsel %vm2398_vm4, %v7996_v54, %v3655_v62  ;;  %v4565_v54 = vsel %vm6560_vm13, %v8433_v17, 0 }
 0x560   : > { %5143 = vmatmul.bf16.gmra.mxu0 %v4872_v44  ;;  %v3832_v6 = vsel %vm2423_vm7, %v3812_v35, %v3676_v3  ;;  %v4760_v5 = vshll.u32 %v4565_v54, 16 }
 0x562   : > { %v4762_v25 = vrot.slane %v4760_v5, 1 }
 0x563   : > { %4778 = vrot.lane.b32.xlu1 %v8383_v37, %s5933_s16 }
 0x564   : > { %4821 = vrot.lane.b32.xlu0 %v8395_v23, %s5935_s0  ;;  %v8524_v29 = vsel %vm8867_vm14, %v4758_v8, %v4762_v25 }
 0x566   : > { %v3708_v63 = vpop.permute.xlu0 %3707  ;;  %v4670_v40 = vpop.permute.xlu1 %4669 }
 0x567   : > { %4797 = vrot.lane.b32.xlu2 %v8442_v51, %s5934_s17  ;;  %v3861_v16 = vsel %vm2448_vm8, %v3832_v6, %v3708_v63  ;;  %v4840_v61 = vsel %vm2398_vm4, %v8245_v11, %v4670_v40  ;;  %v4766_v11 = vrot.slane %v4565_v54, 1 }
 0x568   : > { %4153 = vmatmul.bf16.gmra.mxu1 %v3861_v16  ;;  %5725 = vmatmul.msk.bf16.vlgmr.msra.gmra.mxu3 %vm2398_vm4, %v8210_v21  ;;  %v4856_v21 = vsel %vm2423_vm7, %v4840_v61, %v4726_v28 }
 0x569   : > { %v4767_v59 = vsel %vm877_vm0, %v4765_v34, %v4766_v11  ;;  %v4730_v33 = vpop.permute.xlu2 %4729 }
 0x56b   : > { %4780 = vrot.lane.b32.xlu1 %v8421_v7, %s5933_s16 }
 0x56c   : > { %4823 = vrot.lane.b32.xlu0 %v8427_v50, %s5935_s0 }
 0x56e   : > { %v4743_v26 = vpop.permute.xlu0 %4742 }
 0x56f   : > { %v4875_v17 = vsel %vm2448_vm8, %v4856_v21, %v4743_v26 }
 0x570   : > { %5148 = vmatmul.bf16.gmra.mxu0 %v4875_v17 }
 0x573   : > { %4782 = vrot.lane.b32.xlu1 %v4767_v59, %s5933_s16 }
 0x574   : > { %4825 = vrot.lane.b32.xlu0 %v8524_v29, %s5935_s0 }
 0x575   : > { %v4672_v51 = vpop.permute.xlu1 %4671 }
 0x576   : > { %v4842_v60 = vsel %vm2398_vm4, %v8289_v45, %v4672_v51  ;;  %v5802_v45 = vld [vmem:[%s8730_s13 + $0x60] sm:$0xff] }
 0x577   : > { %v4858_v36 = vsel %vm2423_vm7, %v4842_v60, %v4728_v43  ;;  %v4213_v60 = vpop.f32.mrf.mxu2 }
 0x578   : > { %5726 = vmatmul.msk.bf16.gmra.mxu3 %vm2398_vm4, %v8258_v47  ;;  %v5803_v47 = vld [vmem:[%s8730_s13 + $0x68] sm:$0xff] }
 0x579   : > { %5176 = vmatpush.bf16.msra.mxu0 %v5803_v47  ;;  %v4732_v15 = vpop.permute.xlu2 %4731 }
 0x57d   : > { %5177 = vmatpush.bf16.msra.mxu0 %v5802_v45  ;;  %v4336_v45 = vadd.s32 9, %v8084_v58 }
 0x57e   : > { %v4745_v56 = vpop.permute.xlu0 %4744 }
 0x57f   : > { %v4878_v19 = vsel %vm2448_vm8, %v4858_v36, %v4745_v56  ;;  %vm4346_vm6 = vcmp.ge.s32.totalorder %v4336_v45, 0  ;;  %vm4356_vm9 = vcmp.lt.s32.totalorder %v4336_v45, 16 }
 0x580   : > { %5153 = vmatmul.bf16.gmra.mxu0 %v4878_v19  ;;  %vm4366_vm10 = vmand %vm4346_vm6, %vm4356_vm9 }
 0x585   : > { %v4674_v20 = vpop.permute.xlu1 %4673 }
 0x586   : > { %v4844_v22 = vsel %vm2398_vm4, %v8325_v38, %v4674_v20  ;;  %v5799_v38 = vld [vmem:[%s8730_s13 + $0x48] sm:$0xff] }
 0x587   : > { %v4860_v1 = vsel %vm2423_vm7, %v4844_v22, %v4730_v33 }
 0x588   : > { %5727 = vmatmul.msk.bf16.gmra.mxu3 %vm2398_vm4, %v8299_v24  ;;  %v5801_v24 = vld [vmem:[%s8730_s13 + $0x58] sm:$0xff] }
 0x589   : > { %5178 = vmatpush.bf16.msra.mxu0 %v5801_v24  ;;  %v4734_v44 = vpop.permute.xlu2 %4733 }
 0x58d   : > { %5179 = vmatpush.bf16.msra.mxu0 %v5800_v41 }
 0x58e   : > { %v4747_v4 = vpop.permute.xlu0 %4746 }
 0x58f   : > { %v4881_v2 = vsel %vm2448_vm8, %v4860_v1, %v4747_v4 }
 0x590   : > { %5158 = vmatmul.bf16.gmra.mxu0 %v4881_v2  ;;  %v5882_v2 = vld [vmem:[%s8728_s11] ss:$0 sm:$0xff] }
 0x591   : > { %5180 = vmatpush.bf16.msra.mxu0 %v5799_v38  ;;  %v4786_v0 = vpop.permute.xlu2 %4785 }
 0x595   : > { %v4676_v27 = vpop.permute.xlu1 %4675  ;;  %5181 = vmatpush.bf16.msra.mxu0 %v5798_v12 }
 0x596   : > { %v4846_v52 = vsel %vm2398_vm4, %v8370_v30, %v4676_v27 }
 0x597   : > { %v4862_v49 = vsel %vm2423_vm7, %v4846_v52, %v4732_v15  ;;  %v4215_v52 = vpop.f32.mrf.mxu2  ;;  %v5883_v15 = vld [vmem:[%s8729_s12] ss:$0 sm:$0xff] }
 0x598   : > { %5728 = vmatmul.msk.bf16.gmra.mxu3 %vm2398_vm4, %v8335_v57 }
 0x599   : > { %v4788_v28 = vpop.permute.xlu2 %4787 }
 0x59e   : > { %v4749_v55 = vpop.permute.xlu0 %4748 }
 0x59f   : > { %v4884_v62 = vsel %vm2448_vm8, %v4862_v49, %v4749_v55 }
 0x5a0   : > { %5163 = vmatmul.bf16.gmra.mxu0 %v4884_v62 }
 0x5a1   : > { %v4790_v8 = vpop.permute.xlu2 %4789 }
 0x5a5   : > { %v4678_v57 = vpop.permute.xlu1 %4677 }
 0x5a6   : > { %v4848_v53 = vsel %vm2398_vm4, %v8411_v9, %v4678_v57 }
 0x5a7   : > { %v4864_v35 = vsel %vm2423_vm7, %v4848_v53, %v4734_v44 }
 0x5a8   : > { %5729 = vmatmul.msk.bf16.gmra.mxu3 %vm2398_vm4, %v8383_v37 }
 0x5a9   : > { %v4792_v1 = vpop.permute.xlu2 %4791 }
 0x5ad   : > { %v4769_v63 = vpop.permute.xlu1 %4768 }
 0x5ae   : > { %v4751_v3 = vpop.permute.xlu0 %4750  ;;  %v4891_v6 = vsel %vm2398_vm4, %v8177_v39, %v4769_v63 }
 0x5af   : > { %v4887_v30 = vsel %vm2448_vm8, %v4864_v35, %v4751_v3  ;;  %v4914_v9 = vsel %vm2423_vm7, %v4891_v6, %v4786_v0 }
 0x5b0   : > { %5168 = vmatmul.bf16.gmra.mxu0 %v4887_v30 }
 0x5b5   : > { %v4771_v61 = vpop.permute.xlu1 %4770 }
 0x5b6   : > { %v4814_v16 = vpop.permute.xlu0 %4813 }
 0x5b7   : > { %v4930_v40 = vsel %vm2448_vm8, %v4914_v9, %v4814_v16 }
 0x5b8   : > { %5730 = vmatmul.msk.bf16.gmra.mxu3 %vm2398_vm4, %v8421_v7  ;;  %v4894_v7 = vsel %vm2398_vm4, %v8222_v10, %v4771_v61  ;;  %v4794_v61 = vpop.permute.xlu2 %4793 }
 0x5b9   : > { %v4916_v32 = vsel %vm2423_vm7, %v4894_v7, %v4788_v28 }
 0x5bd   : > { %v8577_v37 = vpop.f32.mrf.mxu0  ;;  %v4773_v21 = vpop.permute.xlu1 %4772 }
 0x5be   : > { %v4816_v31 = vpop.permute.xlu0 %4815  ;;  %v4897_v34 = vsel %vm2398_vm4, %v8267_v48, %v4773_v21 }
 0x5bf   : > { %v4933_v5 = vsel %vm2448_vm8, %v4916_v32, %v4816_v31  ;;  %v4918_v10 = vsel %vm2423_vm7, %v4897_v34, %v4790_v8 }
 0x5c0   : > { %5182 = vmatmul.bf16.vlgmr.msra.gmra.mxu0 %v4930_v40 }
 0x5c5   : > { %v8581_v54 = vpop.f32.mrf.mxu0  ;;  %v4775_v48 = vpop.permute.xlu1 %4774 }
 0x5c6   : > { %v4818_v17 = vpop.permute.xlu0 %4817  ;;  %v4900_v47 = vsel %vm2398_vm4, %v8308_v42, %v4775_v48 }
 0x5c7   : > { %v4936_v13 = vsel %vm2448_vm8, %v4918_v10, %v4818_v17  ;;  %v4920_v12 = vsel %vm2423_vm7, %v4900_v47, %v4792_v1  ;;  %v4796_v47 = vpop.permute.xlu2 %4795 }
 0x5c8   : > { %5731 = vmatmul.msk.bf16.gmra.mxu3 %vm2398_vm4, %v4767_v59  ;;  %v5881_v59 = vld [vmem:[%s8727_s10] ss:$0 sm:$0xff] }
 0x5cd   : > { %v8586_v39 = vpop.f32.mrf.mxu0  ;;  %v4777_v35 = vpop.permute.xlu1 %4776 }
 0x5ce   : > { %v4820_v22 = vpop.permute.xlu0 %4819  ;;  %v4903_v16 = vsel %vm2398_vm4, %v8347_v14, %v4777_v35 }
 0x5cf   : > { %v4939_v58 = vsel %vm2448_vm8, %v4920_v12, %v4820_v22  ;;  %v4922_v31 = vsel %vm2423_vm7, %v4903_v16, %v4794_v61 }
 0x5d0   : > { %5187 = vmatmul.bf16.gmra.mxu0 %v4933_v5 }
 0x5d5   : > { %v8590_v26 = vpop.f32.mrf.mxu0 }
 0x5d6   : > { %v4822_v0 = vpop.permute.xlu0 %4821 }
 0x5d7   : > { %v4942_v32 = vsel %vm2448_vm8, %v4922_v31, %v4822_v0 }
 0x5db   : > { %v4095_v25 = vpop.f32.mrf.mxu3 }
 0x5dc   : > { %v4096_v51 = vadd.f32 %v5881_v59, %v4095_v25 }
 0x5dd   : > { %v8594_v11 = vpop.f32.mrf.mxu0 }
 0x5de   : > { %v4824_v18 = vpop.permute.xlu0 %4823 }
 0x5e0   : > { %5192 = vmatmul.bf16.gmra.mxu0 %v4936_v13 }
 0x5e3   : > { %v4097_v46 = vpop.f32.mrf.mxu3 }
 0x5e4   : > { %v4098_v33 = vadd.f32 %v5881_v59, %v4097_v46 }
 0x5e5   : > { %v4154_v43 = vpop.f32.mrf.mxu1  ;;  %v8601_v36 = vpop.f32.mrf.mxu0 }
 0x5e6   : > { %v4155_v56 = vadd.f32 %v4154_v43, %v4096_v51 }
 0x5e8   : > { %v4214_v19 = vadd.f32 %v4213_v60, %v4155_v56  ;;  %v4779_v60 = vpop.permute.xlu1 %4778 }
 0x5ea   : > { %vm4236_vm5 = vcmp.ge.f32.partialorder %v4214_v19, 0.0  ;;  %v4256_v20 = vmul.f32 0.01, %v4214_v19 }
 0x5ec   : > { %v4276_v4 = vsel %vm4236_vm5, %v4214_v19, %v4256_v20  ;;  %v4906_v19 = vsel %vm2398_vm4, %v8395_v23, %v4779_v60 }
 0x5ed   : > { %v4300_v24 = vmul.f32 %v5882_v2, %v4276_v4  ;;  %v4156_v41 = vpop.f32.mrf.mxu1  ;;  %v8609_v38 = vpop.f32.mrf.mxu0 }
 0x5ee   : > { %v4157_v27 = vadd.f32 %v4156_v41, %v4098_v33  ;;  %v4924_v33 = vsel %vm2423_vm7, %v4906_v19, %v4796_v47  ;;  %v4798_v41 = vpop.permute.xlu2 %4797 }
 0x5ef   : > { %v4324_v55 = vadd.f32 %v5883_v15, %v4300_v24  ;;  %v4945_v4 = vsel %vm2448_vm8, %v4924_v33, %v4824_v18  ;;  %v4826_v24 = vpop.permute.xlu0 %4825 }
 0x5f0   : > { %v4216_v42 = vadd.f32 %v4215_v52, %v4157_v27  ;;  %5197 = vmatmul.bf16.gmra.mxu0 %v4939_v58  ;;  %v5232_v58 = vpop.f32.mrf.mxu3 }
 0x5f1   : > { %v4385_v57 = vsel %vm4366_vm10, %v4324_v55, 0.0 }
 0x5f2   : > { %vm4237_vm11 = vcmp.ge.f32.partialorder %v4216_v42, 0.0  ;;  %v4257_v49 = vmul.f32 0.01, %v4216_v42  ;;  %v4405_v30 = vpack.c.bf16 %v4385_v57, %v4385_v57 }
 0x5f4   : > { %v4277_v62 = vsel %vm4237_vm11, %v4216_v42, %v4257_v49  ;;  %v4445_v9 = vunpack.c.l.b16 %v4405_v30 }
 0x5f5   : > { %v4301_v53 = vmul.f32 %v5882_v2, %v4277_v62  ;;  %v8616_v44 = vpop.f32.mrf.mxu0  ;;  %v4781_v2 = vpop.permute.xlu1 %4780 }
 0x5f6   : > { %v4909_v23 = vsel %vm2398_vm4, %v8427_v50, %v4781_v2  ;;  %v8658_v50 = vld [vmem:[%s8731_s14] ss:$0 sm:$0xff] }
 0x5f7   : > { %v4325_v3 = vadd.f32 %v5883_v15, %v4301_v53  ;;  %v4926_v12 = vsel %vm2423_vm7, %v4909_v23, %v4798_v41  ;;  %v5135_v57 = vadd.f32 %v8658_v50, %v8577_v37  ;;  %v5142_v37 = vadd.f32 %v8658_v50, %v8590_v26 }
 0x5f8   : > { %v4948_v52 = vsel %vm2448_vm8, %v4926_v12, %v4826_v24  ;;  %v5234_v55 = vpop.f32.mrf.mxu3  ;;  %v5150_v60 = vadd.f32 %v8658_v50, %v8609_v38 }
 0x5f9   : > { %v4386_v63 = vsel %vm4366_vm10, %v4325_v3, 0.0 }
 0x5fa   : > { %v4406_v6 = vpack.c.bf16 %v4386_v63, %v4386_v63  ;;  %v5137_v63 = vadd.f32 %v8658_v50, %v8581_v54  ;;  %v5145_v54 = vadd.f32 %v8658_v50, %v8594_v11  ;;  %v5152_v11 = vadd.f32 %v8658_v50, %v8616_v44 }
 0x5fc   : > { %v4446_v40 = vunpack.c.l.b16 %v4406_v6 }
 0x5fd   : > { %v8620_v7 = vpop.f32.mrf.mxu0 }
 0x5fe   : > { %v4456_v28 = vpack.c.b16 %v4446_v40, %v4445_v9  ;;  %v5140_v9 = vadd.f32 %v8658_v50, %v8586_v39  ;;  %v5155_v47 = vadd.f32 %v8658_v50, %v8620_v7 }
 0x600   : > { %5202 = vmatmul.bf16.gmra.mxu0 %v4942_v32  ;;  %v4521_v5 = vshrl.u32 %v4456_v28, 16  ;;  %v4524_v34 = vshll.u32 %v4456_v28, 16  ;;  %v5237_v62 = vpop.f32.mrf.mxu3 }
 0x602   : > { %v4523_v21 = vrot.slane %v4521_v5, 7 }
 0x604   : > { %v4526_v17 = vor.u32 %v4524_v34, %v4523_v21  ;;  %v4566_v8 = vsel %vm6560_vm13, %v4523_v21, 0 }
 0x605   : > { %v8626_v14 = vpop.f32.mrf.mxu0  ;;  %v4831_v59 = vrot.slane %v4566_v8, 1  ;;  %v4809_v51 = vshll.u32 %v4566_v8, 16 }
 0x606   : > { %v4556_v10 = vsel %vm6560_vm13, 0, %v4526_v17  ;;  %vm8868_vm13 = vmmov %vm8866_vm12  ;;  %v5157_v12 = vadd.f32 %v8658_v50, %v8626_v14 }
 0x607   : > { %4799 = vrot.lane.b32.xlu2 %v4556_v10, %s5934_s17  ;;  %v4804_v25 = vshll.u32 %v4556_v10, 16  ;;  %v4830_v13 = vrot.slane %v4556_v10, 1  ;;  %v4802_v43 = vshrl.u32 %v4556_v10, 16  ;;  %v4811_v20 = vrot.slane %v4809_v51, 1 }
 0x608   : > { %v5239_v30 = vpop.f32.mrf.mxu3 }
 0x609   : > { %v4806_v56 = vrot.slane %v4804_v25, 1  ;;  %v4832_v48 = vsel %vm877_vm0, %v4830_v13, %v4831_v59  ;;  %v5147_v25 = vadd.f32 %v8658_v50, %v8601_v36  ;;  %v4783_v36 = vpop.permute.xlu1 %4782 }
 0x60a   : > { %5732 = vmatmul.msk.bf16.gmra.mxu3 %vm2398_vm4, %v4832_v48  ;;  %v4912_v38 = vsel %vm2398_vm4, %v8524_v29, %v4783_v36 }
 0x60b   : > { %v4807_v46 = vor.u32 %v4806_v56, %v4802_v43 }
 0x60d   : > { %v4812_v45 = vsel %vm8868_vm13, %v4807_v46, %v4811_v20  ;;  %v8636_v22 = vpop.f32.mrf.mxu0 }
 0x60e   : > { %4827 = vrot.lane.b32.xlu0 %v4812_v45, %s5935_s0  ;;  %v5160_v29 = vadd.f32 %v8658_v50, %v8636_v22 }
 0x610   : > { %5207 = vmatmul.bf16.gmra.mxu0 %v4945_v4  ;;  %v5242_v40 = vpop.f32.mrf.mxu3 }
 0x615   : > { %v8641_v1 = vpop.f32.mrf.mxu0 }
 0x618   : > { %v5244_v21 = vpop.f32.mrf.mxu3 }
 0x61d   : > { %v8645_v27 = vpop.f32.mrf.mxu0 }
 0x61e   : > { %v5165_v14 = vadd.f32 %v8658_v50, %v8645_v27 }
 0x620   : > { %5212 = vmatmul.bf16.gmra.mxu0 %v4948_v52  ;;  %v5247_v39 = vpop.f32.mrf.mxu3 }
 0x625   : > { %v8649_v42 = vpop.f32.mrf.mxu0 }
 0x626   : > { %v5167_v22 = vadd.f32 %v8658_v50, %v8649_v42 }
 0x628   : > { %v5249_v26 = vpop.f32.mrf.mxu3 }
 0x62d   : > { %v8651_v15 = vpop.f32.mrf.mxu0 }
 0x630   : > { %v5252_v19 = vpop.f32.mrf.mxu3 }
 0x635   : > { %v8653_v49 = vpop.f32.mrf.mxu0 }
 0x638   : > { %v5254_v2 = vpop.f32.mrf.mxu3 }
 0x63d   : > { %v5183_v53 = vpop.f32.mrf.mxu0 }
 0x63e   : > { %v5184_v3 = vadd.f32 %v5183_v53, %v5135_v57 }
 0x640   : > { %v5233_v35 = vadd.f32 %v5232_v58, %v5184_v3 }
 0x642   : > { %5272 = vxpose.xlu1.b32.start [1/16] (narrow) %v5233_v35, 8  ;;  %v5162_v35 = vadd.f32 %v8658_v50, %v8641_v1 }
 0x645   : > { %v5185_v6 = vpop.f32.mrf.mxu0 }
 0x646   : > { %v5186_v16 = vadd.f32 %v5185_v6, %v5137_v63 }
 0x648   : > { %v5235_v0 = vadd.f32 %v5234_v55, %v5186_v16  ;;  %v5257_v55 = vpop.f32.mrf.mxu3 }
 0x64a   : > { %5273 = vxpose.xlu1.b32.cont [2/16] (narrow) %v5235_v0, 8 }
 0x64d   : > { %v5188_v61 = vpop.f32.mrf.mxu0 }
 0x64e   : > { %v5189_v31 = vadd.f32 %v5188_v61, %v5140_v9 }
 0x650   : > { %v5238_v28 = vadd.f32 %v5237_v62, %v5189_v31  ;;  %v5259_v3 = vpop.f32.mrf.mxu3 }
 0x652   : > { %5274 = vxpose.xlu1.b32.cont [3/16] (narrow) %v5238_v28, 8 }
 0x655   : > { %v5190_v32 = vpop.f32.mrf.mxu0 }
 0x656   : > { %v5191_v5 = vadd.f32 %v5190_v32, %v5142_v37  ;;  %v5170_v37 = vadd.f32 %v8658_v50, %v8651_v15 }
 0x658   : > { %v5240_v34 = vadd.f32 %v5239_v30, %v5191_v5  ;;  %v5262_v16 = vpop.f32.mrf.mxu3 }
 0x65a   : > { %5275 = vxpose.xlu1.b32.cont [4/16] (narrow) %v5240_v34, 8  ;;  %v5172_v34 = vadd.f32 %v8658_v50, %v8653_v49 }
 0x65d   : > { %v5193_v17 = vpop.f32.mrf.mxu0 }
 0x65e   : > { %v5194_v8 = vadd.f32 %v5193_v17, %v5145_v54 }
 0x660   : > { %v5243_v10 = vadd.f32 %v5242_v40, %v5194_v8  ;;  %v5264_v28 = vpop.f32.mrf.mxu3 }
 0x661   : > { %v4800_v45 = vpop.permute.xlu2 %4799 }
 0x662   : > { %5276 = vxpose.xlu1.b32.cont [5/16] (narrow) %v5243_v10, 8  ;;  %v4928_v23 = vsel %vm2423_vm7, %v4912_v38, %v4800_v45 }
 0x665   : > { %v5195_v13 = vpop.f32.mrf.mxu0 }
 0x666   : > { %v5196_v59 = vadd.f32 %v5195_v13, %v5147_v25 }
 0x668   : > { %v5245_v51 = vadd.f32 %v5244_v21, %v5196_v59 }
 0x66a   : > { %5277 = vxpose.xlu1.b32.cont [6/16] (narrow) %v5245_v51, 8 }
 0x66d   : > { %v5198_v43 = vpop.f32.mrf.mxu0 }
 0x66e   : > { %v5199_v56 = vadd.f32 %v5198_v43, %v5150_v60 }
 0x670   : > { %v5248_v48 = vadd.f32 %v5247_v39, %v5199_v56 }
 0x672   : > { %5278 = vxpose.xlu1.b32.cont [7/16] (narrow) %v5248_v48, 8 }
 0x675   : > { %v5200_v46 = vpop.f32.mrf.mxu0 }
 0x676   : > { %v5201_v20 = vadd.f32 %v5200_v46, %v5152_v11 }
 0x678   : > { %v5250_v18 = vadd.f32 %v5249_v26, %v5201_v20 }
 0x67a   : > { %5279 = vxpose.xlu1.b32.cont [8/16] (narrow) %v5250_v18, 8 }
 0x67d   : > { %v5203_v33 = vpop.f32.mrf.mxu0 }
 0x67e   : > { %v5204_v4 = vadd.f32 %v5203_v33, %v5155_v47 }
 0x680   : > { %v4828_v24 = vpop.permute.xlu0 %4827  ;;  %v5253_v44 = vadd.f32 %v5252_v19, %v5204_v4 }
 0x681   : > { %v4951_v41 = vsel %vm2448_vm8, %v4928_v23, %v4828_v24 }
 0x682   : > { %5217 = vmatmul.bf16.gmra.mxu0 %v4951_v41  ;;  %5280 = vxpose.xlu1.b32.cont [9/16] (narrow) %v5253_v44, 8 }
 0x685   : > { %v5205_v52 = vpop.f32.mrf.mxu0 }
 0x686   : > { %v5206_v7 = vadd.f32 %v5205_v52, %v5157_v12 }
 0x688   : > { %v5255_v58 = vadd.f32 %v5254_v2, %v5206_v7 }
 0x68a   : > { %5281 = vxpose.xlu1.b32.cont [10/16] (narrow) %v5255_v58, 8 }
 0x68d   : > { %v5208_v62 = vpop.f32.mrf.mxu0  ;;  %v5267_v27 = vpop.f32.mrf.mxu3 }
 0x68e   : > { %v5209_v57 = vadd.f32 %v5208_v62, %v5160_v29 }
 0x690   : > { %v5258_v53 = vadd.f32 %v5257_v55, %v5209_v57 }
 0x692   : > { %5282 = vxpose.xlu1.b32.cont [11/16] (narrow) %v5258_v53, 8 }
 0x695   : > { %v5210_v30 = vpop.f32.mrf.mxu0  ;;  %v5269_v17 = vpop.f32.mrf.mxu3 }
 0x696   : > { %v5211_v63 = vadd.f32 %v5210_v30, %v5162_v35 }
 0x698   : > { %v5260_v6 = vadd.f32 %v5259_v3, %v5211_v63 }
 0x69a   : > { %5283 = vxpose.xlu1.b32.cont [12/16] (narrow) %v5260_v6, 8 }
 0x69d   : > { %v5213_v0 = vpop.f32.mrf.mxu0 }
 0x69e   : > { %v5214_v9 = vadd.f32 %v5213_v0, %v5165_v14 }
 0x6a0   : > { %v5263_v40 = vadd.f32 %v5262_v16, %v5214_v9 }
 0x6a2   : > { %5284 = vxpose.xlu1.b32.cont [13/16] (narrow) %v5263_v40, 8 }
 0x6a5   : > { %v5215_v61 = vpop.f32.mrf.mxu0 }
 0x6a6   : > { %v5216_v31 = vadd.f32 %v5215_v61, %v5167_v22 }
 0x6a8   : > { %v5265_v1 = vadd.f32 %v5264_v28, %v5216_v31 }
 0x6aa   : > { %5285 = vxpose.xlu1.b32.cont [14/16] (narrow) %v5265_v1, 8 }
 0x6ff   : > { %v5218_v32 = vpop.f32.mrf.mxu0 }
 0x700   : > { %v5219_v5 = vadd.f32 %v5218_v32, %v5170_v37 }
 0x702   : > { %v5268_v21 = vadd.f32 %v5267_v27, %v5219_v5 }
 0x704   : > { %5286 = vxpose.xlu1.b32.cont [15/16] (narrow) %v5268_v21, 8 }
 0x707   : > { %v5220_v42 = vpop.f32.mrf.mxu0 }
 0x708   : > { %v5221_v54 = vadd.f32 %v5220_v42, %v5172_v34 }
 0x70a   : > { %v5270_v8 = vadd.f32 %v5269_v17, %v5221_v54 }
 0x70c   : > { %5287 = vxpose.xlu1.b32.end [16/16] (narrow) %v5270_v8, 8 }
 0x738   : > { %v5288_v15 = vpop.trf.xlu1 }
 0x739   : > { %5304 = vst [vmem:[%s514_s25] sm:$0xf] %v5288_v15 }
 0x73a PF: > { %s25_s22 = sadd.s32 1, %s5922_s22   ;;  %s8869_s27 = sld [smem:[#allocation2_spill]] }
 0x73b   : > { %p22_p7 = scmp.ge.s32.totalorder %s25_s22, 6   ;;  %s8870_s16 = sld [smem:[#allocation3_spill]] }
 0x73c   : > { %s8871_s18 = smov %s5914_s20  ;;  %s8872_s19 = smov %s5918_s21 }
 0x73d   :  { %24 = sbr.rel (!%p22_p7) target bundleno = 3 (0x3), region = 111 }
 0x740   : > { %s8873_s20 = smov %s8869_s27 }
 0x741   : > { %s8874_s21 = smov %s8870_s16 }

</bundles_post_ra>
